<compile_context>
chip_gen: v5e
topology: v5e:2x2
jax: 0.10.0
libtpu: 0.0.40
codegen_flags: <defaults>
</compile_context>

<pallas_src>
import functools

import jax
import jax.numpy as jnp
from jax.experimental import pallas as pl
from jax.experimental.pallas import tpu as pltpu

VMEM_SPEC = pl.BlockSpec(memory_space=pltpu.MemorySpace.VMEM)
LANE = 128

# (K, C_in, C_out) per ChebConv layer, matching the PyTorch module.
CONV_CFG = [
    (2, 128, 190),
    (2, 190, 256),
    (2, 256, 169),
    (5, 169, 190),
    (1, 190, 256),
    (3, 256, 128),
]
GN_DIMS = {1: 190, 2: 256, 3: 169, 6: 128}  # GraphNorm after conv1/2/3/6


def _pad_to(n, m=LANE):
    return ((n + m - 1) // m) * m


# ----------------------------------------------------------------------------
# Fused forward kernel (whole network in one pallas_call)
# ----------------------------------------------------------------------------
def _fused_gcn_kernel(ks, n_nodes,
                      x_ref, l_ref,
                      w1, b1, g1w, g1b, g1m,
                      w2, b2, g2w, g2b, g2m,
                      w3, b3, g3w, g3b, g3m,
                      w4, b4,
                      w5, b5,
                      w6, b6, g6w, g6b, g6m,
                      l1w, l1b, l2w, l2b,
                      o_ref):
    inv_n = 1.0 / float(n_nodes)
    L = l_ref[...].astype(jnp.float32)           # [N, N] scaled Laplacian

    def cheb(x, w_ref, b_ref, K):
        # Chebyshev recursion builds Tx_all = [T_0 x | ... | T_{K-1} x]  ([N, K*Cin]),
        # then a single wide MXU matmul against the flattened [K*Cin, Cout] weight.
        txs = [x]
        if K > 1:
            txs.append(jnp.dot(L, x, preferred_element_type=jnp.float32))
        for _ in range(2, K):
            txs.append(
                2.0 * jnp.dot(L, txs[-1], preferred_element_type=jnp.float32) - txs[-2]
            )
        tx_all = txs[0] if K == 1 else jnp.concatenate(txs, axis=1)
        return jnp.dot(tx_all, w_ref[...], preferred_element_type=jnp.float32) + b_ref[...]

    def gn_leaky(x, w_ref, b_ref, ms_ref):
        # GraphNorm (single graph) followed by LeakyReLU(0.2).
        mean = jnp.sum(x, axis=0, keepdims=True) * inv_n
        out = x - mean * ms_ref[...]
        var = jnp.sum(out * out, axis=0, keepdims=True) * inv_n
        y = w_ref[...] * out * jax.lax.rsqrt(var + 1e-5) + b_ref[...]
        return jnp.where(y > 0, y, 0.2 * y)

    x = x_ref[...].astype(jnp.float32)           # [N, 128]
    x = gn_leaky(cheb(x, w1, b1, ks[0]), g1w, g1b, g1m)
    x = gn_leaky(cheb(x, w2, b2, ks[1]), g2w, g2b, g2m)
    x = gn_leaky(cheb(x, w3, b3, ks[2]), g3w, g3b, g3m)
    x = jnp.maximum(cheb(x, w4, b4, ks[3]), 0.0)
    x = jnp.maximum(cheb(x, w5, b5, ks[4]), 0.0)
    x = gn_leaky(cheb(x, w6, b6, ks[5]), g6w, g6b, g6m)

    # global_mean_pool (single graph) -> Linear(128,64) -> tanh -> Linear(64,10),
    # all padded to 128 lanes (pad lanes stay exactly zero).
    pooled = jnp.sum(x, axis=0, keepdims=True) * inv_n                       # [1, 128]
    h = jnp.tanh(
        jnp.dot(pooled, l1w[...], preferred_element_type=jnp.float32) + l1b[...]
    )                                                                        # [1, 128]
    o_ref[...] = (
        jnp.dot(h, l2w[...], preferred_element_type=jnp.float32) + l2b[...]
    )                                                                        # [1, 128]


def own_gcn_forward(pp, x, l_hat):
    """Fused OwnGCN forward. pp: padded/flattened params, x: [N,128], l_hat: [N,N]."""
    n = x.shape[0]
    ks = tuple(cfg[0] for cfg in CONV_CFG)

    args = [x, l_hat]
    for i in (1, 2, 3):
        args += [pp[f"conv{i}_w"], pp[f"conv{i}_b"],
                 pp[f"gn{i}_w"], pp[f"gn{i}_b"], pp[f"gn{i}_ms"]]
    for i in (4, 5):
        args += [pp[f"conv{i}_w"], pp[f"conv{i}_b"]]
    args += [pp["conv6_w"], pp["conv6_b"],
             pp["gn6_w"], pp["gn6_b"], pp["gn6_ms"]]
    args += [pp["lin1_w"], pp["lin1_b"], pp["lin2_w"], pp["lin2_b"]]

    kernel = functools.partial(_fused_gcn_kernel, ks, n)
    out_pad = pl.pallas_call(
        kernel,
        out_shape=jax.ShapeDtypeStruct((1, LANE), jnp.float32),
        in_specs=[VMEM_SPEC] * len(args),
        out_specs=VMEM_SPEC,
    )(*args)
    return out_pad[:, :10]                       # [num_graphs=1, 10]


# ----------------------------------------------------------------------------
# One-time preprocessing (hoisted out of the forward path)
# ----------------------------------------------------------------------------
def build_l_hat(edge_index, num_nodes):
    """L_hat = 2*L/lambda_max - I, sym-normalized Laplacian, lambda_max=2
    => L_hat = -D^{-1/2} A D^{-1/2}  (PyG ChebConv default). Computed once per graph."""
    src = edge_index[0]
    dst = edge_index[1]
    adj = jnp.zeros((num_nodes, num_nodes), jnp.float32).at[dst, src].add(1.0)
    deg = jnp.sum(adj, axis=0)
    dinv = jnp.where(deg > 0, 1.0 / jnp.sqrt(jnp.maximum(deg, 1e-12)), 0.0)
    return -adj * dinv[:, None] * dinv[None, :]


def init_params(key):
    """Deterministic synthetic weights at the natural (PyTorch) shapes."""
    params = {}
    keys = jax.random.split(key, 16)
    ki = 0
    for i, (k, c_in, c_out) in enumerate(CONV_CFG, start=1):
        scale = 1.0 / jnp.sqrt(jnp.float32(c_in))
        params[f"conv{i}_w"] = (
            jax.random.normal(keys[ki], (k, c_in, c_out), jnp.float32) * scale * 0.5
        )
        params[f"conv{i}_b"] = jnp.zeros((1, c_out), jnp.float32)
        ki += 1
    for i, c in GN_DIMS.items():
        params[f"gn{i}_w"] = jnp.ones((1, c), jnp.float32)    # GraphNorm.weight
        params[f"gn{i}_b"] = jnp.zeros((1, c), jnp.float32)   # GraphNorm.bias
        params[f"gn{i}_ms"] = jnp.ones((1, c), jnp.float32)   # GraphNorm.mean_scale
    params["lin1_w"] = jax.random.normal(keys[ki], (128, 64), jnp.float32) * 0.08
    params["lin1_b"] = jnp.zeros((1, 64), jnp.float32)
    ki += 1
    params["lin2_w"] = jax.random.normal(keys[ki], (64, 10), jnp.float32) * 0.1
    params["lin2_b"] = jnp.zeros((1, 10), jnp.float32)
    return params


def pack_params(p):
    """Zero-pad all channel dims to multiples of 128 and flatten ChebConv weights
    to [K*Cin_pad, Cout_pad] for the single-matmul formulation. Run once."""
    pp = {}
    for i, (k, c_in, c_out) in enumerate(CONV_CFG, start=1):
        ci, co = _pad_to(c_in), _pad_to(c_out)
        w = jnp.zeros((k, ci, co), jnp.float32).at[:, :c_in, :c_out].set(p[f"conv{i}_w"])
        pp[f"conv{i}_w"] = w.reshape(k * ci, co)
        pp[f"conv{i}_b"] = jnp.zeros((1, co), jnp.float32).at[:, :c_out].set(p[f"conv{i}_b"])
    for i, c in GN_DIMS.items():
        cp = _pad_to(c)
        for nm in ("w", "b", "ms"):
            pp[f"gn{i}_{nm}"] = (
                jnp.zeros((1, cp), jnp.float32).at[:, :c].set(p[f"gn{i}_{nm}"])
            )
    pp["lin1_w"] = jnp.zeros((128, 128), jnp.float32).at[:, :64].set(p["lin1_w"])
    pp["lin1_b"] = jnp.zeros((1, 128), jnp.float32).at[:, :64].set(p["lin1_b"])
    pp["lin2_w"] = jnp.zeros((128, 128), jnp.float32).at[:64, :10].set(p["lin2_w"])
    pp["lin2_b"] = jnp.zeros((1, 128), jnp.float32).at[:, :10].set(p["lin2_b"])
    return pp


# ----------------------------------------------------------------------------
# Main
# ----------------------------------------------------------------------------
if __name__ == "__main__":
    key = jax.random.PRNGKey(0)
    k_x, k_p = jax.random.split(key)

    num_nodes = 16
    # data.x: [N, 128] node features (conv1 expects 128-dim input features)
    x = jax.random.normal(k_x, (num_nodes, 128), jnp.float32)

    # data.edge_index: symmetric ring graph, shape [2, 2*N]
    idx = jnp.arange(num_nodes, dtype=jnp.int32)
    nxt = (idx + 1) % num_nodes
    src = jnp.concatenate([idx, nxt])
    dst = jnp.concatenate([nxt, idx])
    edge_index = jnp.stack([src, dst], axis=0)  # [2, 32]

    # Graph structure and padded/flattened params are computed ONCE, outside the
    # per-forward path (graph is static across calls).
    l_hat = build_l_hat(edge_index, num_nodes)
    params = pack_params(init_params(k_p))

    # TODO(synk): global_mean_pool assumes a single graph (data.batch == 0 everywhere);
    # multi-graph segment-mean pooling would need a segment reduction / batch grid axis.
    fwd = jax.jit(own_gcn_forward)
    out = fwd(params, x, l_hat)
    out = jax.block_until_ready(out)
    assert out.shape == (1, 10) and bool(jnp.all(jnp.isfinite(out)))
    print("KERNEL_OK")
</pallas_src>

<mosaic_0001>
module attributes {stable_mosaic.version = 11 : i64} {
  func.func @_fused_gcn_kernel(%arg0: memref<16x128xf32, #tpu.memory_space<vmem>>, %arg1: memref<16x16xf32, #tpu.memory_space<vmem>>, %arg2: memref<256x256xf32, #tpu.memory_space<vmem>>, %arg3: memref<1x256xf32, #tpu.memory_space<vmem>>, %arg4: memref<1x256xf32, #tpu.memory_space<vmem>>, %arg5: memref<1x256xf32, #tpu.memory_space<vmem>>, %arg6: memref<1x256xf32, #tpu.memory_space<vmem>>, %arg7: memref<512x256xf32, #tpu.memory_space<vmem>>, %arg8: memref<1x256xf32, #tpu.memory_space<vmem>>, %arg9: memref<1x256xf32, #tpu.memory_space<vmem>>, %arg10: memref<1x256xf32, #tpu.memory_space<vmem>>, %arg11: memref<1x256xf32, #tpu.memory_space<vmem>>, %arg12: memref<512x256xf32, #tpu.memory_space<vmem>>, %arg13: memref<1x256xf32, #tpu.memory_space<vmem>>, %arg14: memref<1x256xf32, #tpu.memory_space<vmem>>, %arg15: memref<1x256xf32, #tpu.memory_space<vmem>>, %arg16: memref<1x256xf32, #tpu.memory_space<vmem>>, %arg17: memref<1280x256xf32, #tpu.memory_space<vmem>>, %arg18: memref<1x256xf32, #tpu.memory_space<vmem>>, %arg19: memref<256x256xf32, #tpu.memory_space<vmem>>, %arg20: memref<1x256xf32, #tpu.memory_space<vmem>>, %arg21: memref<768x128xf32, #tpu.memory_space<vmem>>, %arg22: memref<1x128xf32, #tpu.memory_space<vmem>>, %arg23: memref<1x128xf32, #tpu.memory_space<vmem>>, %arg24: memref<1x128xf32, #tpu.memory_space<vmem>>, %arg25: memref<1x128xf32, #tpu.memory_space<vmem>>, %arg26: memref<128x128xf32, #tpu.memory_space<vmem>>, %arg27: memref<1x128xf32, #tpu.memory_space<vmem>>, %arg28: memref<128x128xf32, #tpu.memory_space<vmem>>, %arg29: memref<1x128xf32, #tpu.memory_space<vmem>>, %arg30: memref<1x128xf32, #tpu.memory_space<vmem>>) attributes {dimension_semantics = [], scalar_prefetch = 0 : i64, scratch_operands = 0 : i64, tpu.core_type = #tpu.core_type<tc>} {
    %c0 = arith.constant 0 : index
    %c0_0 = arith.constant 0 : index
    %0 = vector.load %arg1[%c0, %c0_0] : memref<16x16xf32, #tpu.memory_space<vmem>>, vector<16x16xf32>
    %c0_1 = arith.constant 0 : index
    %c0_2 = arith.constant 0 : index
    %1 = vector.load %arg0[%c0_1, %c0_2] : memref<16x128xf32, #tpu.memory_space<vmem>>, vector<16x128xf32>
    %cst = arith.constant dense<0.000000e+00> : vector<16x128xf32>
    %2 = tpu.matmul %0, %1, %cst {dimension_numbers = #tpu.dot_dimension_numbers<[1], [0], [0], [1], [0, 0, 1, 1], [], []>} : vector<16x16xf32>, vector<16x128xf32>, vector<16x128xf32> -> vector<16x128xf32>
    %3 = tpu.concatenate %1, %2 in 1 : vector<16x128xf32>, vector<16x128xf32> -> vector<16x256xf32>
    %c0_3 = arith.constant 0 : index
    %c0_4 = arith.constant 0 : index
    %4 = vector.load %arg2[%c0_3, %c0_4] : memref<256x256xf32, #tpu.memory_space<vmem>>, vector<256x256xf32>
    %cst_5 = arith.constant dense<0.000000e+00> : vector<16x256xf32>
    %5 = tpu.matmul %3, %4, %cst_5 {dimension_numbers = #tpu.dot_dimension_numbers<[1], [0], [0], [1], [0, 0, 1, 1], [], []>} : vector<16x256xf32>, vector<256x256xf32>, vector<16x256xf32> -> vector<16x256xf32>
    %c0_6 = arith.constant 0 : index
    %c0_7 = arith.constant 0 : index
    %6 = vector.load %arg3[%c0_6, %c0_7] : memref<1x256xf32, #tpu.memory_space<vmem>>, vector<1x256xf32>
    %7 = vector.broadcast %6 : vector<1x256xf32> to vector<16x256xf32>
    %8 = arith.addf %5, %7 : vector<16x256xf32>
    %cst_8 = arith.constant dense<0.000000e+00> : vector<256xf32>
    %9 = vector.multi_reduction <add>, %8, %cst_8 [0] : vector<16x256xf32> to vector<256xf32>
    %10 = vector.shape_cast %9 : vector<256xf32> to vector<1x256xf32>
    %cst_9 = arith.constant 6.250000e-02 : f32
    %11 = vector.broadcast %cst_9 : f32 to vector<1x256xf32>
    %12 = arith.mulf %10, %11 : vector<1x256xf32>
    %c0_10 = arith.constant 0 : index
    %c0_11 = arith.constant 0 : index
    %13 = vector.load %arg6[%c0_10, %c0_11] : memref<1x256xf32, #tpu.memory_space<vmem>>, vector<1x256xf32>
    %14 = arith.mulf %12, %13 : vector<1x256xf32>
    %15 = vector.broadcast %14 : vector<1x256xf32> to vector<16x256xf32>
    %16 = arith.subf %8, %15 : vector<16x256xf32>
    %17 = arith.mulf %16, %16 : vector<16x256xf32>
    %cst_12 = arith.constant dense<0.000000e+00> : vector<256xf32>
    %18 = vector.multi_reduction <add>, %17, %cst_12 [0] : vector<16x256xf32> to vector<256xf32>
    %19 = vector.shape_cast %18 : vector<256xf32> to vector<1x256xf32>
    %cst_13 = arith.constant 6.250000e-02 : f32
    %20 = vector.broadcast %cst_13 : f32 to vector<1x256xf32>
    %21 = arith.mulf %19, %20 : vector<1x256xf32>
    %c0_14 = arith.constant 0 : index
    %c0_15 = arith.constant 0 : index
    %22 = vector.load %arg4[%c0_14, %c0_15] : memref<1x256xf32, #tpu.memory_space<vmem>>, vector<1x256xf32>
    %23 = vector.broadcast %22 : vector<1x256xf32> to vector<16x256xf32>
    %24 = arith.mulf %23, %16 : vector<16x256xf32>
    %cst_16 = arith.constant 9.99999974E-6 : f32
    %25 = vector.broadcast %cst_16 : f32 to vector<1x256xf32>
    %26 = arith.addf %21, %25 : vector<1x256xf32>
    %27 = math.rsqrt %26 : vector<1x256xf32>
    %28 = vector.broadcast %27 : vector<1x256xf32> to vector<16x256xf32>
    %29 = arith.mulf %24, %28 : vector<16x256xf32>
    %c0_17 = arith.constant 0 : index
    %c0_18 = arith.constant 0 : index
    %30 = vector.load %arg5[%c0_17, %c0_18] : memref<1x256xf32, #tpu.memory_space<vmem>>, vector<1x256xf32>
    %31 = vector.broadcast %30 : vector<1x256xf32> to vector<16x256xf32>
    %32 = arith.addf %29, %31 : vector<16x256xf32>
    %cst_19 = arith.constant 0.000000e+00 : f32
    %33 = vector.broadcast %cst_19 : f32 to vector<16x256xf32>
    %34 = arith.cmpf ogt, %32, %33 : vector<16x256xf32>
    %cst_20 = arith.constant 2.000000e-01 : f32
    %35 = vector.broadcast %cst_20 : f32 to vector<16x256xf32>
    %36 = arith.mulf %35, %32 : vector<16x256xf32>
    %37 = arith.select %34, %32, %36 : vector<16x256xi1>, vector<16x256xf32>
    %cst_21 = arith.constant dense<0.000000e+00> : vector<16x256xf32>
    %38 = tpu.matmul %0, %37, %cst_21 {dimension_numbers = #tpu.dot_dimension_numbers<[1], [0], [0], [1], [0, 0, 1, 1], [], []>} : vector<16x16xf32>, vector<16x256xf32>, vector<16x256xf32> -> vector<16x256xf32>
    %39 = tpu.concatenate %37, %38 in 1 : vector<16x256xf32>, vector<16x256xf32> -> vector<16x512xf32>
    %c0_22 = arith.constant 0 : index
    %c0_23 = arith.constant 0 : index
    %40 = vector.load %arg7[%c0_22, %c0_23] : memref<512x256xf32, #tpu.memory_space<vmem>>, vector<512x256xf32>
    %cst_24 = arith.constant dense<0.000000e+00> : vector<16x256xf32>
    %41 = tpu.matmul %39, %40, %cst_24 {dimension_numbers = #tpu.dot_dimension_numbers<[1], [0], [0], [1], [0, 0, 1, 1], [], []>} : vector<16x512xf32>, vector<512x256xf32>, vector<16x256xf32> -> vector<16x256xf32>
    %c0_25 = arith.constant 0 : index
    %c0_26 = arith.constant 0 : index
    %42 = vector.load %arg8[%c0_25, %c0_26] : memref<1x256xf32, #tpu.memory_space<vmem>>, vector<1x256xf32>
    %43 = vector.broadcast %42 : vector<1x256xf32> to vector<16x256xf32>
    %44 = arith.addf %41, %43 : vector<16x256xf32>
    %cst_27 = arith.constant dense<0.000000e+00> : vector<256xf32>
    %45 = vector.multi_reduction <add>, %44, %cst_27 [0] : vector<16x256xf32> to vector<256xf32>
    %46 = vector.shape_cast %45 : vector<256xf32> to vector<1x256xf32>
    %cst_28 = arith.constant 6.250000e-02 : f32
    %47 = vector.broadcast %cst_28 : f32 to vector<1x256xf32>
    %48 = arith.mulf %46, %47 : vector<1x256xf32>
    %c0_29 = arith.constant 0 : index
    %c0_30 = arith.constant 0 : index
    %49 = vector.load %arg11[%c0_29, %c0_30] : memref<1x256xf32, #tpu.memory_space<vmem>>, vector<1x256xf32>
    %50 = arith.mulf %48, %49 : vector<1x256xf32>
    %51 = vector.broadcast %50 : vector<1x256xf32> to vector<16x256xf32>
    %52 = arith.subf %44, %51 : vector<16x256xf32>
    %53 = arith.mulf %52, %52 : vector<16x256xf32>
    %cst_31 = arith.constant dense<0.000000e+00> : vector<256xf32>
    %54 = vector.multi_reduction <add>, %53, %cst_31 [0] : vector<16x256xf32> to vector<256xf32>
    %55 = vector.shape_cast %54 : vector<256xf32> to vector<1x256xf32>
    %cst_32 = arith.constant 6.250000e-02 : f32
    %56 = vector.broadcast %cst_32 : f32 to vector<1x256xf32>
    %57 = arith.mulf %55, %56 : vector<1x256xf32>
    %c0_33 = arith.constant 0 : index
    %c0_34 = arith.constant 0 : index
    %58 = vector.load %arg9[%c0_33, %c0_34] : memref<1x256xf32, #tpu.memory_space<vmem>>, vector<1x256xf32>
    %59 = vector.broadcast %58 : vector<1x256xf32> to vector<16x256xf32>
    %60 = arith.mulf %59, %52 : vector<16x256xf32>
    %cst_35 = arith.constant 9.99999974E-6 : f32
    %61 = vector.broadcast %cst_35 : f32 to vector<1x256xf32>
    %62 = arith.addf %57, %61 : vector<1x256xf32>
    %63 = math.rsqrt %62 : vector<1x256xf32>
    %64 = vector.broadcast %63 : vector<1x256xf32> to vector<16x256xf32>
    %65 = arith.mulf %60, %64 : vector<16x256xf32>
    %c0_36 = arith.constant 0 : index
    %c0_37 = arith.constant 0 : index
    %66 = vector.load %arg10[%c0_36, %c0_37] : memref<1x256xf32, #tpu.memory_space<vmem>>, vector<1x256xf32>
    %67 = vector.broadcast %66 : vector<1x256xf32> to vector<16x256xf32>
    %68 = arith.addf %65, %67 : vector<16x256xf32>
    %cst_38 = arith.constant 0.000000e+00 : f32
    %69 = vector.broadcast %cst_38 : f32 to vector<16x256xf32>
    %70 = arith.cmpf ogt, %68, %69 : vector<16x256xf32>
    %cst_39 = arith.constant 2.000000e-01 : f32
    %71 = vector.broadcast %cst_39 : f32 to vector<16x256xf32>
    %72 = arith.mulf %71, %68 : vector<16x256xf32>
    %73 = arith.select %70, %68, %72 : vector<16x256xi1>, vector<16x256xf32>
    %cst_40 = arith.constant dense<0.000000e+00> : vector<16x256xf32>
    %74 = tpu.matmul %0, %73, %cst_40 {dimension_numbers = #tpu.dot_dimension_numbers<[1], [0], [0], [1], [0, 0, 1, 1], [], []>} : vector<16x16xf32>, vector<16x256xf32>, vector<16x256xf32> -> vector<16x256xf32>
    %75 = tpu.concatenate %73, %74 in 1 : vector<16x256xf32>, vector<16x256xf32> -> vector<16x512xf32>
    %c0_41 = arith.constant 0 : index
    %c0_42 = arith.constant 0 : index
    %76 = vector.load %arg12[%c0_41, %c0_42] : memref<512x256xf32, #tpu.memory_space<vmem>>, vector<512x256xf32>
    %cst_43 = arith.constant dense<0.000000e+00> : vector<16x256xf32>
    %77 = tpu.matmul %75, %76, %cst_43 {dimension_numbers = #tpu.dot_dimension_numbers<[1], [0], [0], [1], [0, 0, 1, 1], [], []>} : vector<16x512xf32>, vector<512x256xf32>, vector<16x256xf32> -> vector<16x256xf32>
    %c0_44 = arith.constant 0 : index
    %c0_45 = arith.constant 0 : index
    %78 = vector.load %arg13[%c0_44, %c0_45] : memref<1x256xf32, #tpu.memory_space<vmem>>, vector<1x256xf32>
    %79 = vector.broadcast %78 : vector<1x256xf32> to vector<16x256xf32>
    %80 = arith.addf %77, %79 : vector<16x256xf32>
    %cst_46 = arith.constant dense<0.000000e+00> : vector<256xf32>
    %81 = vector.multi_reduction <add>, %80, %cst_46 [0] : vector<16x256xf32> to vector<256xf32>
    %82 = vector.shape_cast %81 : vector<256xf32> to vector<1x256xf32>
    %cst_47 = arith.constant 6.250000e-02 : f32
    %83 = vector.broadcast %cst_47 : f32 to vector<1x256xf32>
    %84 = arith.mulf %82, %83 : vector<1x256xf32>
    %c0_48 = arith.constant 0 : index
    %c0_49 = arith.constant 0 : index
    %85 = vector.load %arg16[%c0_48, %c0_49] : memref<1x256xf32, #tpu.memory_space<vmem>>, vector<1x256xf32>
    %86 = arith.mulf %84, %85 : vector<1x256xf32>
    %87 = vector.broadcast %86 : vector<1x256xf32> to vector<16x256xf32>
    %88 = arith.subf %80, %87 : vector<16x256xf32>
    %89 = arith.mulf %88, %88 : vector<16x256xf32>
    %cst_50 = arith.constant dense<0.000000e+00> : vector<256xf32>
    %90 = vector.multi_reduction <add>, %89, %cst_50 [0] : vector<16x256xf32> to vector<256xf32>
    %91 = vector.shape_cast %90 : vector<256xf32> to vector<1x256xf32>
    %cst_51 = arith.constant 6.250000e-02 : f32
    %92 = vector.broadcast %cst_51 : f32 to vector<1x256xf32>
    %93 = arith.mulf %91, %92 : vector<1x256xf32>
    %c0_52 = arith.constant 0 : index
    %c0_53 = arith.constant 0 : index
    %94 = vector.load %arg14[%c0_52, %c0_53] : memref<1x256xf32, #tpu.memory_space<vmem>>, vector<1x256xf32>
    %95 = vector.broadcast %94 : vector<1x256xf32> to vector<16x256xf32>
    %96 = arith.mulf %95, %88 : vector<16x256xf32>
    %cst_54 = arith.constant 9.99999974E-6 : f32
    %97 = vector.broadcast %cst_54 : f32 to vector<1x256xf32>
    %98 = arith.addf %93, %97 : vector<1x256xf32>
    %99 = math.rsqrt %98 : vector<1x256xf32>
    %100 = vector.broadcast %99 : vector<1x256xf32> to vector<16x256xf32>
    %101 = arith.mulf %96, %100 : vector<16x256xf32>
    %c0_55 = arith.constant 0 : index
    %c0_56 = arith.constant 0 : index
    %102 = vector.load %arg15[%c0_55, %c0_56] : memref<1x256xf32, #tpu.memory_space<vmem>>, vector<1x256xf32>
    %103 = vector.broadcast %102 : vector<1x256xf32> to vector<16x256xf32>
    %104 = arith.addf %101, %103 : vector<16x256xf32>
    %cst_57 = arith.constant 0.000000e+00 : f32
    %105 = vector.broadcast %cst_57 : f32 to vector<16x256xf32>
    %106 = arith.cmpf ogt, %104, %105 : vector<16x256xf32>
    %cst_58 = arith.constant 2.000000e-01 : f32
    %107 = vector.broadcast %cst_58 : f32 to vector<16x256xf32>
    %108 = arith.mulf %107, %104 : vector<16x256xf32>
    %109 = arith.select %106, %104, %108 : vector<16x256xi1>, vector<16x256xf32>
    %cst_59 = arith.constant dense<0.000000e+00> : vector<16x256xf32>
    %110 = tpu.matmul %0, %109, %cst_59 {dimension_numbers = #tpu.dot_dimension_numbers<[1], [0], [0], [1], [0, 0, 1, 1], [], []>} : vector<16x16xf32>, vector<16x256xf32>, vector<16x256xf32> -> vector<16x256xf32>
    %cst_60 = arith.constant dense<0.000000e+00> : vector<16x256xf32>
    %111 = tpu.matmul %0, %110, %cst_60 {dimension_numbers = #tpu.dot_dimension_numbers<[1], [0], [0], [1], [0, 0, 1, 1], [], []>} : vector<16x16xf32>, vector<16x256xf32>, vector<16x256xf32> -> vector<16x256xf32>
    %cst_61 = arith.constant 2.000000e+00 : f32
    %112 = vector.broadcast %cst_61 : f32 to vector<16x256xf32>
    %113 = arith.mulf %112, %111 : vector<16x256xf32>
    %114 = arith.subf %113, %109 : vector<16x256xf32>
    %cst_62 = arith.constant dense<0.000000e+00> : vector<16x256xf32>
    %115 = tpu.matmul %0, %114, %cst_62 {dimension_numbers = #tpu.dot_dimension_numbers<[1], [0], [0], [1], [0, 0, 1, 1], [], []>} : vector<16x16xf32>, vector<16x256xf32>, vector<16x256xf32> -> vector<16x256xf32>
    %cst_63 = arith.constant 2.000000e+00 : f32
    %116 = vector.broadcast %cst_63 : f32 to vector<16x256xf32>
    %117 = arith.mulf %116, %115 : vector<16x256xf32>
    %118 = arith.subf %117, %110 : vector<16x256xf32>
    %cst_64 = arith.constant dense<0.000000e+00> : vector<16x256xf32>
    %119 = tpu.matmul %0, %118, %cst_64 {dimension_numbers = #tpu.dot_dimension_numbers<[1], [0], [0], [1], [0, 0, 1, 1], [], []>} : vector<16x16xf32>, vector<16x256xf32>, vector<16x256xf32> -> vector<16x256xf32>
    %cst_65 = arith.constant 2.000000e+00 : f32
    %120 = vector.broadcast %cst_65 : f32 to vector<16x256xf32>
    %121 = arith.mulf %120, %119 : vector<16x256xf32>
    %122 = arith.subf %121, %114 : vector<16x256xf32>
    %123 = tpu.concatenate %109, %110, %114, %118, %122 in 1 : vector<16x256xf32>, vector<16x256xf32>, vector<16x256xf32>, vector<16x256xf32>, vector<16x256xf32> -> vector<16x1280xf32>
    %c0_66 = arith.constant 0 : index
    %c0_67 = arith.constant 0 : index
    %124 = vector.load %arg17[%c0_66, %c0_67] : memref<1280x256xf32, #tpu.memory_space<vmem>>, vector<1280x256xf32>
    %cst_68 = arith.constant dense<0.000000e+00> : vector<16x256xf32>
    %125 = tpu.matmul %123, %124, %cst_68 {dimension_numbers = #tpu.dot_dimension_numbers<[1], [0], [0], [1], [0, 0, 1, 1], [], []>} : vector<16x1280xf32>, vector<1280x256xf32>, vector<16x256xf32> -> vector<16x256xf32>
    %c0_69 = arith.constant 0 : index
    %c0_70 = arith.constant 0 : index
    %126 = vector.load %arg18[%c0_69, %c0_70] : memref<1x256xf32, #tpu.memory_space<vmem>>, vector<1x256xf32>
    %127 = vector.broadcast %126 : vector<1x256xf32> to vector<16x256xf32>
    %128 = arith.addf %125, %127 : vector<16x256xf32>
    %cst_71 = arith.constant 0.000000e+00 : f32
    %129 = vector.broadcast %cst_71 : f32 to vector<16x256xf32>
    %130 = arith.maximumf %128, %129 : vector<16x256xf32>
    %c0_72 = arith.constant 0 : index
    %c0_73 = arith.constant 0 : index
    %131 = vector.load %arg19[%c0_72, %c0_73] : memref<256x256xf32, #tpu.memory_space<vmem>>, vector<256x256xf32>
    %cst_74 = arith.constant dense<0.000000e+00> : vector<16x256xf32>
    %132 = tpu.matmul %130, %131, %cst_74 {dimension_numbers = #tpu.dot_dimension_numbers<[1], [0], [0], [1], [0, 0, 1, 1], [], []>} : vector<16x256xf32>, vector<256x256xf32>, vector<16x256xf32> -> vector<16x256xf32>
    %c0_75 = arith.constant 0 : index
    %c0_76 = arith.constant 0 : index
    %133 = vector.load %arg20[%c0_75, %c0_76] : memref<1x256xf32, #tpu.memory_space<vmem>>, vector<1x256xf32>
    %134 = vector.broadcast %133 : vector<1x256xf32> to vector<16x256xf32>
    %135 = arith.addf %132, %134 : vector<16x256xf32>
    %cst_77 = arith.constant 0.000000e+00 : f32
    %136 = vector.broadcast %cst_77 : f32 to vector<16x256xf32>
    %137 = arith.maximumf %135, %136 : vector<16x256xf32>
    %cst_78 = arith.constant dense<0.000000e+00> : vector<16x256xf32>
    %138 = tpu.matmul %0, %137, %cst_78 {dimension_numbers = #tpu.dot_dimension_numbers<[1], [0], [0], [1], [0, 0, 1, 1], [], []>} : vector<16x16xf32>, vector<16x256xf32>, vector<16x256xf32> -> vector<16x256xf32>
    %cst_79 = arith.constant dense<0.000000e+00> : vector<16x256xf32>
    %139 = tpu.matmul %0, %138, %cst_79 {dimension_numbers = #tpu.dot_dimension_numbers<[1], [0], [0], [1], [0, 0, 1, 1], [], []>} : vector<16x16xf32>, vector<16x256xf32>, vector<16x256xf32> -> vector<16x256xf32>
    %cst_80 = arith.constant 2.000000e+00 : f32
    %140 = vector.broadcast %cst_80 : f32 to vector<16x256xf32>
    %141 = arith.mulf %140, %139 : vector<16x256xf32>
    %142 = arith.subf %141, %137 : vector<16x256xf32>
    %143 = tpu.concatenate %137, %138, %142 in 1 : vector<16x256xf32>, vector<16x256xf32>, vector<16x256xf32> -> vector<16x768xf32>
    %c0_81 = arith.constant 0 : index
    %c0_82 = arith.constant 0 : index
    %144 = vector.load %arg21[%c0_81, %c0_82] : memref<768x128xf32, #tpu.memory_space<vmem>>, vector<768x128xf32>
    %cst_83 = arith.constant dense<0.000000e+00> : vector<16x128xf32>
    %145 = tpu.matmul %143, %144, %cst_83 {dimension_numbers = #tpu.dot_dimension_numbers<[1], [0], [0], [1], [0, 0, 1, 1], [], []>} : vector<16x768xf32>, vector<768x128xf32>, vector<16x128xf32> -> vector<16x128xf32>
    %c0_84 = arith.constant 0 : index
    %c0_85 = arith.constant 0 : index
    %146 = vector.load %arg22[%c0_84, %c0_85] : memref<1x128xf32, #tpu.memory_space<vmem>>, vector<1x128xf32>
    %147 = vector.broadcast %146 : vector<1x128xf32> to vector<16x128xf32>
    %148 = arith.addf %145, %147 : vector<16x128xf32>
    %cst_86 = arith.constant dense<0.000000e+00> : vector<128xf32>
    %149 = vector.multi_reduction <add>, %148, %cst_86 [0] : vector<16x128xf32> to vector<128xf32>
    %150 = vector.shape_cast %149 : vector<128xf32> to vector<1x128xf32>
    %cst_87 = arith.constant 6.250000e-02 : f32
    %151 = vector.broadcast %cst_87 : f32 to vector<1x128xf32>
    %152 = arith.mulf %150, %151 : vector<1x128xf32>
    %c0_88 = arith.constant 0 : index
    %c0_89 = arith.constant 0 : index
    %153 = vector.load %arg25[%c0_88, %c0_89] : memref<1x128xf32, #tpu.memory_space<vmem>>, vector<1x128xf32>
    %154 = arith.mulf %152, %153 : vector<1x128xf32>
    %155 = vector.broadcast %154 : vector<1x128xf32> to vector<16x128xf32>
    %156 = arith.subf %148, %155 : vector<16x128xf32>
    %157 = arith.mulf %156, %156 : vector<16x128xf32>
    %cst_90 = arith.constant dense<0.000000e+00> : vector<128xf32>
    %158 = vector.multi_reduction <add>, %157, %cst_90 [0] : vector<16x128xf32> to vector<128xf32>
    %159 = vector.shape_cast %158 : vector<128xf32> to vector<1x128xf32>
    %cst_91 = arith.constant 6.250000e-02 : f32
    %160 = vector.broadcast %cst_91 : f32 to vector<1x128xf32>
    %161 = arith.mulf %159, %160 : vector<1x128xf32>
    %c0_92 = arith.constant 0 : index
    %c0_93 = arith.constant 0 : index
    %162 = vector.load %arg23[%c0_92, %c0_93] : memref<1x128xf32, #tpu.memory_space<vmem>>, vector<1x128xf32>
    %163 = vector.broadcast %162 : vector<1x128xf32> to vector<16x128xf32>
    %164 = arith.mulf %163, %156 : vector<16x128xf32>
    %cst_94 = arith.constant 9.99999974E-6 : f32
    %165 = vector.broadcast %cst_94 : f32 to vector<1x128xf32>
    %166 = arith.addf %161, %165 : vector<1x128xf32>
    %167 = math.rsqrt %166 : vector<1x128xf32>
    %168 = vector.broadcast %167 : vector<1x128xf32> to vector<16x128xf32>
    %169 = arith.mulf %164, %168 : vector<16x128xf32>
    %c0_95 = arith.constant 0 : index
    %c0_96 = arith.constant 0 : index
    %170 = vector.load %arg24[%c0_95, %c0_96] : memref<1x128xf32, #tpu.memory_space<vmem>>, vector<1x128xf32>
    %171 = vector.broadcast %170 : vector<1x128xf32> to vector<16x128xf32>
    %172 = arith.addf %169, %171 : vector<16x128xf32>
    %cst_97 = arith.constant 0.000000e+00 : f32
    %173 = vector.broadcast %cst_97 : f32 to vector<16x128xf32>
    %174 = arith.cmpf ogt, %172, %173 : vector<16x128xf32>
    %cst_98 = arith.constant 2.000000e-01 : f32
    %175 = vector.broadcast %cst_98 : f32 to vector<16x128xf32>
    %176 = arith.mulf %175, %172 : vector<16x128xf32>
    %177 = arith.select %174, %172, %176 : vector<16x128xi1>, vector<16x128xf32>
    %cst_99 = arith.constant dense<0.000000e+00> : vector<128xf32>
    %178 = vector.multi_reduction <add>, %177, %cst_99 [0] : vector<16x128xf32> to vector<128xf32>
    %179 = vector.shape_cast %178 : vector<128xf32> to vector<1x128xf32>
    %cst_100 = arith.constant 6.250000e-02 : f32
    %180 = vector.broadcast %cst_100 : f32 to vector<1x128xf32>
    %181 = arith.mulf %179, %180 : vector<1x128xf32>
    %c0_101 = arith.constant 0 : index
    %c0_102 = arith.constant 0 : index
    %182 = vector.load %arg26[%c0_101, %c0_102] : memref<128x128xf32, #tpu.memory_space<vmem>>, vector<128x128xf32>
    %cst_103 = arith.constant dense<0.000000e+00> : vector<1x128xf32>
    %183 = tpu.matmul %181, %182, %cst_103 {dimension_numbers = #tpu.dot_dimension_numbers<[1], [0], [0], [1], [0, 0, 1, 1], [], []>} : vector<1x128xf32>, vector<128x128xf32>, vector<1x128xf32> -> vector<1x128xf32>
    %c0_104 = arith.constant 0 : index
    %c0_105 = arith.constant 0 : index
    %184 = vector.load %arg27[%c0_104, %c0_105] : memref<1x128xf32, #tpu.memory_space<vmem>>, vector<1x128xf32>
    %185 = arith.addf %183, %184 : vector<1x128xf32>
    %186 = math.tanh %185 : vector<1x128xf32>
    %c0_106 = arith.constant 0 : index
    %c0_107 = arith.constant 0 : index
    %187 = vector.load %arg28[%c0_106, %c0_107] : memref<128x128xf32, #tpu.memory_space<vmem>>, vector<128x128xf32>
    %cst_108 = arith.constant dense<0.000000e+00> : vector<1x128xf32>
    %188 = tpu.matmul %186, %187, %cst_108 {dimension_numbers = #tpu.dot_dimension_numbers<[1], [0], [0], [1], [0, 0, 1, 1], [], []>} : vector<1x128xf32>, vector<128x128xf32>, vector<1x128xf32> -> vector<1x128xf32>
    %c0_109 = arith.constant 0 : index
    %c0_110 = arith.constant 0 : index
    %189 = vector.load %arg29[%c0_109, %c0_110] : memref<1x128xf32, #tpu.memory_space<vmem>>, vector<1x128xf32>
    %190 = arith.addf %188, %189 : vector<1x128xf32>
    %c0_111 = arith.constant 0 : index
    %c0_112 = arith.constant 0 : index
    %191 = vector.load %arg30[%c0_111, %c0_112] : memref<1x128xf32, #tpu.memory_space<vmem>>, vector<1x128xf32>
    tpu.vector_store %arg30[%c0_111, %c0_112], %190 {strides = array<i32>} : memref<1x128xf32, #tpu.memory_space<vmem>>, vector<1x128xf32>,
    return
  }
}

</mosaic_0001>

<bundles_post_ra>
// kernel: own_gcn_forward.1
= control target key start
LH: loop header
LB: loop body
LE: loop exit
PB: predicated region body
PF: predicated region fallthrough
CT: control target
= control target key end

     0   :  { %s4405_s6 = smov 1   ;;  %s4406_s10 = smov 2   ;;  %s5124_s0 = inlined_call_operand.smem [shape: u32[31], index: -1, kind: input, shape index: {}] }
   0x1   :  { %s4478_s5 = sld [smem:[%s5124_s0]]   ;;  %s4407_s14 = smov 3  }
   0x2   :  { %s4483_s9 = sld [smem:[%s5124_s0 + %s4405_s6]]   ;;  %s4408_s18 = smov 4  }
   0x3   :  { %s4488_s13 = sld [smem:[%s5124_s0 + %s4406_s10]]   ;;  %s4409_s22 = smov 5  }
   0x4   :  { %s4493_s17 = sld [smem:[%s5124_s0 + %s4407_s14]]   ;;  %s4410_s26 = smov 6  }
   0x5   :  { %s4498_s21 = sld [smem:[%s5124_s0 + %s4408_s18]]   ;;  %s4411_s30 = smov 7  }
   0x6   :  { %s4503_s25 = sld [smem:[%s5124_s0 + %s4409_s22]]   ;;  %s4412_s4 = smov 8  }
   0x7   :  { %s4508_s29 = sld [smem:[%s5124_s0 + %s4410_s26]]   ;;  %s4413_s10 = smov 9  }
   0x8   :  { %s4513_s3 = sld [smem:[%s5124_s0 + %s4411_s30]]   ;;  %s4414_s15 = smov 10  }
   0x9   :  { %5138 = sst [smem:[#allocation67_spill]] %s4488_s13  ;;  %s4415_s20 = smov 11  }
   0xa   :  { %s4518_s8 = sld [smem:[%s5124_s0 + %s4412_s4]]   ;;  %s4416_s26 = smov 12  }
   0xb   :  { %5139 = sst [smem:[#allocation68_spill]] %s4498_s21  ;;  %s4417_s1 = smov 13  }
   0xc   :  { %s4523_s14 = sld [smem:[%s5124_s0 + %s4413_s10]]   ;;  %s4418_s7 = smov 14  }
   0xd   :  { %5140 = sst [smem:[#allocation69_spill]] %s4508_s29  ;;  %s4420_s22 = smov 16  }
   0xe   :  { %s4528_s19 = sld [smem:[%s5124_s0 + %s4414_s15]]   ;;  %s4419_s15 = smov 15  }
   0xf   :  { %s4533_s24 = sld [smem:[%s5124_s0 + %s4415_s20]]   ;;  %s4421_s28 = smov 17  }
  0x10   :  { %5141 = sst [smem:[#allocation70_spill]] %s4518_s8 }
  0x11   :  { %s4538_s30 = sld [smem:[%s5124_s0 + %s4416_s26]]  }
  0x12   :  { %s4543_s6 = sld [smem:[%s5124_s0 + %s4417_s1]]  }
  0x13   :  { %s4548_s12 = sld [smem:[%s5124_s0 + %s4418_s7]]   ;;  %s4422_s7 = smov 18  }
  0x14   :  { %5142 = sst [smem:[#allocation71_spill]] %s4528_s19 }
  0x15   :  { %s4553_s20 = sld [smem:[%s5124_s0 + %s4419_s15]]   ;;  %s4423_s15 = smov 19  }
  0x16   :  { %s4558_s27 = sld [smem:[%s5124_s0 + %s4420_s22]]   ;;  %s4424_s22 = smov 20  }
  0x17   :  { %5143 = sst [smem:[#allocation72_spill]] %s4538_s30 }
  0x18   :  { %s4563_s4 = sld [smem:[%s5124_s0 + %s4421_s28]]   ;;  %s4425_s28 = smov 21  }
  0x19   :  { %5144 = sst [smem:[#allocation73_spill]] %s4548_s12 }
  0x1a   :  { %s4568_s12 = sld [smem:[%s5124_s0 + %s4422_s7]]   ;;  %s4426_s7 = smov 22  }
  0x1b   :  { %s4573_s30 = sld [smem:[%s5124_s0 + %s4423_s15]]   ;;  %s4427_s15 = smov 23  }
  0x1c   :  { %5145 = sst [smem:[#allocation74_spill]] %s4558_s27 }
  0x1d   :  { %s4578_s27 = sld [smem:[%s5124_s0 + %s4424_s22]]   ;;  %s4428_s22 = smov 24  }
  0x1e   :  { %s4583_s19 = sld [smem:[%s5124_s0 + %s4425_s28]]   ;;  %s4429_s28 = smov 25  }
  0x1f   :  { %s4593_s8 = sld [smem:[%s5124_s0 + %s4427_s15]]   ;;  %s4431_s15 = smov 27  }
  0x20   :  { %5146 = sst [smem:[#allocation75_spill]] %s4568_s12 }
  0x21   :  { %s4588_s12 = sld [smem:[%s5124_s0 + %s4426_s7]]   ;;  %s4430_s7 = smov 26  }
  0x22   :  { %s4603_s29 = sld [smem:[%s5124_s0 + %s4429_s28]]   ;;  %s4433_s28 = smov 29  }
  0x23   :  { %5147 = sst [smem:[#allocation76_spill]] %s4578_s27 }
  0x24   :  { %s4598_s27 = sld [smem:[%s5124_s0 + %s4428_s22]]   ;;  %s4432_s22 = smov 28  }
  0x25   :  { %s4613_s21 = sld [smem:[%s5124_s0 + %s4431_s15]]  }
  0x26   :  { %s4623_s13 = sld [smem:[%s5124_s0 + %s4433_s28]]  }
  0x27   :  { %5148 = sst [smem:[#allocation77_spill]] %s4588_s12 }
  0x28   :  { %s4608_s12 = sld [smem:[%s5124_s0 + %s4430_s7]]   ;;  %s4434_s7 = smov 30  }
  0x2a   :  { %5149 = sst [smem:[#allocation78_spill]] %s4598_s27 }
  0x2b   :  { %s4618_s27 = sld [smem:[%s5124_s0 + %s4432_s22]]  }
  0x2e   :  { %5150 = sst [smem:[#allocation79_spill]] %s4608_s12 }
  0x2f   :  { %s4628_s12 = sld [smem:[%s5124_s0 + %s4434_s7]]  }
  0x30   :  { %66 = vsyncpa [#allocation3], 0 }
  0x31   :  { %67 = vsyncpa [#allocation6], 0 }
  0x32   :  { %68 = vsyncpa [#allocation9], 0 }
  0x33   :  { %69 = vsyncpa [#allocation12], 0 }
  0x34   :  { %70 = vsyncpa [#allocation15], 0 }
  0x35   :  { %71 = vsyncpa [#allocation18], 0 }
  0x36   :  { %72 = vsyncpa [#allocation21], 0 }
  0x37   :  { %73 = vsyncpa [#allocation24], 0 }
  0x38   :  { %74 = vsyncpa [#allocation27], 0 }
  0x39   :  { %75 = vsyncpa [#allocation30], 0 }
  0x3a   :  { %76 = vsyncpa [#allocation33], 0 }
  0x3b   :  { %77 = vsyncpa [#allocation36], 0 }
  0x3c   :  { %78 = vsyncpa [#allocation39], 0 }
  0x3d   :  { %79 = vsyncpa [#allocation42], 0 }
  0x3e   :  { %80 = vsyncpa [#allocation45], 0 }
  0x3f   :  { %81 = vsyncpa [#allocation48], 0 }
  0x40   :  { %82 = vsyncpa [#allocation4], 0  ;;  %s100_s0 = sshll.u32 %s4483_s9, 4  ;;  %s4435_s15 = smov [#allocation5]   ;;  %s101_s0 = int_to_ptr.hbm [resolvable:$true] %s100_s0 }
  0x41   :  { %s102_s16 = sshll.u32 %s4435_s15, 4  ;;  %s127_s18 = sshll.u32 %s4493_s17, 4  ;;  %s103_s16 = int_to_ptr.vmem [resolvable:$true] %s102_s16  ;;  %s128_s18 = int_to_ptr.hbm [resolvable:$true] %s127_s18 }
  0x42   :  { %s3627_s22 = sshra.s32 %s101_s0, 4  ;;  %s3631_s26 = scalar_lea.hbm %s4483_s9, 16  ;;  %s3628_s22 = int_to_ptr.hbm [resolvable:$true] %s3627_s22 }
  0x43   :  { %s3629_s23 = scalar_lea.hbm %s3628_s22, 16  ;;  %p3632_p1 = scmp.lt.s32.totalorder %s3628_s22, %s4483_s9 }
  0x44   :  { %p3630_p0 = scmp.ne.s32.totalorder %s3628_s22, %s3629_s23  ;;  %p3633_p2 = scmp.lt.s32.totalorder %s3631_s26, %s3629_s23 }
  0x46   :  { %p3634_p3 = por %p3633_p2, %p3632_p1 }
  0x48   :  { %p3635_p4 = pnand %p3634_p3, %p3630_p0 }
  0x4a   :  { %3638 = shalt.err (!%p3635_p4)
}
  0x4b   :  { %s4436_s28 = smov 128   ;;  %s4437_s1 = smov 8  }
  0x4c   :  { %108 = dma.hbm_to_vmem [thread:$0]  %s101_s0, 256, %s103_s16, [#allocation6], %s4436_s28, %s4436_s28, %s4437_s1  }
  0x4d   :  { %s4438_s2 = smov [#allocation8]   ;;  %s149_s10 = sshll.u32 %s4503_s25, 4  ;;  %s150_s10 = int_to_ptr.hbm [resolvable:$true] %s149_s10 }
  0x4e   :  { %s129_s7 = sshll.u32 %s4438_s2, 4  ;;  %s3651_s9 = sshra.s32 %s128_s18, 4  ;;  %s130_s7 = int_to_ptr.vmem [resolvable:$true] %s129_s7  ;;  %s3652_s9 = int_to_ptr.hbm [resolvable:$true] %s3651_s9 }
  0x4f   :  { %s3653_s11 = scalar_lea.hbm %s3652_s9, 2  ;;  %s3655_s15 = scalar_lea.hbm %s4493_s17, 2 }
  0x50   :  { %p3654_p5 = scmp.ne.s32.totalorder %s3652_s9, %s3653_s11  ;;  %p3656_p6 = scmp.lt.s32.totalorder %s3652_s9, %s4493_s17 }
  0x51   :  { %p3657_p7 = scmp.lt.s32.totalorder %s3655_s15, %s3653_s11 }
  0x53   :  { %p3658_p8 = por %p3657_p7, %p3656_p6 }
  0x55   :  { %p3659_p9 = pnand %p3658_p8, %p3654_p5 }
  0x57   :  { %3662 = shalt.err (!%p3659_p9)
}
  0x58   :  { %132 = dma.hbm_to_vmem [thread:$0]  %s128_s18, 32, %s130_s7, [#allocation9]  }
  0x59   :  { %s4439_s0 = smov [#allocation11]   ;;  %s170_s22 = sshll.u32 %s4513_s3, 4  ;;  %s171_s22 = int_to_ptr.hbm [resolvable:$true] %s170_s22 }
  0x5a   :  { %s151_s16 = sshll.u32 %s4439_s0, 4  ;;  %s3675_s23 = sshra.s32 %s150_s10, 4  ;;  %s152_s16 = int_to_ptr.vmem [resolvable:$true] %s151_s16  ;;  %s3676_s23 = int_to_ptr.hbm [resolvable:$true] %s3675_s23 }
  0x5b   :  { %s3677_s26 = scalar_lea.hbm %s3676_s23, 2  ;;  %s3679_s2 = scalar_lea.hbm %s4503_s25, 2 }
  0x5c   :  { %p3678_p10 = scmp.ne.s32.totalorder %s3676_s23, %s3677_s26  ;;  %p3680_p11 = scmp.lt.s32.totalorder %s3676_s23, %s4503_s25 }
  0x5d   :  { %p3681_p12 = scmp.lt.s32.totalorder %s3679_s2, %s3677_s26 }
  0x5f   :  { %p3682_p13 = por %p3681_p12, %p3680_p11 }
  0x61   :  { %p3683_p0 = pnand %p3682_p13, %p3678_p10 }
  0x63   :  { %3686 = shalt.err (!%p3683_p0)
}
  0x64   :  { %154 = dma.hbm_to_vmem [thread:$0]  %s150_s10, 32, %s152_s16, [#allocation12]  }
  0x65   :  { %s4440_s17 = smov [#allocation14]   ;;  %s195_s7 = sshll.u32 %s4523_s14, 4  ;;  %s4644_s7 = int_to_ptr.hbm [resolvable:$true] %s195_s7 }
  0x66   :  { %s172_s18 = sshll.u32 %s4440_s17, 4  ;;  %s3699_s9 = sshra.s32 %s171_s22, 4  ;;  %s173_s18 = int_to_ptr.vmem [resolvable:$true] %s172_s18  ;;  %s3700_s9 = int_to_ptr.hbm [resolvable:$true] %s3699_s9 }
  0x67   :  { %s3701_s11 = scalar_lea.hbm %s3700_s9, 1024  ;;  %s3703_s25 = scalar_lea.hbm %s4513_s3, 1024 }
  0x68   :  { %p3702_p1 = scmp.ne.s32.totalorder %s3700_s9, %s3701_s11  ;;  %p3704_p2 = scmp.lt.s32.totalorder %s3700_s9, %s4513_s3 }
  0x69   :  { %p3705_p3 = scmp.lt.s32.totalorder %s3703_s25, %s3701_s11 }
  0x6b   :  { %p3706_p4 = por %p3705_p3, %p3704_p2 }
  0x6d   :  { %p3707_p5 = pnand %p3706_p4, %p3702_p1 }
  0x6f   :  { %3710 = shalt.err (!%p3707_p5)
}
  0x70   :  { %s4441_s10 = smov 256   ;;  %s4442_s15 = smov 16  }
  0x71   :  { %178 = dma.hbm_to_vmem [thread:$0]  %s171_s22, 16384, %s173_s18, [#allocation15], %s4441_s10, %s4441_s10, %s4442_s15  }
  0x72   :  { %s217_s0 = sshll.u32 %s4533_s24, 4  ;;  %s4443_s16 = smov [#allocation17]   ;;  %s218_s0 = int_to_ptr.hbm [resolvable:$true] %s217_s0 }
  0x73   :  { %s197_s23 = sshll.u32 %s4443_s16, 4  ;;  %s3723_s3 = sshra.s32 %s4644_s7, 4  ;;  %s198_s23 = int_to_ptr.vmem [resolvable:$true] %s197_s23  ;;  %s3724_s3 = int_to_ptr.hbm [resolvable:$true] %s3723_s3 }
  0x74   :  { %s3725_s26 = scalar_lea.hbm %s3724_s3, 2  ;;  %s3727_s2 = scalar_lea.hbm %s4523_s14, 2 }
  0x75   :  { %p3726_p6 = scmp.ne.s32.totalorder %s3724_s3, %s3725_s26  ;;  %p3728_p7 = scmp.lt.s32.totalorder %s3724_s3, %s4523_s14 }
  0x76   :  { %p3729_p8 = scmp.lt.s32.totalorder %s3727_s2, %s3725_s26 }
  0x78   :  { %p3730_p9 = por %p3729_p8, %p3728_p7 }
  0x7a   :  { %p3731_p10 = pnand %p3730_p9, %p3726_p6 }
  0x7c   :  { %3734 = shalt.err (!%p3731_p10)
}
  0x7d   :  { %200 = dma.hbm_to_vmem [thread:$0]  %s4644_s7, 32, %s198_s23, [#allocation18]  }
  0x7e   :  { %s4444_s22 = smov [#allocation20]   ;;  %s241_s18 = sshll.u32 %s4543_s6, 4  ;;  %s242_s18 = int_to_ptr.hbm [resolvable:$true] %s241_s18 }
  0x7f   :  { %s219_s17 = sshll.u32 %s4444_s22, 4  ;;  %s3747_s9 = sshra.s32 %s218_s0, 4  ;;  %s220_s17 = int_to_ptr.vmem [resolvable:$true] %s219_s17  ;;  %s3748_s9 = int_to_ptr.hbm [resolvable:$true] %s3747_s9 }
  0x80   :  { %s3749_s11 = scalar_lea.hbm %s3748_s9, 2  ;;  %s3751_s25 = scalar_lea.hbm %s4533_s24, 2 }
  0x81   :  { %p3750_p11 = scmp.ne.s32.totalorder %s3748_s9, %s3749_s11  ;;  %p3752_p12 = scmp.lt.s32.totalorder %s3748_s9, %s4533_s24 }
  0x82   :  { %p3753_p13 = scmp.lt.s32.totalorder %s3751_s25, %s3749_s11 }
  0x84   :  { %p3754_p0 = por %p3753_p13, %p3752_p12 }
  0x86   :  { %p3755_p1 = pnand %p3754_p0, %p3750_p11 }
  0x88   :  { %3758 = shalt.err (!%p3755_p1)
}
  0x89   :  { %222 = dma.hbm_to_vmem [thread:$0]  %s218_s0, 32, %s220_s17, [#allocation21]  }
  0x8a   :  { %s263_s14 = sshll.u32 %s4553_s20, 4  ;;  %s4445_s7 = smov [#allocation23]   ;;  %s264_s14 = int_to_ptr.hbm [resolvable:$true] %s263_s14 }
  0x8b   :  { %s243_s16 = sshll.u32 %s4445_s7, 4  ;;  %s3771_s23 = sshra.s32 %s242_s18, 4  ;;  %s244_s16 = int_to_ptr.vmem [resolvable:$true] %s243_s16  ;;  %s3772_s23 = int_to_ptr.hbm [resolvable:$true] %s3771_s23 }
  0x8c   :  { %s3773_s3 = scalar_lea.hbm %s3772_s23, 2  ;;  %s3775_s26 = scalar_lea.hbm %s4543_s6, 2 }
  0x8d   :  { %p3774_p2 = scmp.ne.s32.totalorder %s3772_s23, %s3773_s3  ;;  %p3776_p3 = scmp.lt.s32.totalorder %s3772_s23, %s4543_s6 }
  0x8e   :  { %p3777_p4 = scmp.lt.s32.totalorder %s3775_s26, %s3773_s3 }
  0x90   :  { %p3778_p5 = por %p3777_p4, %p3776_p3 }
  0x92   :  { %p3779_p6 = pnand %p3778_p5, %p3774_p2 }
  0x94   :  { %3782 = shalt.err (!%p3779_p6)
}
  0x95   :  { %246 = dma.hbm_to_vmem [thread:$0]  %s242_s18, 32, %s244_s16, [#allocation24]  }
  0x96   :  { %s4446_s24 = smov [#allocation26]   ;;  %s284_s2 = sshll.u32 %s4563_s4, 4  ;;  %s4663_s2 = int_to_ptr.hbm [resolvable:$true] %s284_s2 }
  0x97   :  { %s265_s0 = sshll.u32 %s4446_s24, 4  ;;  %s3795_s22 = sshra.s32 %s264_s14, 4  ;;  %s266_s0 = int_to_ptr.vmem [resolvable:$true] %s265_s0  ;;  %s3796_s22 = int_to_ptr.hbm [resolvable:$true] %s3795_s22 }
  0x98   :  { %s3797_s17 = scalar_lea.hbm %s3796_s22, 2  ;;  %s3799_s9 = scalar_lea.hbm %s4553_s20, 2 }
  0x99   :  { %p3798_p7 = scmp.ne.s32.totalorder %s3796_s22, %s3797_s17  ;;  %p3800_p8 = scmp.lt.s32.totalorder %s3796_s22, %s4553_s20 }
  0x9a   :  { %p3801_p9 = scmp.lt.s32.totalorder %s3799_s9, %s3797_s17 }
  0x9c   :  { %p3802_p10 = por %p3801_p9, %p3800_p8 }
  0x9e   :  { %p3803_p11 = pnand %p3802_p10, %p3798_p7 }
  0xa0   :  { %3806 = shalt.err (!%p3803_p11)
}
  0xa1   :  { %268 = dma.hbm_to_vmem [thread:$0]  %s264_s14, 32, %s266_s0, [#allocation27]  }
  0xa2   :  { %s308_s6 = sshll.u32 %s4573_s30, 4  ;;  %s4447_s18 = smov [#allocation29]   ;;  %s4668_s6 = int_to_ptr.hbm [resolvable:$true] %s308_s6 }
  0xa3   :  { %s286_s11 = sshll.u32 %s4447_s18, 4  ;;  %s3819_s25 = sshra.s32 %s4663_s2, 4  ;;  %s287_s11 = int_to_ptr.vmem [resolvable:$true] %s286_s11  ;;  %s3820_s25 = int_to_ptr.hbm [resolvable:$true] %s3819_s25 }
  0xa4   :  { %s3821_s7 = scalar_lea.hbm %s3820_s25, 2560  ;;  %s3823_s20 = scalar_lea.hbm %s4563_s4, 2560 }
  0xa5   :  { %p3822_p12 = scmp.ne.s32.totalorder %s3820_s25, %s3821_s7  ;;  %p3824_p13 = scmp.lt.s32.totalorder %s3820_s25, %s4563_s4 }
  0xa6   :  { %p3825_p0 = scmp.lt.s32.totalorder %s3823_s20, %s3821_s7 }
  0xa8   :  { %p3826_p1 = por %p3825_p0, %p3824_p13 }
  0xaa   :  { %p3827_p2 = pnand %p3826_p1, %p3822_p12 }
  0xac   :  { %3830 = shalt.err (!%p3827_p2)
}
  0xad   :  { %292 = dma.hbm_to_vmem [thread:$0]  %s4663_s2, 40960, %s287_s11, [#allocation30], %s4441_s10, %s4441_s10, %s4442_s15  }
  0xae   :  { %s4448_s14 = smov [#allocation32]   ;;  %s332_s23 = sshll.u32 %s4583_s19, 4  ;;  %s4678_s23 = int_to_ptr.hbm [resolvable:$true] %s332_s23 }
  0xaf   :  { %s310_s16 = sshll.u32 %s4448_s14, 4  ;;  %s3843_s4 = sshra.s32 %s4668_s6, 4  ;;  %s311_s16 = int_to_ptr.vmem [resolvable:$true] %s310_s16  ;;  %s3844_s4 = int_to_ptr.hbm [resolvable:$true] %s3843_s4 }
  0xb0   :  { %s3845_s3 = scalar_lea.hbm %s3844_s4, 512  ;;  %s3847_s26 = scalar_lea.hbm %s4573_s30, 512 }
  0xb1   :  { %p3846_p3 = scmp.ne.s32.totalorder %s3844_s4, %s3845_s3  ;;  %p3848_p4 = scmp.lt.s32.totalorder %s3844_s4, %s4573_s30 }
  0xb2   :  { %p3849_p5 = scmp.lt.s32.totalorder %s3847_s26, %s3845_s3 }
  0xb4   :  { %p3850_p6 = por %p3849_p5, %p3848_p4 }
  0xb6   :  { %p3851_p7 = pnand %p3850_p6, %p3846_p3 }
  0xb8   :  { %3854 = shalt.err (!%p3851_p7)
}
  0xb9   :  { %316 = dma.hbm_to_vmem [thread:$0]  %s4668_s6, 8192, %s311_s16, [#allocation33], %s4441_s10, %s4441_s10, %s4442_s15  }
  0xba   :  { %s357_s24 = sshll.u32 %s4593_s8, 4  ;;  %s4449_s0 = smov [#allocation35]   ;;  %s358_s24 = int_to_ptr.hbm [resolvable:$true] %s357_s24 }
  0xbb   :  { %s334_s2 = sshll.u32 %s4449_s0, 4  ;;  %s3867_s22 = sshra.s32 %s4678_s23, 4  ;;  %s335_s2 = int_to_ptr.vmem [resolvable:$true] %s334_s2  ;;  %s3868_s22 = int_to_ptr.hbm [resolvable:$true] %s3867_s22 }
  0xbc   :  { %s3869_s30 = scalar_lea.hbm %s3868_s22, 768  ;;  %s3871_s17 = scalar_lea.hbm %s4583_s19, 768 }
  0xbd   :  { %p3870_p8 = scmp.ne.s32.totalorder %s3868_s22, %s3869_s30  ;;  %p3872_p9 = scmp.lt.s32.totalorder %s3868_s22, %s4583_s19 }
  0xbe   :  { %p3873_p10 = scmp.lt.s32.totalorder %s3871_s17, %s3869_s30 }
  0xc0   :  { %p3874_p11 = por %p3873_p10, %p3872_p9 }
  0xc2   :  { %p3875_p12 = pnand %p3874_p11, %p3870_p8 }
  0xc4   :  { %3878 = shalt.err (!%p3875_p12)
}
  0xc5   :  { %340 = dma.hbm_to_vmem [thread:$0]  %s4678_s23, 12288, %s335_s2, [#allocation36], %s4436_s28, %s4436_s28, %s4437_s1  }
  0xc6   :  { %s4450_s9 = smov [#allocation38]   ;;  %s379_s18 = sshll.u32 %s4603_s29, 4  ;;  %s380_s18 = int_to_ptr.hbm [resolvable:$true] %s379_s18 }
  0xc7   :  { %s359_s6 = sshll.u32 %s4450_s9, 4  ;;  %s3891_s11 = sshra.s32 %s358_s24, 4  ;;  %s360_s6 = int_to_ptr.vmem [resolvable:$true] %s359_s6  ;;  %s3892_s11 = int_to_ptr.hbm [resolvable:$true] %s3891_s11 }
  0xc8   :  { %s3893_s19 = scalar_lea.hbm %s3892_s11, 1  ;;  %s3895_s25 = scalar_lea.hbm %s4593_s8, 1 }
  0xc9   :  { %p3894_p13 = scmp.ne.s32.totalorder %s3892_s11, %s3893_s19  ;;  %p3896_p0 = scmp.lt.s32.totalorder %s3892_s11, %s4593_s8 }
  0xca   :  { %p3897_p1 = scmp.lt.s32.totalorder %s3895_s25, %s3893_s19 }
  0xcc   :  { %p3898_p2 = por %p3897_p1, %p3896_p0 }
  0xce   :  { %p3899_p3 = pnand %p3898_p2, %p3894_p13 }
  0xd0   :  { %3902 = shalt.err (!%p3899_p3)
}
  0xd1   :  { %362 = dma.hbm_to_vmem [thread:$0]  %s358_s24, 16, %s360_s6, [#allocation39]  }
  0xd2   :  { %s403_s7 = sshll.u32 %s4613_s21, 4  ;;  %s4451_s20 = smov [#allocation41]   ;;  %s404_s7 = int_to_ptr.hbm [resolvable:$true] %s403_s7 }
  0xd3   :  { %s381_s14 = sshll.u32 %s4451_s20, 4  ;;  %s3915_s16 = sshra.s32 %s380_s18, 4  ;;  %s382_s14 = int_to_ptr.vmem [resolvable:$true] %s381_s14  ;;  %s3916_s16 = int_to_ptr.hbm [resolvable:$true] %s3915_s16 }
  0xd4   :  { %s3917_s23 = scalar_lea.hbm %s3916_s16, 1  ;;  %s3919_s4 = scalar_lea.hbm %s4603_s29, 1 }
  0xd5   :  { %p3918_p4 = scmp.ne.s32.totalorder %s3916_s16, %s3917_s23  ;;  %p3920_p5 = scmp.lt.s32.totalorder %s3916_s16, %s4603_s29 }
  0xd6   :  { %p3921_p6 = scmp.lt.s32.totalorder %s3919_s4, %s3917_s23 }
  0xd8   :  { %p3922_p7 = por %p3921_p6, %p3920_p5 }
  0xda   :  { %p3923_p8 = pnand %p3922_p7, %p3918_p4 }
  0xdc   :  { %3926 = shalt.err (!%p3923_p8)
}
  0xdd   :  { %384 = dma.hbm_to_vmem [thread:$0]  %s380_s18, 16, %s382_s14, [#allocation42]  }
  0xde   :  { %s4452_s8 = smov [#allocation44]   ;;  %s87_s26 = sshll.u32 %s4478_s5, 4  ;;  %s4702_s26 = int_to_ptr.hbm [resolvable:$true] %s87_s26 }
  0xdf   :  { %s405_s3 = sshll.u32 %s4452_s8, 4  ;;  %s3939_s24 = sshra.s32 %s404_s7, 4  ;;  %s406_s3 = int_to_ptr.vmem [resolvable:$true] %s405_s3  ;;  %s3940_s24 = int_to_ptr.hbm [resolvable:$true] %s3939_s24 }
  0xe0   :  { %s3941_s0 = scalar_lea.hbm %s3940_s24, 1  ;;  %s3943_s2 = scalar_lea.hbm %s4613_s21, 1 }
  0xe1   :  { %p3942_p9 = scmp.ne.s32.totalorder %s3940_s24, %s3941_s0  ;;  %p3944_p10 = scmp.lt.s32.totalorder %s3940_s24, %s4613_s21 }
  0xe2   :  { %p3945_p11 = scmp.lt.s32.totalorder %s3943_s2, %s3941_s0 }
  0xe4   :  { %p3946_p12 = por %p3945_p11, %p3944_p10 }
  0xe6   :  { %p3947_p13 = pnand %p3946_p12, %p3942_p9 }
  0xe8   :  { %3950 = shalt.err (!%p3947_p13)
}
  0xe9   :  { %408 = dma.hbm_to_vmem [thread:$0]  %s404_s7, 16, %s406_s3, [#allocation45]  }
  0xea   :  { %s5151_s29 = sld [smem:[#allocation67_spill]]  ;;  %s4453_s30 = smov [#allocation2]  }
  0xeb   :  { %s89_s17 = sshll.u32 %s4453_s30, 4  ;;  %s3963_s9 = sshra.s32 %s4702_s26, 4  ;;  %s90_s17 = int_to_ptr.vmem [resolvable:$true] %s89_s17  ;;  %s3964_s9 = int_to_ptr.hbm [resolvable:$true] %s3963_s9 }
  0xec   :  { %s3965_s6 = scalar_lea.hbm %s3964_s9, 16  ;;  %s3967_s21 = scalar_lea.hbm %s4478_s5, 16 }
  0xed   :  { %p3966_p0 = scmp.ne.s32.totalorder %s3964_s9, %s3965_s6  ;;  %p3968_p1 = scmp.lt.s32.totalorder %s3964_s9, %s4478_s5 }
  0xee   :  { %p3969_p2 = scmp.lt.s32.totalorder %s3967_s21, %s3965_s6 }
  0xf0   :  { %s113_s22 = sshll.u32 %s5151_s29, 4  ;;  %p3970_p3 = por %p3969_p2, %p3968_p1  ;;  %s4707_s22 = int_to_ptr.hbm [resolvable:$true] %s113_s22 }
  0xf2   :  { %p3971_p4 = pnand %p3970_p3, %p3966_p0 }
  0xf4   :  { %3974 = shalt.err (!%p3971_p4)
}
  0xf5   :  { %s5152_s18 = sld [smem:[#allocation68_spill]]  ;;  %s4454_s11 = smov [#allocation7]  }
  0xf6   :  { %95 = dma.hbm_to_vmem [thread:$0]  %s4702_s26, 256, %s90_s17, [#allocation3], %s4436_s28, %s4436_s28, %s4437_s1  }
  0xf7   :  { %s115_s19 = sshll.u32 %s4454_s11, 4  ;;  %s3987_s7 = sshra.s32 %s4707_s22, 4  ;;  %s116_s19 = int_to_ptr.vmem [resolvable:$true] %s115_s19  ;;  %s3988_s7 = int_to_ptr.hbm [resolvable:$true] %s3987_s7 }
  0xf8   :  { %s3989_s5 = scalar_lea.hbm %s3988_s7, 512  ;;  %s3991_s20 = scalar_lea.hbm %s5151_s29, 512 }
  0xf9   :  { %p3990_p5 = scmp.ne.s32.totalorder %s3988_s7, %s3989_s5  ;;  %p3992_p6 = scmp.lt.s32.totalorder %s3988_s7, %s5151_s29 }
  0xfa   :  { %p3993_p7 = scmp.lt.s32.totalorder %s3991_s20, %s3989_s5 }
  0xfb   :  { %s138_s25 = sshll.u32 %s5152_s18, 4  ;;  %s139_s25 = int_to_ptr.hbm [resolvable:$true] %s138_s25 }
  0xfc   :  { %p3994_p8 = por %p3993_p7, %p3992_p6 }
  0xfe   :  { %p3995_p9 = pnand %p3994_p8, %p3990_p5 }
 0x100   :  { %3998 = shalt.err (!%p3995_p9)
}
 0x101   :  { %s5153_s14 = sld [smem:[#allocation69_spill]]  ;;  %s4455_s23 = smov [#allocation10]  }
 0x102   :  { %121 = dma.hbm_to_vmem [thread:$0]  %s4707_s22, 8192, %s116_s19, [#allocation6], %s4441_s10, %s4441_s10, %s4442_s15  }
 0x103   :  { %s140_s4 = sshll.u32 %s4455_s23, 4  ;;  %s4011_s8 = sshra.s32 %s139_s25, 4  ;;  %s141_s4 = int_to_ptr.vmem [resolvable:$true] %s140_s4  ;;  %s4012_s8 = int_to_ptr.hbm [resolvable:$true] %s4011_s8 }
 0x104   :  { %s4013_s3 = scalar_lea.hbm %s4012_s8, 2  ;;  %s4015_s26 = scalar_lea.hbm %s5152_s18, 2 }
 0x105   :  { %p4014_p10 = scmp.ne.s32.totalorder %s4012_s8, %s4013_s3  ;;  %p4016_p11 = scmp.lt.s32.totalorder %s4012_s8, %s5152_s18 }
 0x106   :  { %p4017_p12 = scmp.lt.s32.totalorder %s4015_s26, %s4013_s3 }
 0x107   :  { %s160_s16 = sshll.u32 %s5153_s14, 4  ;;  %s161_s16 = int_to_ptr.hbm [resolvable:$true] %s160_s16 }
 0x108   :  { %p4018_p13 = por %p4017_p12, %p4016_p11 }
 0x10a   :  { %p4019_p0 = pnand %p4018_p13, %p4014_p10 }
 0x10c   :  { %4022 = shalt.err (!%p4019_p0)
}
 0x10d   :  { %143 = dma.hbm_to_vmem [thread:$0]  %s139_s25, 32, %s141_s4, [#allocation9]  }
 0x10e   :  { %s5154_s24 = sld [smem:[#allocation70_spill]]  ;;  %s4456_s0 = smov [#allocation13]  }
 0x10f   :  { %s162_s2 = sshll.u32 %s4456_s0, 4  ;;  %s4035_s22 = sshra.s32 %s161_s16, 4  ;;  %s163_s2 = int_to_ptr.vmem [resolvable:$true] %s162_s2  ;;  %s4036_s22 = int_to_ptr.hbm [resolvable:$true] %s4035_s22 }
 0x110   :  { %s4037_s30 = scalar_lea.hbm %s4036_s22, 2  ;;  %s4039_s17 = scalar_lea.hbm %s5153_s14, 2 }
 0x111   :  { %p4038_p1 = scmp.ne.s32.totalorder %s4036_s22, %s4037_s30  ;;  %p4040_p2 = scmp.lt.s32.totalorder %s4036_s22, %s5153_s14 }
 0x112   :  { %p4041_p3 = scmp.lt.s32.totalorder %s4039_s17, %s4037_s30 }
 0x114   :  { %s184_s29 = sshll.u32 %s5154_s24, 4  ;;  %p4042_p4 = por %p4041_p3, %p4040_p2  ;;  %s185_s29 = int_to_ptr.hbm [resolvable:$true] %s184_s29 }
 0x116   :  { %p4043_p5 = pnand %p4042_p4, %p4038_p1 }
 0x118   :  { %4046 = shalt.err (!%p4043_p5)
}
 0x119   :  { %165 = dma.hbm_to_vmem [thread:$0]  %s161_s16, 32, %s163_s2, [#allocation12]  }
 0x11a   :  { %s5155_s9 = sld [smem:[#allocation71_spill]]  ;;  %s4457_s21 = smov [#allocation16]  }
 0x11b   :  { %s186_s18 = sshll.u32 %s4457_s21, 4  ;;  %s4059_s11 = sshra.s32 %s185_s29, 4  ;;  %s187_s18 = int_to_ptr.vmem [resolvable:$true] %s186_s18  ;;  %s4060_s11 = int_to_ptr.hbm [resolvable:$true] %s4059_s11 }
 0x11c   :  { %s4061_s19 = scalar_lea.hbm %s4060_s11, 2  ;;  %s4063_s25 = scalar_lea.hbm %s5154_s24, 2 }
 0x11d   :  { %p4062_p6 = scmp.ne.s32.totalorder %s4060_s11, %s4061_s19  ;;  %p4064_p7 = scmp.lt.s32.totalorder %s4060_s11, %s5154_s24 }
 0x11e   :  { %p4065_p8 = scmp.lt.s32.totalorder %s4063_s25, %s4061_s19 }
 0x120   :  { %s206_s6 = sshll.u32 %s5155_s9, 4  ;;  %p4066_p9 = por %p4065_p8, %p4064_p7  ;;  %s207_s6 = int_to_ptr.hbm [resolvable:$true] %s206_s6 }
 0x122   :  { %p4067_p10 = pnand %p4066_p9, %p4062_p6 }
 0x124   :  { %4070 = shalt.err (!%p4067_p10)
}
 0x125   :  { %189 = dma.hbm_to_vmem [thread:$0]  %s185_s29, 32, %s187_s18, [#allocation15]  }
 0x126   :  { %s5156_s7 = sld [smem:[#allocation72_spill]]  ;;  %s4458_s5 = smov [#allocation19]  }
 0x127   :  { %s208_s20 = sshll.u32 %s4458_s5, 4  ;;  %s4083_s16 = sshra.s32 %s207_s6, 4  ;;  %s209_s20 = int_to_ptr.vmem [resolvable:$true] %s208_s20  ;;  %s4084_s16 = int_to_ptr.hbm [resolvable:$true] %s4083_s16 }
 0x128   :  { %s4085_s23 = scalar_lea.hbm %s4084_s16, 2  ;;  %s4087_s4 = scalar_lea.hbm %s5155_s9, 2 }
 0x129   :  { %p4086_p11 = scmp.ne.s32.totalorder %s4084_s16, %s4085_s23  ;;  %p4088_p12 = scmp.lt.s32.totalorder %s4084_s16, %s5155_s9 }
 0x12a   :  { %p4089_p13 = scmp.lt.s32.totalorder %s4087_s4, %s4085_s23 }
 0x12c   :  { %s227_s14 = sshll.u32 %s5156_s7, 4  ;;  %p4090_p0 = por %p4089_p13, %p4088_p12  ;;  %s4734_s14 = int_to_ptr.hbm [resolvable:$true] %s227_s14 }
 0x12e   :  { %p4091_p1 = pnand %p4090_p0, %p4086_p11 }
 0x130   :  { %4094 = shalt.err (!%p4091_p1)
}
 0x131   :  { %211 = dma.hbm_to_vmem [thread:$0]  %s207_s6, 32, %s209_s20, [#allocation18]  }
 0x132   :  { %s5157_s8 = sld [smem:[#allocation73_spill]]  ;;  %s4459_s26 = smov [#allocation22]  }
 0x133   :  { %s229_s24 = sshll.u32 %s4459_s26, 4  ;;  %s4107_s0 = sshra.s32 %s4734_s14, 4  ;;  %s230_s24 = int_to_ptr.vmem [resolvable:$true] %s229_s24  ;;  %s4108_s0 = int_to_ptr.hbm [resolvable:$true] %s4107_s0 }
 0x134   :  { %s4109_s2 = scalar_lea.hbm %s4108_s0, 1024  ;;  %s4111_s29 = scalar_lea.hbm %s5156_s7, 1024 }
 0x135   :  { %p4110_p2 = scmp.ne.s32.totalorder %s4108_s0, %s4109_s2  ;;  %p4112_p3 = scmp.lt.s32.totalorder %s4108_s0, %s5156_s7 }
 0x136   :  { %p4113_p4 = scmp.lt.s32.totalorder %s4111_s29, %s4109_s2 }
 0x138   :  { %s252_s3 = sshll.u32 %s5157_s8, 4  ;;  %p4114_p5 = por %p4113_p4, %p4112_p3  ;;  %s253_s3 = int_to_ptr.hbm [resolvable:$true] %s252_s3 }
 0x13a   :  { %p4115_p6 = pnand %p4114_p5, %p4110_p2 }
 0x13c   :  { %4118 = shalt.err (!%p4115_p6)
}
 0x13d   :  { %s5158_s22 = sld [smem:[#allocation74_spill]]  ;;  %s4460_s30 = smov [#allocation25]  }
 0x13e   :  { %235 = dma.hbm_to_vmem [thread:$0]  %s4734_s14, 16384, %s230_s24, [#allocation21], %s4441_s10, %s4441_s10, %s4442_s15  }
 0x13f   :  { %s254_s17 = sshll.u32 %s4460_s30, 4  ;;  %s4131_s6 = sshra.s32 %s253_s3, 4  ;;  %s255_s17 = int_to_ptr.vmem [resolvable:$true] %s254_s17  ;;  %s4132_s6 = int_to_ptr.hbm [resolvable:$true] %s4131_s6 }
 0x140   :  { %s4133_s21 = scalar_lea.hbm %s4132_s6, 2  ;;  %s4135_s18 = scalar_lea.hbm %s5157_s8, 2 }
 0x141   :  { %p4134_p7 = scmp.ne.s32.totalorder %s4132_s6, %s4133_s21  ;;  %p4136_p8 = scmp.lt.s32.totalorder %s4132_s6, %s5157_s8 }
 0x142   :  { %p4137_p9 = scmp.lt.s32.totalorder %s4135_s18, %s4133_s21 }
 0x143   :  { %s274_s9 = sshll.u32 %s5158_s22, 4  ;;  %s275_s9 = int_to_ptr.hbm [resolvable:$true] %s274_s9 }
 0x144   :  { %p4138_p10 = por %p4137_p9, %p4136_p8 }
 0x146   :  { %p4139_p11 = pnand %p4138_p10, %p4134_p7 }
 0x148   :  { %4142 = shalt.err (!%p4139_p11)
}
 0x149   :  { %257 = dma.hbm_to_vmem [thread:$0]  %s253_s3, 32, %s255_s17, [#allocation24]  }
 0x14a   :  { %s5159_s11 = sld [smem:[#allocation75_spill]]  ;;  %s4461_s15 = smov [#allocation28]  }
 0x14b   :  { %s276_s19 = sshll.u32 %s4461_s15, 4  ;;  %s4155_s25 = sshra.s32 %s275_s9, 4  ;;  %s277_s19 = int_to_ptr.vmem [resolvable:$true] %s276_s19  ;;  %s4156_s25 = int_to_ptr.hbm [resolvable:$true] %s4155_s25 }
 0x14c   :  { %s4157_s7 = scalar_lea.hbm %s4156_s25, 2  ;;  %s4159_s5 = scalar_lea.hbm %s5158_s22, 2 }
 0x14d   :  { %p4158_p12 = scmp.ne.s32.totalorder %s4156_s25, %s4157_s7  ;;  %p4160_p13 = scmp.lt.s32.totalorder %s4156_s25, %s5158_s22 }
 0x14e   :  { %p4161_p0 = scmp.lt.s32.totalorder %s4159_s5, %s4157_s7 }
 0x150   :  { %s298_s10 = sshll.u32 %s5159_s11, 4  ;;  %p4162_p1 = por %p4161_p0, %p4160_p13  ;;  %s299_s10 = int_to_ptr.hbm [resolvable:$true] %s298_s10 }
 0x152   :  { %p4163_p2 = pnand %p4162_p1, %p4158_p12 }
 0x154   :  { %4166 = shalt.err (!%p4163_p2)
}
 0x155   :  { %279 = dma.hbm_to_vmem [thread:$0]  %s275_s9, 32, %s277_s19, [#allocation27]  }
 0x156   :  { %s5160_s20 = sld [smem:[#allocation76_spill]]  ;;  %s4462_s14 = smov [#allocation31]  }
 0x157   :  { %s300_s16 = sshll.u32 %s4462_s14, 4  ;;  %s4179_s4 = sshra.s32 %s299_s10, 4  ;;  %s301_s16 = int_to_ptr.vmem [resolvable:$true] %s300_s16  ;;  %s4180_s4 = int_to_ptr.hbm [resolvable:$true] %s4179_s4 }
 0x158   :  { %s4181_s8 = scalar_lea.hbm %s4180_s4, 2  ;;  %s4183_s3 = scalar_lea.hbm %s5159_s11, 2 }
 0x159   :  { %p4182_p3 = scmp.ne.s32.totalorder %s4180_s4, %s4181_s8  ;;  %p4184_p4 = scmp.lt.s32.totalorder %s4180_s4, %s5159_s11 }
 0x15a   :  { %p4185_p5 = scmp.lt.s32.totalorder %s4183_s3, %s4181_s8 }
 0x15c   :  { %s322_s23 = sshll.u32 %s5160_s20, 4  ;;  %p4186_p6 = por %p4185_p5, %p4184_p4  ;;  %s323_s23 = int_to_ptr.hbm [resolvable:$true] %s322_s23 }
 0x15e   :  { %p4187_p7 = pnand %p4186_p6, %p4182_p3 }
 0x160   :  { %4190 = shalt.err (!%p4187_p7)
}
 0x161   :  { %303 = dma.hbm_to_vmem [thread:$0]  %s299_s10, 32, %s301_s16, [#allocation30]  }
 0x162   :  { %s5161_s26 = sld [smem:[#allocation77_spill]]  ;;  %s4463_s0 = smov [#allocation34]  }
 0x163   :  { %s324_s2 = sshll.u32 %s4463_s0, 4  ;;  %s4203_s29 = sshra.s32 %s323_s23, 4  ;;  %s325_s2 = int_to_ptr.vmem [resolvable:$true] %s324_s2  ;;  %s4204_s29 = int_to_ptr.hbm [resolvable:$true] %s4203_s29 }
 0x164   :  { %s4205_s22 = scalar_lea.hbm %s4204_s29, 2  ;;  %s4207_s30 = scalar_lea.hbm %s5160_s20, 2 }
 0x165   :  { %p4206_p8 = scmp.ne.s32.totalorder %s4204_s29, %s4205_s22  ;;  %p4208_p9 = scmp.lt.s32.totalorder %s4204_s29, %s5160_s20 }
 0x166   :  { %p4209_p10 = scmp.lt.s32.totalorder %s4207_s30, %s4205_s22 }
 0x168   :  { %s346_s24 = sshll.u32 %s5161_s26, 4  ;;  %p4210_p11 = por %p4209_p10, %p4208_p9  ;;  %s347_s24 = int_to_ptr.hbm [resolvable:$true] %s346_s24 }
 0x16a   :  { %p4211_p12 = pnand %p4210_p11, %p4206_p8 }
 0x16c   :  { %4214 = shalt.err (!%p4211_p12)
}
 0x16d   :  { %327 = dma.hbm_to_vmem [thread:$0]  %s323_s23, 32, %s325_s2, [#allocation33]  }
 0x16e   :  { %s5162_s17 = sld [smem:[#allocation78_spill]]  ;;  %s4464_s9 = smov [#allocation37]  }
 0x16f   :  { %s348_s6 = sshll.u32 %s4464_s9, 4  ;;  %s4227_s18 = sshra.s32 %s347_s24, 4  ;;  %s349_s6 = int_to_ptr.vmem [resolvable:$true] %s348_s6  ;;  %s4228_s18 = int_to_ptr.hbm [resolvable:$true] %s4227_s18 }
 0x170   :  { %s4229_s11 = scalar_lea.hbm %s4228_s18, 1  ;;  %s4231_s10 = scalar_lea.hbm %s5161_s26, 1 }
 0x171   :  { %p4230_p13 = scmp.ne.s32.totalorder %s4228_s18, %s4229_s11  ;;  %p4232_p0 = scmp.lt.s32.totalorder %s4228_s18, %s5161_s26 }
 0x172   :  { %p4233_p1 = scmp.lt.s32.totalorder %s4231_s10, %s4229_s11 }
 0x174   :  { %s368_s21 = sshll.u32 %s5162_s17, 4  ;;  %p4234_p2 = por %p4233_p1, %p4232_p0  ;;  %s369_s21 = int_to_ptr.hbm [resolvable:$true] %s368_s21 }
 0x176   :  { %p4235_p3 = pnand %p4234_p2, %p4230_p13 }
 0x178   :  { %4238 = shalt.err (!%p4235_p3)
}
 0x179   :  { %351 = dma.hbm_to_vmem [thread:$0]  %s347_s24, 16, %s349_s6, [#allocation36]  }
 0x17a   :  { %s5163_s15 = sld [smem:[#allocation79_spill]]  ;;  %s4465_s25 = smov [#allocation40]  }
 0x17b   :  { %s370_s7 = sshll.u32 %s4465_s25, 4  ;;  %s4251_s5 = sshra.s32 %s369_s21, 4  ;;  %s371_s7 = int_to_ptr.vmem [resolvable:$true] %s370_s7  ;;  %s4252_s5 = int_to_ptr.hbm [resolvable:$true] %s4251_s5 }
 0x17c   :  { %s4253_s20 = scalar_lea.hbm %s4252_s5, 1  ;;  %s4255_s14 = scalar_lea.hbm %s5162_s17, 1 }
 0x17d   :  { %p4254_p4 = scmp.ne.s32.totalorder %s4252_s5, %s4253_s20  ;;  %p4256_p5 = scmp.lt.s32.totalorder %s4252_s5, %s5162_s17 }
 0x17e   :  { %p4257_p6 = scmp.lt.s32.totalorder %s4255_s14, %s4253_s20 }
 0x180   :  { %s389_s19 = sshll.u32 %s5163_s15, 4  ;;  %p4258_p7 = por %p4257_p6, %p4256_p5  ;;  %s4762_s19 = int_to_ptr.hbm [resolvable:$true] %s389_s19 }
 0x182   :  { %p4259_p8 = pnand %p4258_p7, %p4254_p4 }
 0x184   :  { %4262 = shalt.err (!%p4259_p8)
}
 0x185   :  { %373 = dma.hbm_to_vmem [thread:$0]  %s369_s21, 16, %s371_s7, [#allocation39]  }
 0x186   :  { %s4466_s16 = smov [#allocation43]   ;;  %s413_s4 = sshll.u32 %s4618_s27, 4  ;;  %s4767_s4 = int_to_ptr.hbm [resolvable:$true] %s413_s4 }
 0x187   :  { %s391_s23 = sshll.u32 %s4466_s16, 4  ;;  %s4275_s8 = sshra.s32 %s4762_s19, 4  ;;  %s392_s23 = int_to_ptr.vmem [resolvable:$true] %s391_s23  ;;  %s4276_s8 = int_to_ptr.hbm [resolvable:$true] %s4275_s8 }
 0x188   :  { %s4277_s3 = scalar_lea.hbm %s4276_s8, 128  ;;  %s4279_s26 = scalar_lea.hbm %s5163_s15, 128 }
 0x189   :  { %p4278_p9 = scmp.ne.s32.totalorder %s4276_s8, %s4277_s3  ;;  %p4280_p10 = scmp.lt.s32.totalorder %s4276_s8, %s5163_s15 }
 0x18a   :  { %p4281_p11 = scmp.lt.s32.totalorder %s4279_s26, %s4277_s3 }
 0x18c   :  { %p4282_p12 = por %p4281_p11, %p4280_p10 }
 0x18e   :  { %p4283_p13 = pnand %p4282_p12, %p4278_p9 }
 0x190   :  { %4286 = shalt.err (!%p4283_p13)
}
 0x191   :  { %397 = dma.hbm_to_vmem [thread:$0]  %s4762_s19, 2048, %s392_s23, [#allocation42], %s4436_s28, %s4436_s28, %s4437_s1  }
 0x192   :  { %s427_s24 = sshll.u32 %s4623_s13, 4  ;;  %s4467_s0 = smov [#allocation46]   ;;  %s428_s24 = int_to_ptr.hbm [resolvable:$true] %s427_s24 }
 0x193   :  { %s415_s2 = sshll.u32 %s4467_s0, 4  ;;  %s4299_s29 = sshra.s32 %s4767_s4, 4  ;;  %s416_s2 = int_to_ptr.vmem [resolvable:$true] %s415_s2  ;;  %s4300_s29 = int_to_ptr.hbm [resolvable:$true] %s4299_s29 }
 0x194   :  { %s4301_s22 = scalar_lea.hbm %s4300_s29, 128  ;;  %s4303_s30 = scalar_lea.hbm %s4618_s27, 128 }
 0x195   :  { %p4302_p0 = scmp.ne.s32.totalorder %s4300_s29, %s4301_s22  ;;  %p4304_p1 = scmp.lt.s32.totalorder %s4300_s29, %s4618_s27 }
 0x196   :  { %p4305_p2 = scmp.lt.s32.totalorder %s4303_s30, %s4301_s22 }
 0x198   :  { %p4306_p3 = por %p4305_p2, %p4304_p1 }
 0x19a   :  { %p4307_p4 = pnand %p4306_p3, %p4302_p0 }
 0x19c   :  { %4310 = shalt.err (!%p4307_p4)
}
 0x19d   :  { %421 = dma.hbm_to_vmem [thread:$0]  %s4767_s4, 2048, %s416_s2, [#allocation45], %s4436_s28, %s4436_s28, %s4437_s1  }
 0x19e   :  { %s4468_s17 = smov [#allocation47]   ;;  %s4323_s6 = sshra.s32 %s428_s24, 4  ;;  %s4324_s6 = int_to_ptr.hbm [resolvable:$true] %s4323_s6 }
 0x19f   :  { %s429_s9 = sshll.u32 %s4468_s17, 4  ;;  %s4325_s21 = scalar_lea.hbm %s4324_s6, 1  ;;  %s430_s9 = int_to_ptr.vmem [resolvable:$true] %s429_s9 }
 0x1a0   :  { %p4326_p5 = scmp.ne.s32.totalorder %s4324_s6, %s4325_s21  ;;  %s4327_s18 = scalar_lea.hbm %s4623_s13, 1 }
 0x1a1   :  { %p4328_p6 = scmp.lt.s32.totalorder %s4324_s6, %s4623_s13  ;;  %p4329_p7 = scmp.lt.s32.totalorder %s4327_s18, %s4325_s21 }
 0x1a3   :  { %p4330_p8 = por %p4329_p7, %p4328_p6 }
 0x1a5   :  { %p4331_p9 = pnand %p4330_p8, %p4326_p5 }
 0x1a7   :  { %4334 = shalt.err (!%p4331_p9)
}
 0x1a8   :  { %432 = dma.hbm_to_vmem [thread:$0]  %s428_s24, 16, %s430_s9, [#allocation48]  }
 0x1a9   :  { %4371 = dma.done.wait [#allocation3], 256  }
 0x1aa   :  { %4372 = vsyncadd [#allocation3], 4294967040 }
 0x1ab   :  { %4373 = dma.done.wait [#allocation6], 8448  }
 0x1ac   :  { %4374 = vsyncadd [#allocation6], 4294958848 }
 0x1ad   :  { %4375 = dma.done.wait [#allocation9], 64  }
 0x1ae   :  { %4376 = vsyncadd [#allocation9], 4294967232 }
 0x1af   :  { %4377 = dma.done.wait [#allocation12], 64  }
 0x1b0   :  { %4378 = vsyncadd [#allocation12], 4294967232 }
 0x1b1   :  { %4379 = dma.done.wait [#allocation15], 16416  }
 0x1b2   :  { %4380 = vsyncadd [#allocation15], 4294950880 }
 0x1b3   :  { %4381 = dma.done.wait [#allocation18], 64  }
 0x1b4   :  { %4382 = vsyncadd [#allocation18], 4294967232 }
 0x1b5   :  { %4383 = dma.done.wait [#allocation21], 16416  }
 0x1b6   :  { %4384 = vsyncadd [#allocation21], 4294950880 }
 0x1b7   :  { %4385 = dma.done.wait [#allocation24], 64  }
 0x1b8   :  { %4386 = vsyncadd [#allocation24], 4294967232 }
 0x1b9   :  { %4387 = dma.done.wait [#allocation27], 64  }
 0x1ba   :  { %4388 = vsyncadd [#allocation27], 4294967232 }
 0x1bb   :  { %4389 = dma.done.wait [#allocation30], 40992  }
 0x1bc   :  { %4390 = vsyncadd [#allocation30], 4294926304 }
 0x1bd   :  { %4391 = dma.done.wait [#allocation33], 8224  }
 0x1be   :  { %4392 = vsyncadd [#allocation33], 4294959072 }
 0x1bf   :  { %4393 = dma.done.wait [#allocation36], 12304  }
 0x1c0   :  { %4394 = vsyncadd [#allocation36], 4294954992 }
 0x1c1   :  { %4395 = dma.done.wait [#allocation39], 32  }
 0x1c2   :  { %4396 = vsyncadd [#allocation39], 4294967264 }
 0x1c3   :  { %4397 = dma.done.wait [#allocation42], 2064  }
 0x1c4   :  { %4398 = vsyncadd [#allocation42], 4294965232 }
 0x1c5   :  { %4399 = dma.done.wait [#allocation45], 2064  }
 0x1c6   :  { %4400 = vsyncadd [#allocation45], 4294965232 }
 0x1c7   :  { %4401 = dma.done.wait [#allocation48], 16  }
 0x1c8   :  { %4402 = vsyncadd [#allocation48], 4294967280  ;;  %v4786_v0 = vld [vmem:[#allocation2 + $0x8] sm:$0xff]  ;;  %v4788_v1 = vld [vmem:[#allocation2] sm:$0xff]  ;;  %vm557_vm0 = vcmask 130048   ;;  %s4469_s13 = smov [#allocation49]  }
 0x1c9   :  { %578 = vmatpush.msra.mxu0 %v4786_v0  ;;  %v4791_v2 = vld [vmem:[#allocation5] sm:$0xff]  ;;  %v618_v3 = vld [vmem:[#allocation7 + $0xf8] sm:$0xff]  ;;  %v616_v4 = vld [vmem:[#allocation7 + $0xe8] sm:$0xff]  ;;  %s3446_s27 = sshll.u32 %s4469_s13, 4  ;;  %s3448_s28 = sshll.u32 %s4628_s12, 4  ;;  %s3447_s27 = int_to_ptr.vmem [resolvable:$true] %s3446_s27  ;;  %s3449_s28 = int_to_ptr.hbm [resolvable:$true] %s3448_s28 }
 0x1ca   :  { %703 = vmatpush.msra.mxu3 %v618_v3  ;;  %v649_v5 = vld [vmem:[#allocation7 + $0x1f0] sm:$0xff]  ;;  %v614_v6 = vld [vmem:[#allocation7 + $0xd8] sm:$0xff]  ;;  %v647_v8 = vld [vmem:[#allocation7 + $0x1e0] sm:$0xff]  ;;  %s4359_s1 = sshra.s32 %s3449_s28, 4  ;;  %s4363_s10 = scalar_lea.hbm %s4628_s12, 1  ;;  %s4360_s1 = int_to_ptr.hbm [resolvable:$true] %s4359_s1 }
 0x1cb   :  { %579 = vmatpush.msra.mxu0 %v4788_v1  ;;  %680 = vmatpush.msra.mxu2 %v649_v5  ;;  %v650_v7 = vld [vmem:[#allocation7 + $0x1f8] sm:$0xff]  ;;  %v648_v9 = vld [vmem:[#allocation7 + $0x1e8] sm:$0xff]  ;;  %v617_v10 = vld [vmem:[#allocation7 + $0xf0] sm:$0xff]  ;;  %s4361_s11 = scalar_lea.hbm %s4360_s1, 1  ;;  %p4364_p11 = scmp.lt.s32.totalorder %s4360_s1, %s4628_s12 }
 0x1cc   :  { %3503 = vmatmul.msk.f32.vlgmr.msra.gmra.mxu0 %vm557_vm0, %v4791_v2  ;;  %704 = vmatpush.msra.mxu3 %v616_v4  ;;  %v612_v11 = vld [vmem:[#allocation7 + $0xc8] sm:$0xff]  ;;  %v645_v12 = vld [vmem:[#allocation7 + $0x1d0] sm:$0xff]  ;;  %v646_v13 = vld [vmem:[#allocation7 + $0x1d8] sm:$0xff]  ;;  %p4362_p10 = scmp.ne.s32.totalorder %s4360_s1, %s4361_s11  ;;  %p4365_p12 = scmp.lt.s32.totalorder %s4363_s10, %s4361_s11 }
 0x1cd   :  { %726 = vmatpush.msrb.mxu0 %v650_v7  ;;  %681 = vmatpush.msra.mxu2 %v647_v8  ;;  %v615_v14 = vld [vmem:[#allocation7 + $0xe0] sm:$0xff]  ;;  %v610_v16 = vld [vmem:[#allocation7 + $0xb8] sm:$0xff]  ;;  %v613_v17 = vld [vmem:[#allocation7 + $0xd0] sm:$0xff] }
 0x1ce   :  { %705 = vmatpush.msra.mxu3 %v614_v6  ;;  %657 = vmatpush.msra.mxu1 %v617_v10  ;;  %v643_v15 = vld [vmem:[#allocation7 + $0x1c0] sm:$0xff]  ;;  %v644_v18 = vld [vmem:[#allocation7 + $0x1c8] sm:$0xff]  ;;  %v641_v19 = vld [vmem:[#allocation7 + $0x1b0] sm:$0xff]  ;;  %p4366_p13 = por %p4365_p12, %p4364_p11 }
 0x1cf   :  { %727 = vmatpush.msrb.mxu0 %v648_v9  ;;  %682 = vmatpush.msra.mxu2 %v645_v12  ;;  %v4796_v20 = vld [vmem:[#allocation5 + $0x8] sm:$0xff]  ;;  %v608_v21 = vld [vmem:[#allocation7 + $0xa8] sm:$0xff]  ;;  %v611_v23 = vld [vmem:[#allocation7 + $0xc0] sm:$0xff] }
 0x1d0   :  { %706 = vmatpush.msra.mxu3 %v612_v11  ;;  %658 = vmatpush.msra.mxu1 %v615_v14  ;;  %v642_v22 = vld [vmem:[#allocation7 + $0x1b8] sm:$0xff]  ;;  %v639_v25 = vld [vmem:[#allocation7 + $0x1a0] sm:$0xff]  ;;  %v640_v26 = vld [vmem:[#allocation7 + $0x1a8] sm:$0xff]  ;;  %p4367_p0 = pnand %p4366_p13, %p4362_p10 }
 0x1d1   :  { %728 = vmatpush.msrb.mxu0 %v646_v13  ;;  %683 = vmatpush.msra.mxu2 %v643_v15  ;;  %v606_v24 = vld [vmem:[#allocation7 + $0x98] sm:$0xff]  ;;  %v609_v27 = vld [vmem:[#allocation7 + $0xb0] sm:$0xff]  ;;  %v604_v28 = vld [vmem:[#allocation7 + $0x88] sm:$0xff] }
 0x1d2   :  { %707 = vmatpush.msra.mxu3 %v610_v16  ;;  %659 = vmatpush.msra.mxu1 %v613_v17  ;;  %v637_v29 = vld [vmem:[#allocation7 + $0x190] sm:$0xff]  ;;  %v638_v30 = vld [vmem:[#allocation7 + $0x198] sm:$0xff]  ;;  %v607_v31 = vld [vmem:[#allocation7 + $0xa0] sm:$0xff] }
 0x1d3   :  { %729 = vmatpush.msrb.mxu0 %v644_v18  ;;  %684 = vmatpush.msra.mxu2 %v641_v19  ;;  %v602_v32 = vld [vmem:[#allocation7 + $0x78] sm:$0xff]  ;;  %v635_v33 = vld [vmem:[#allocation7 + $0x180] sm:$0xff]  ;;  %v636_v34 = vld [vmem:[#allocation7 + $0x188] sm:$0xff] }
 0x1d4   :  { %3504 = vmatmul.msk.f32.gmra.mxu0 %vm557_vm0, %v4796_v20  ;;  %708 = vmatpush.msra.mxu3 %v608_v21  ;;  %v605_v35 = vld [vmem:[#allocation7 + $0x90] sm:$0xff]  ;;  %v600_v36 = vld [vmem:[#allocation7 + $0x68] sm:$0xff]  ;;  %v634_v38 = vld [vmem:[#allocation7 + $0x178] sm:$0xff] }
 0x1d5   :  { %730 = vmatpush.msrb.mxu0 %v642_v22  ;;  %660 = vmatpush.msra.mxu1 %v611_v23  ;;  %v633_v37 = vld [vmem:[#allocation7 + $0x170] sm:$0xff]  ;;  %v603_v39 = vld [vmem:[#allocation7 + $0x80] sm:$0xff]  ;;  %v598_v40 = vld [vmem:[#allocation7 + $0x58] sm:$0xff] }
 0x1d6   :  { %709 = vmatpush.msra.mxu3 %v606_v24  ;;  %685 = vmatpush.msra.mxu2 %v639_v25  ;;  %v596_v41 = vld [vmem:[#allocation7 + $0x48] sm:$0xff]  ;;  %v631_v42 = vld [vmem:[#allocation7 + $0x160] sm:$0xff]  ;;  %v601_v44 = vld [vmem:[#allocation7 + $0x70] sm:$0xff] }
 0x1d7   :  { %731 = vmatpush.msrb.mxu0 %v640_v26  ;;  %661 = vmatpush.msra.mxu1 %v609_v27  ;;  %v632_v43 = vld [vmem:[#allocation7 + $0x168] sm:$0xff]  ;;  %v629_v45 = vld [vmem:[#allocation7 + $0x150] sm:$0xff]  ;;  %v630_v46 = vld [vmem:[#allocation7 + $0x158] sm:$0xff] }
 0x1d8   :  { %710 = vmatpush.msra.mxu3 %v604_v28  ;;  %686 = vmatpush.msra.mxu2 %v637_v29  ;;  %v599_v47 = vld [vmem:[#allocation7 + $0x60] sm:$0xff]  ;;  %v594_v48 = vld [vmem:[#allocation7 + $0x38] sm:$0xff]  ;;  %v628_v50 = vld [vmem:[#allocation7 + $0x148] sm:$0xff] }
 0x1d9   :  { %732 = vmatpush.msrb.mxu0 %v638_v30  ;;  %662 = vmatpush.msra.mxu1 %v607_v31  ;;  %v627_v49 = vld [vmem:[#allocation7 + $0x140] sm:$0xff]  ;;  %v597_v51 = vld [vmem:[#allocation7 + $0x50] sm:$0xff]  ;;  %v592_v52 = vld [vmem:[#allocation7 + $0x28] sm:$0xff] }
 0x1da   :  { %711 = vmatpush.msra.mxu3 %v602_v32  ;;  %687 = vmatpush.msra.mxu2 %v635_v33  ;;  %v625_v53 = vld [vmem:[#allocation7 + $0x130] sm:$0xff]  ;;  %v626_v54 = vld [vmem:[#allocation7 + $0x138] sm:$0xff]  ;;  %v595_v55 = vld [vmem:[#allocation7 + $0x40] sm:$0xff] }
 0x1db   :  { %733 = vmatpush.msrb.mxu0 %v636_v34  ;;  %663 = vmatpush.msra.mxu1 %v605_v35  ;;  %v590_v56 = vld [vmem:[#allocation7 + $0x18] sm:$0xff]  ;;  %v623_v57 = vld [vmem:[#allocation7 + $0x120] sm:$0xff]  ;;  %v624_v58 = vld [vmem:[#allocation7 + $0x128] sm:$0xff] }
 0x1dc   :  { %712 = vmatpush.msra.mxu3 %v600_v36  ;;  %688 = vmatpush.msra.mxu2 %v633_v37  ;;  %v593_v59 = vld [vmem:[#allocation7 + $0x30] sm:$0xff]  ;;  %v588_v60 = vld [vmem:[#allocation7 + $0x8] sm:$0xff]  ;;  %v622_v62 = vld [vmem:[#allocation7 + $0x118] sm:$0xff] }
 0x1dd   :  { %734 = vmatpush.msrb.mxu0 %v634_v38  ;;  %664 = vmatpush.msra.mxu1 %v603_v39  ;;  %v621_v61 = vld [vmem:[#allocation7 + $0x110] sm:$0xff]  ;;  %v591_v63 = vld [vmem:[#allocation7 + $0x20] sm:$0xff]  ;;  %v620_v4 = vld [vmem:[#allocation7 + $0x108] sm:$0xff] }
 0x1de   :  { %713 = vmatpush.msra.mxu3 %v598_v40  ;;  %689 = vmatpush.msra.mxu2 %v631_v42  ;;  %v619_v3 = vld [vmem:[#allocation7 + $0x100] sm:$0xff]  ;;  %v589_v5 = vld [vmem:[#allocation7 + $0x10] sm:$0xff]  ;;  %v965_v13 = vld [vmem:[#allocation14 + $0x1f0] sm:$0xff] }
 0x1df   :  { %735 = vmatpush.msrb.mxu0 %v632_v43  ;;  %665 = vmatpush.msra.mxu1 %v601_v44  ;;  %v587_v6 = vld [vmem:[#allocation7] sm:$0xff]  ;;  %v963_v16 = vld [vmem:[#allocation14 + $0x1e0] sm:$0xff]  ;;  %v961_v17 = vld [vmem:[#allocation14 + $0x1d0] sm:$0xff] }
 0x1e0   :  { %714 = vmatpush.msra.mxu3 %v596_v41  ;;  %690 = vmatpush.msra.mxu2 %v629_v45  ;;  %v651_v10 = vld [vmem:[#allocation8] sm:$0x3]  ;;  %v933_v19 = vld [vmem:[#allocation14 + $0xf0] sm:$0xff]  ;;  %v959_v21 = vld [vmem:[#allocation14 + $0x1c0] sm:$0xff] }
 0x1e1   :  { %736 = vmatpush.msrb.mxu0 %v630_v46  ;;  %666 = vmatpush.msra.mxu1 %v599_v47  ;;  %v654_v14 = vperm.slane %v651_v10, 1  ;;  %v653_v22 = vperm.slane %v651_v10, 0  ;;  %v931_v25 = vld [vmem:[#allocation14 + $0xe0] sm:$0xff]  ;;  %v957_v26 = vld [vmem:[#allocation14 + $0x1b0] sm:$0xff] }
 0x1e2   :  { %715 = vmatpush.msra.mxu3 %v594_v48  ;;  %691 = vmatpush.msra.mxu2 %v627_v49  ;;  %v929_v29 = vld [vmem:[#allocation14 + $0xd0] sm:$0xff]  ;;  %v955_v30 = vld [vmem:[#allocation14 + $0x1a0] sm:$0xff] }
 0x1e3   :  { %737 = vmatpush.msrb.mxu0 %v628_v50  ;;  %667 = vmatpush.msra.mxu1 %v597_v51  ;;  %v927_v34 = vld [vmem:[#allocation14 + $0xc0] sm:$0xff]  ;;  %v953_v35 = vld [vmem:[#allocation14 + $0x190] sm:$0xff]  ;;  %v765_v51 = vld [vmem:[#allocation13] sm:$0x3] }
 0x1e4   :  { %716 = vmatpush.msra.mxu3 %v592_v52  ;;  %692 = vmatpush.msra.mxu2 %v625_v53  ;;  %v925_v38 = vld [vmem:[#allocation14 + $0xb0] sm:$0xff]  ;;  %v951_v39 = vld [vmem:[#allocation14 + $0x180] sm:$0xff] }
 0x1e5   :  { %738 = vmatpush.msrb.mxu0 %v626_v54  ;;  %668 = vmatpush.msra.mxu1 %v595_v55  ;;  %v923_v43 = vld [vmem:[#allocation14 + $0xa0] sm:$0xff]  ;;  %v949_v44 = vld [vmem:[#allocation14 + $0x170] sm:$0xff] }
 0x1e6   :  { %717 = vmatpush.msra.mxu3 %v590_v56  ;;  %693 = vmatpush.msra.mxu2 %v623_v57  ;;  %v921_v47 = vld [vmem:[#allocation14 + $0x90] sm:$0xff]  ;;  %v947_v48 = vld [vmem:[#allocation14 + $0x160] sm:$0xff] }
 0x1e7   :  { %739 = vmatpush.msrb.mxu0 %v624_v58  ;;  %669 = vmatpush.msra.mxu1 %v593_v59  ;;  %v919_v52 = vld [vmem:[#allocation14 + $0x80] sm:$0xff]  ;;  %v945_v53 = vld [vmem:[#allocation14 + $0x150] sm:$0xff]  ;;  %v768_v59 = vperm.slane %v765_v51, 1 }
 0x1e8   :  { %718 = vmatpush.msra.mxu3 %v588_v60  ;;  %694 = vmatpush.msra.mxu2 %v621_v61  ;;  %v917_v56 = vld [vmem:[#allocation14 + $0x70] sm:$0xff]  ;;  %v943_v57 = vld [vmem:[#allocation14 + $0x140] sm:$0xff] }
 0x1e9   :  { %719 = vmatmul.f32.vlgmr.msra.gmra.mxu3 %v4788_v1  ;;  %740 = vmatpush.msrb.mxu0 %v622_v62  ;;  %v915_v61 = vld [vmem:[#allocation14 + $0x60] sm:$0xff]  ;;  %v941_v62 = vld [vmem:[#allocation14 + $0x130] sm:$0xff] }
 0x1ea   :  { %670 = vmatpush.msra.mxu1 %v591_v63  ;;  %695 = vmatpush.msra.mxu2 %v619_v3 }
 0x1eb   :  { %741 = vmatpush.msrb.mxu0 %v620_v4  ;;  %1037 = vmatpush.msrb.mxu3 %v933_v19  ;;  %v913_v4 = vld [vmem:[#allocation14 + $0x50] sm:$0xff] }
 0x1ec   :  { %671 = vmatpush.msra.mxu1 %v589_v5  ;;  %v939_v5 = vld [vmem:[#allocation14 + $0x120] sm:$0xff] }
 0x1ed   :  { %1060 = vmatpush.msra.mxu0 %v965_v13  ;;  %1038 = vmatpush.msrb.mxu3 %v931_v25  ;;  %v909_v13 = vld [vmem:[#allocation14 + $0x30] sm:$0xff]  ;;  %v962_v25 = vld [vmem:[#allocation14 + $0x1d8] sm:$0xff] }
 0x1ee   :  { %672 = vmatpush.msra.mxu1 %v587_v6 }
 0x1ef   :  { %673 = vmatmul.f32.vlgmr.msra.gmra.mxu1 %v4788_v1  ;;  %1061 = vmatpush.msra.mxu0 %v963_v16 }
 0x1f0   :  { %1039 = vmatpush.msrb.mxu3 %v929_v29  ;;  %v934_v29 = vld [vmem:[#allocation14 + $0xf8] sm:$0xff] }
 0x1f1   :  { %722 = vmatmul.f32.gmra.mxu3 %v4786_v0  ;;  %1062 = vmatpush.msra.mxu0 %v961_v17 }
 0x1f2   :  { %1040 = vmatpush.msrb.mxu3 %v927_v34  ;;  %v932_v34 = vld [vmem:[#allocation14 + $0xe8] sm:$0xff] }
 0x1f3   :  { %1063 = vmatpush.msra.mxu0 %v959_v21  ;;  %v964_v21 = vld [vmem:[#allocation14 + $0x1e8] sm:$0xff] }
 0x1f4   :  { %1041 = vmatpush.msrb.mxu3 %v925_v38 }
 0x1f5   :  { %1064 = vmatpush.msra.mxu0 %v957_v26 }
 0x1f6   :  { %1042 = vmatpush.msrb.mxu3 %v923_v43  ;;  %v928_v43 = vld [vmem:[#allocation14 + $0xc8] sm:$0xff] }
 0x1f7   :  { %676 = vmatmul.f32.gmra.mxu1 %v4786_v0  ;;  %1065 = vmatpush.msra.mxu0 %v955_v30  ;;  %v960_v30 = vld [vmem:[#allocation14 + $0x1c8] sm:$0xff] }
 0x1f8   :  { %1043 = vmatpush.msrb.mxu3 %v921_v47  ;;  %v926_v47 = vld [vmem:[#allocation14 + $0xb8] sm:$0xff] }
 0x1f9   :  { %1066 = vmatpush.msra.mxu0 %v953_v35  ;;  %v958_v35 = vld [vmem:[#allocation14 + $0x1b8] sm:$0xff] }
 0x1fa   :  { %1044 = vmatpush.msrb.mxu3 %v919_v52  ;;  %v950_v52 = vld [vmem:[#allocation14 + $0x178] sm:$0xff] }
 0x1fb   :  { %1067 = vmatpush.msra.mxu0 %v951_v39  ;;  %v930_v39 = vld [vmem:[#allocation14 + $0xd8] sm:$0xff] }
 0x1fc   :  { %1045 = vmatpush.msrb.mxu3 %v917_v56  ;;  %v948_v56 = vld [vmem:[#allocation14 + $0x168] sm:$0xff] }
 0x1fd   :  { %1068 = vmatpush.msra.mxu0 %v949_v44  ;;  %v954_v44 = vld [vmem:[#allocation14 + $0x198] sm:$0xff] }
 0x1fe   :  { %1046 = vmatpush.msrb.mxu3 %v915_v61 }
 0x1ff   :  { %1069 = vmatpush.msra.mxu0 %v947_v48  ;;  %v952_v48 = vld [vmem:[#allocation14 + $0x188] sm:$0xff] }
 0x200   :  { %1047 = vmatpush.msrb.mxu3 %v913_v4  ;;  %v916_v4 = vld [vmem:[#allocation14 + $0x68] sm:$0xff] }
 0x201   :  { %1070 = vmatpush.msra.mxu0 %v945_v53 }
 0x203   :  { %1071 = vmatpush.msra.mxu0 %v943_v57  ;;  %v920_v57 = vld [vmem:[#allocation14 + $0x88] sm:$0xff] }
 0x205   :  { %1072 = vmatpush.msra.mxu0 %v941_v62  ;;  %v918_v62 = vld [vmem:[#allocation14 + $0x78] sm:$0xff] }
 0x207   :  { %1073 = vmatpush.msra.mxu0 %v939_v5  ;;  %v942_v5 = vld [vmem:[#allocation14 + $0x138] sm:$0xff] }
 0x249   :  { %v581_v7 = vpop.f32.mrf.mxu0 }
 0x24a   :  { %696 = vmatmul.f32.vlgmr.msra.gmra.mxu2 %v581_v7  ;;  %742 = vmatmul.f32.vlgmr.msrb.gmra.mxu0 %v581_v7 }
 0x251   :  { %v584_v8 = vpop.f32.mrf.mxu0 }
 0x252   :  { %699 = vmatmul.f32.gmra.mxu2 %v584_v8  ;;  %745 = vmatmul.f32.gmra.mxu0 %v584_v8  ;;  %v911_v8 = vld [vmem:[#allocation14 + $0x40] sm:$0xff] }
 0x253   :  { %1048 = vmatpush.msrb.mxu3 %v911_v8  ;;  %v940_v8 = vld [vmem:[#allocation14 + $0x128] sm:$0xff] }
 0x255   :  { %1049 = vmatpush.msrb.mxu3 %v909_v13 }
 0x26c   :  { %v720_v9 = vpop.f32.mrf.mxu3  ;;  %v674_v11 = vpop.f32.mrf.mxu1 }
 0x26d   :  { %v721_v1 = vadd.f32 %v720_v9, %v654_v14  ;;  %v675_v31 = vadd.f32 %v674_v11, %v653_v22  ;;  %v937_v9 = vld [vmem:[#allocation14 + $0x110] sm:$0xff] }
 0x26e   :  { %1074 = vmatpush.msra.mxu0 %v937_v9  ;;  %v912_v9 = vld [vmem:[#allocation14 + $0x48] sm:$0xff] }
 0x274   :  { %v723_v15 = vpop.f32.mrf.mxu3  ;;  %v677_v24 = vpop.f32.mrf.mxu1 }
 0x275   :  { %v724_v18 = vadd.f32 %v723_v15, %v654_v14  ;;  %v678_v33 = vadd.f32 %v677_v24, %v653_v22  ;;  %v935_v14 = vld [vmem:[#allocation14 + $0x100] sm:$0xff] }
 0x276   :  { %1075 = vmatpush.msra.mxu0 %v935_v14  ;;  %v910_v14 = vld [vmem:[#allocation14 + $0x38] sm:$0xff] }
 0x2c7   :  { %v743_v12 = vpop.f32.mrf.mxu0 }
 0x2c8   :  { %v4804_v27 = vadd.f32 %v743_v12, %v721_v1  ;;  %v767_v12 = vperm.slane %v765_v51, 0  ;;  %v966_v1 = vld [vmem:[#allocation14 + $0x1f8] sm:$0xff]  ;;  %v924_v51 = vld [vmem:[#allocation14 + $0xa8] sm:$0xff] }
 0x2c9   :  { %1152 = vmatpush.msrb.mxu0 %v966_v1  ;;  %v799_v1 = vld [vmem:[#allocation10] sm:$0x3] }
 0x2cb   :  { %1153 = vmatpush.msrb.mxu0 %v964_v21  ;;  %v906_v21 = vld [vmem:[#allocation14 + $0x18] sm:$0xff] }
 0x2cd   :  { %v697_v0 = vpop.f32.mrf.mxu2  ;;  %1154 = vmatpush.msrb.mxu0 %v962_v25 }
 0x2ce   :  { %v4810_v40 = vadd.f32 %v697_v0, %v675_v31 }
 0x2cf   :  { %v746_v23 = vpop.f32.mrf.mxu0  ;;  %1155 = vmatpush.msrb.mxu0 %v960_v30 }
 0x2d0   :  { %v4806_v28 = vadd.f32 %v746_v23, %v724_v18  ;;  %v907_v18 = vld [vmem:[#allocation14 + $0x20] sm:$0xff]  ;;  %v905_v23 = vld [vmem:[#allocation14 + $0x10] sm:$0xff] }
 0x2d1   :  { %1050 = vmatpush.msrb.mxu3 %v907_v18  ;;  %1156 = vmatpush.msrb.mxu0 %v958_v35 }
 0x2d2   :  { %v756_v32 = vadd.f32 %v4806_v28, %v4804_v27 }
 0x2d3   :  { %1051 = vmatpush.msrb.mxu3 %v905_v23  ;;  %v904_v23 = vld [vmem:[#allocation14 + $0x8] sm:$0xff] }
 0x2d4   :  { %v757_v36 = vrot.slane %v756_v32, 4 }
 0x2d5   :  { %v700_v37 = vpop.f32.mrf.mxu2 }
 0x2d6   :  { %v758_v41 = vadd.f32 %v757_v36, %v756_v32  ;;  %v4812_v42 = vadd.f32 %v700_v37, %v678_v33 }
 0x2d8   :  { %v759_v45 = vrot.slane %v758_v41, 2  ;;  %v749_v46 = vadd.f32 %v4812_v42, %v4810_v40 }
 0x2da   :  { %v760_v49 = vadd.f32 %v759_v45, %v758_v41  ;;  %v750_v50 = vrot.slane %v749_v46, 4 }
 0x2dc   :  { %v761_v54 = vrot.slane %v760_v49, 1  ;;  %v751_v55 = vadd.f32 %v750_v50, %v749_v46 }
 0x2de   :  { %v762_v58 = vadd.f32 %v761_v54, %v760_v49  ;;  %v752_v60 = vrot.slane %v751_v55, 2 }
 0x2e0   :  { %v764_v63 = vmul.f32 0.0625, %v762_v58  ;;  %v753_v3 = vadd.f32 %v752_v60, %v751_v55  ;;  %v922_v55 = vld [vmem:[#allocation14 + $0x98] sm:$0xff] }
 0x2e2   :  { %v772_v6 = vmul.f32 %v768_v59, %v764_v63  ;;  %v754_v7 = vrot.slane %v753_v3, 1  ;;  %v946_v59 = vld [vmem:[#allocation14 + $0x158] sm:$0xff]  ;;  %v944_v63 = vld [vmem:[#allocation14 + $0x148] sm:$0xff] }
 0x2e4   :  { %v774_v10 = vperm.slane %v772_v6, 0  ;;  %v755_v11 = vadd.f32 %v754_v7, %v753_v3  ;;  %v914_v7 = vld [vmem:[#allocation14 + $0x58] sm:$0xff] }
 0x2e6   :  { %v4817_v15 = vsub.f32 %v4804_v27, %v774_v10  ;;  %v4820_v16 = vsub.f32 %v4806_v28, %v774_v10  ;;  %v763_v17 = vmul.f32 0.0625, %v755_v11  ;;  %v903_v27 = vld [vmem:[#allocation14] sm:$0xff]  ;;  %v938_v11 = vld [vmem:[#allocation14 + $0x118] sm:$0xff] }
 0x2e7   :  { %1052 = vmatpush.msrb.mxu3 %v903_v27 }
 0x2e8   :  { %v780_v0 = vmul.f32 %v4817_v15, %v4817_v15  ;;  %v782_v19 = vmul.f32 %v4820_v16, %v4820_v16  ;;  %v771_v22 = vmul.f32 %v767_v12, %v763_v17  ;;  %v936_v17 = vld [vmem:[#allocation14 + $0x108] sm:$0xff] }
 0x2e9   :  { %1129 = vmatpush.msra.mxu3 %v934_v29 }
 0x2ea   :  { %v790_v24 = vadd.f32 %v782_v19, %v780_v0  ;;  %v773_v26 = vperm.slane %v771_v22, 0  ;;  %v908_v0 = vld [vmem:[#allocation14 + $0x28] sm:$0xff]  ;;  %v802_v22 = vperm.slane %v799_v1, 1 }
 0x2eb   :  { %1130 = vmatpush.msra.mxu3 %v932_v34 }
 0x2ec   :  { %v791_v28 = vrot.slane %v790_v24, 4  ;;  %v4827_v31 = vsub.f32 %v4810_v40, %v773_v26  ;;  %v4830_v32 = vsub.f32 %v4812_v42, %v773_v26  ;;  %v956_v40 = vld [vmem:[#allocation14 + $0x1a8] sm:$0xff]  ;;  %v835_v26 = vld [vmem:[#allocation11] sm:$0x3]  ;;  %v806_v29 = vmul.f32 %v802_v22, %v4817_v15 }
 0x2ed   :  { %1131 = vmatpush.msra.mxu3 %v930_v39  ;;  %1157 = vmatpush.msrb.mxu0 %v956_v40  ;;  %v808_v30 = vmul.f32 %v802_v22, %v4820_v16  ;;  %v838_v34 = vperm.slane %v835_v26, 1  ;;  %v801_v39 = vperm.slane %v799_v1, 0  ;;  %v1003_v1 = vld [vmem:[#allocation14 + $0x320] sm:$0xff]  ;;  %v973_v22 = vld [vmem:[#allocation14 + $0x230] sm:$0xff] }
 0x2ee   :  { %v792_v33 = vadd.f32 %v791_v28, %v790_v24  ;;  %v779_v36 = vmul.f32 %v4827_v31, %v4827_v31  ;;  %v781_v37 = vmul.f32 %v4830_v32, %v4830_v32 }
 0x2ef   :  { %1132 = vmatpush.msra.mxu3 %v928_v43  ;;  %1158 = vmatpush.msrb.mxu0 %v954_v44  ;;  %v805_v15 = vmul.f32 %v801_v39, %v4827_v31  ;;  %v807_v16 = vmul.f32 %v801_v39, %v4830_v32  ;;  %v1027_v31 = vld [vmem:[#allocation14 + $0x3e0] sm:$0xff]  ;;  %v1020_v39 = vld [vmem:[#allocation14 + $0x3a8] sm:$0xff] }
 0x2f0   :  { %v793_v38 = vrot.slane %v792_v33, 2  ;;  %v783_v41 = vadd.f32 %v781_v37, %v779_v36 }
 0x2f1   :  { %1133 = vmatpush.msra.mxu3 %v926_v47  ;;  %1159 = vmatpush.msrb.mxu0 %v952_v48 }
 0x2f2   :  { %v794_v42 = vadd.f32 %v793_v38, %v792_v33  ;;  %v784_v45 = vrot.slane %v783_v41, 4 }
 0x2f3   :  { %1134 = vmatpush.msra.mxu3 %v924_v51  ;;  %1160 = vmatpush.msrb.mxu0 %v950_v52  ;;  %v1029_v52 = vld [vmem:[#allocation14 + $0x3f0] sm:$0xff] }
 0x2f4   :  { %v795_v46 = vrot.slane %v794_v42, 1  ;;  %v785_v49 = vadd.f32 %v784_v45, %v783_v41 }
 0x2f5   :  { %1135 = vmatpush.msra.mxu3 %v922_v55  ;;  %1161 = vmatpush.msrb.mxu0 %v948_v56  ;;  %v1025_v56 = vld [vmem:[#allocation14 + $0x3d0] sm:$0xff] }
 0x2f6   :  { %v796_v50 = vadd.f32 %v795_v46, %v794_v42  ;;  %v786_v53 = vrot.slane %v785_v49, 2  ;;  %v837_v46 = vperm.slane %v835_v26, 0  ;;  %v969_v26 = vld [vmem:[#allocation14 + $0x210] sm:$0xff] }
 0x2f7   :  { %1136 = vmatpush.msra.mxu3 %v920_v57  ;;  %1162 = vmatpush.msrb.mxu0 %v946_v59  ;;  %v1023_v59 = vld [vmem:[#allocation14 + $0x3c0] sm:$0xff] }
 0x2f8   :  { %v798_v54 = vmul.f32 0.0625, %v796_v50  ;;  %v787_v58 = vadd.f32 %v786_v53, %v785_v49 }
 0x2f9   :  { %1137 = vmatpush.msra.mxu3 %v918_v62  ;;  %1163 = vmatpush.msrb.mxu0 %v944_v63  ;;  %v995_v62 = vld [vmem:[#allocation14 + $0x2e0] sm:$0xff] }
 0x2fa   :  { %v810_v60 = vadd.f32 1e-05, %v798_v54  ;;  %v788_v61 = vrot.slane %v787_v58, 1  ;;  %v1019_v63 = vld [vmem:[#allocation14 + $0x3a0] sm:$0xff] }
 0x2fb   :  { %1138 = vmatpush.msra.mxu3 %v916_v4  ;;  %1164 = vmatpush.msrb.mxu0 %v942_v5  ;;  %v1017_v4 = vld [vmem:[#allocation14 + $0x390] sm:$0xff]  ;;  %v991_v5 = vld [vmem:[#allocation14 + $0x2c0] sm:$0xff] }
 0x2fc   :  { %3605 = vrsqrt.f32 %v810_v60  ;;  %v789_v3 = vadd.f32 %v788_v61, %v787_v58  ;;  %vm827_vm2 = vweird.f32 %v810_v60  ;;  %v1021_v61 = vld [vmem:[#allocation14 + $0x3b0] sm:$0xff] }
 0x2fd   :  { %1139 = vmatpush.msra.mxu3 %v914_v7  ;;  %1165 = vmatpush.msrb.mxu0 %v940_v8  ;;  %v989_v7 = vld [vmem:[#allocation14 + $0x2b0] sm:$0xff]  ;;  %v987_v8 = vld [vmem:[#allocation14 + $0x2a0] sm:$0xff] }
 0x2fe   :  { %v797_v6 = vmul.f32 0.0625, %v789_v3  ;;  %v993_v3 = vld [vmem:[#allocation14 + $0x2d0] sm:$0xff] }
 0x2ff   :  { %1140 = vmatpush.msra.mxu3 %v912_v9  ;;  %1166 = vmatpush.msrb.mxu0 %v938_v11  ;;  %v1011_v9 = vld [vmem:[#allocation14 + $0x360] sm:$0xff]  ;;  %v1009_v11 = vld [vmem:[#allocation14 + $0x350] sm:$0xff] }
 0x300   :  { %v809_v10 = vadd.f32 1e-05, %v797_v6  ;;  %v1015_v6 = vld [vmem:[#allocation14 + $0x380] sm:$0xff] }
 0x301   :  { %1141 = vmatpush.msra.mxu3 %v910_v14  ;;  %1167 = vmatpush.msrb.mxu0 %v936_v17  ;;  %v981_v14 = vld [vmem:[#allocation14 + $0x270] sm:$0xff] }
 0x302   :  { %v3606_v12 = vpop.eup %3605  ;;  %3607 = vrsqrt.f32 %v809_v10  ;;  %vm817_vm5 = vweird.f32 %v809_v10  ;;  %v1005_v17 = vld [vmem:[#allocation14 + $0x330] sm:$0xff] }
 0x303   :  { %v822_v13 = vmul.f32 %v3606_v12, %v810_v60  ;;  %1142 = vmatpush.msra.mxu3 %v908_v0  ;;  %vm828_vm1 = vweird.f32 %v3606_v12  ;;  %v997_v60 = vld [vmem:[#allocation14 + $0x2f0] sm:$0xff] }
 0x304   :  { %vm829_vm3 = vmor %vm827_vm2, %vm828_vm1  ;;  %v1001_v0 = vld [vmem:[#allocation14 + $0x310] sm:$0xff] }
 0x305   :  { %v823_v18 = vmul.f32 %v3606_v12, %v822_v13  ;;  %1143 = vmatpush.msra.mxu3 %v906_v21  ;;  %v1007_v13 = vld [vmem:[#allocation14 + $0x340] sm:$0xff] }
 0x306   :  { %v999_v21 = vld [vmem:[#allocation14 + $0x300] sm:$0xff] }
 0x307   :  { %v824_v19 = vmul.f32 0.5, %v823_v18  ;;  %1144 = vmatpush.msra.mxu3 %v904_v23  ;;  %v977_v18 = vld [vmem:[#allocation14 + $0x250] sm:$0xff]  ;;  %v1030_v23 = vld [vmem:[#allocation14 + $0x3f8] sm:$0xff] }
 0x308   :  { %v3608_v24 = vpop.eup %3607 }
 0x309   :  { %v825_v25 = vsub.f32 1.5, %v824_v19  ;;  %v812_v27 = vmul.f32 %v3608_v24, %v809_v10  ;;  %vm818_vm4 = vweird.f32 %v3608_v24  ;;  %v985_v10 = vld [vmem:[#allocation14 + $0x290] sm:$0xff]  ;;  %v975_v19 = vld [vmem:[#allocation14 + $0x240] sm:$0xff] }
 0x30a   :  { %vm819_vm8 = vmor %vm817_vm5, %vm818_vm4 }
 0x30b   :  { %v826_v28 = vmul.f32 %v3606_v12, %v825_v25  ;;  %v813_v33 = vmul.f32 %v3608_v24, %v812_v27  ;;  %v1028_v25 = vld [vmem:[#allocation14 + $0x3e8] sm:$0xff]  ;;  %v1026_v27 = vld [vmem:[#allocation14 + $0x3d8] sm:$0xff] }
 0x30d   :  { %v830_v35 = vsel %vm829_vm3, %v3606_v12, %v826_v28  ;;  %v814_v38 = vmul.f32 0.5, %v813_v33  ;;  %v983_v12 = vld [vmem:[#allocation14 + $0x280] sm:$0xff]  ;;  %v994_v33 = vld [vmem:[#allocation14 + $0x2d8] sm:$0xff] }
 0x30e   :  { %v832_v36 = vmul.f32 %v830_v35, %v806_v29  ;;  %v834_v37 = vmul.f32 %v830_v35, %v808_v30  ;;  %v967_v28 = vld [vmem:[#allocation14 + $0x200] sm:$0xff]  ;;  %v998_v29 = vld [vmem:[#allocation14 + $0x2f8] sm:$0xff]  ;;  %v996_v30 = vld [vmem:[#allocation14 + $0x2e8] sm:$0xff] }
 0x30f   :  { %v815_v40 = vsub.f32 1.5, %v814_v38  ;;  %v1024_v35 = vld [vmem:[#allocation14 + $0x3c8] sm:$0xff] }
 0x310   :  { %v844_v41 = vadd.f32 %v838_v34, %v834_v37  ;;  %v842_v42 = vadd.f32 %v838_v34, %v832_v36  ;;  %v992_v34 = vld [vmem:[#allocation14 + $0x2c8] sm:$0xff]  ;;  %v990_v36 = vld [vmem:[#allocation14 + $0x2b8] sm:$0xff] }
 0x311   :  { %v816_v43 = vmul.f32 %v3608_v24, %v815_v40  ;;  %v1022_v37 = vld [vmem:[#allocation14 + $0x3b8] sm:$0xff]  ;;  %v988_v38 = vld [vmem:[#allocation14 + $0x2a8] sm:$0xff] }
 0x312   :  { %vm848_vm6 = vcmp.gt.f32.partialorder %v844_v41, 0.0  ;;  %v852_v44 = vmul.f32 0.2, %v844_v41  ;;  %vm846_vm7 = vcmp.gt.f32.partialorder %v842_v42, 0.0  ;;  %v850_v45 = vmul.f32 0.2, %v842_v42 }
 0x313   :  { %v820_v47 = vsel %vm819_vm8, %v3608_v24, %v816_v43  ;;  %v971_v24 = vld [vmem:[#allocation14 + $0x220] sm:$0xff]  ;;  %v986_v40 = vld [vmem:[#allocation14 + $0x298] sm:$0xff]  ;;  %v1016_v43 = vld [vmem:[#allocation14 + $0x388] sm:$0xff] }
 0x314   :  { %v4840_v48 = vsel %vm848_vm6, %v844_v41, %v852_v44  ;;  %v833_v49 = vmul.f32 %v820_v47, %v807_v16  ;;  %v854_v50 = vsel %vm846_vm7, %v842_v42, %v850_v45  ;;  %v831_v51 = vmul.f32 %v820_v47, %v805_v15  ;;  %v1018_v41 = vld [vmem:[#allocation14 + $0x398] sm:$0xff]  ;;  %v984_v42 = vld [vmem:[#allocation14 + $0x288] sm:$0xff] }
 0x315   :  { %894 = vmatpush.msrb.mxu2 %v4840_v48  ;;  %1076 = vmatmul.f32.vlgmr.msra.gmra.mxu0 %v854_v50  ;;  %v982_v44 = vld [vmem:[#allocation14 + $0x278] sm:$0xff]  ;;  %v980_v16 = vld [vmem:[#allocation14 + $0x268] sm:$0xff] }
 0x316   :  { %v843_v53 = vadd.f32 %v837_v46, %v833_v49  ;;  %v841_v54 = vadd.f32 %v837_v46, %v831_v51  ;;  %v1014_v15 = vld [vmem:[#allocation14 + $0x378] sm:$0xff]  ;;  %v1012_v45 = vld [vmem:[#allocation14 + $0x368] sm:$0xff] }
 0x317   :  { %895 = vmatpush.msrb.mxu2 %v854_v50  ;;  %v978_v46 = vld [vmem:[#allocation14 + $0x258] sm:$0xff]  ;;  %v1008_v49 = vld [vmem:[#allocation14 + $0x348] sm:$0xff] }
 0x318   :  { %3507 = vmatmul.msk.f32.vlgmr.msrb.gmra.mxu2 %vm557_vm0, %v4791_v2  ;;  %vm847_vm9 = vcmp.gt.f32.partialorder %v843_v53, 0.0  ;;  %v851_v32 = vmul.f32 0.2, %v843_v53  ;;  %vm845_vm10 = vcmp.gt.f32.partialorder %v841_v54, 0.0  ;;  %v849_v55 = vmul.f32 0.2, %v841_v54 }
 0x319   :  { %1106 = vmatpush.msra.mxu2 %v1029_v52  ;;  %v1010_v47 = vld [vmem:[#allocation14 + $0x358] sm:$0xff]  ;;  %v972_v52 = vld [vmem:[#allocation14 + $0x228] sm:$0xff] }
 0x31a   :  { %v855_v57 = vsel %vm847_vm9, %v843_v53, %v851_v32  ;;  %v853_v58 = vsel %vm845_vm10, %v841_v54, %v849_v55  ;;  %v1006_v51 = vld [vmem:[#allocation14 + $0x338] sm:$0xff]  ;;  %v1004_v53 = vld [vmem:[#allocation14 + $0x328] sm:$0xff] }
 0x31b   :  { %1107 = vmatpush.msra.mxu2 %v1027_v31  ;;  %871 = vmatpush.msrb.mxu1 %v855_v57  ;;  %v970_v54 = vld [vmem:[#allocation14 + $0x218] sm:$0xff]  ;;  %v968_v32 = vld [vmem:[#allocation14 + $0x208] sm:$0xff] }
 0x31c   :  { %1053 = vmatmul.f32.vlgmr.msrb.gmra.mxu3 %v853_v58  ;;  %v1002_v31 = vld [vmem:[#allocation14 + $0x318] sm:$0xff]  ;;  %v1000_v55 = vld [vmem:[#allocation14 + $0x308] sm:$0xff] }
 0x31d   :  { %1108 = vmatpush.msra.mxu2 %v1025_v56  ;;  %872 = vmatpush.msrb.mxu1 %v853_v58 }
 0x31e   :  { %1079 = vmatmul.f32.gmra.mxu0 %v4840_v48  ;;  %3505 = vmatmul.msk.f32.vlgmr.msrb.gmra.mxu1 %vm557_vm0, %v4791_v2  ;;  %v1013_v2 = vld [vmem:[#allocation14 + $0x370] sm:$0xff] }
 0x31f   :  { %1109 = vmatpush.msra.mxu2 %v1023_v59  ;;  %1083 = vmatpush.msra.mxu1 %v997_v60 }
 0x320   :  { %3508 = vmatmul.msk.f32.gmra.mxu2 %vm557_vm0, %v4796_v20 }
 0x321   :  { %1110 = vmatpush.msra.mxu2 %v1021_v61  ;;  %1084 = vmatpush.msra.mxu1 %v995_v62  ;;  %v1031_v62 = vld [vmem:[#allocation16] sm:$0x3] }
 0x323   :  { %1111 = vmatpush.msra.mxu2 %v1019_v63  ;;  %1085 = vmatpush.msra.mxu1 %v993_v3 }
 0x324   :  { %1056 = vmatmul.f32.gmra.mxu3 %v855_v57 }
 0x325   :  { %1112 = vmatpush.msra.mxu2 %v1017_v4  ;;  %1086 = vmatpush.msra.mxu1 %v991_v5  ;;  %v1033_v4 = vperm.slane %v1031_v62, 0 }
 0x326   :  { %1168 = vmatmul.f32.vlgmr.msrb.gmra.mxu0 %v854_v50  ;;  %3506 = vmatmul.msk.f32.gmra.mxu1 %vm557_vm0, %v4796_v20  ;;  %v979_v20 = vld [vmem:[#allocation14 + $0x260] sm:$0xff]  ;;  %v974_v50 = vld [vmem:[#allocation14 + $0x238] sm:$0xff] }
 0x327   :  { %1113 = vmatpush.msra.mxu2 %v1015_v6  ;;  %1087 = vmatpush.msra.mxu1 %v989_v7  ;;  %v1405_v7 = vld [vmem:[#allocation22 + $0xf0] sm:$0xff] }
 0x329   :  { %1114 = vmatpush.msra.mxu2 %v1013_v2  ;;  %1088 = vmatpush.msra.mxu1 %v987_v8 }
 0x32b   :  { %1115 = vmatpush.msra.mxu2 %v1011_v9  ;;  %1089 = vmatpush.msra.mxu1 %v985_v10  ;;  %v1403_v9 = vld [vmem:[#allocation22 + $0xe0] sm:$0xff] }
 0x32c   :  { %1145 = vmatmul.f32.vlgmr.msra.gmra.mxu3 %v853_v58 }
 0x32d   :  { %1116 = vmatpush.msra.mxu2 %v1009_v11  ;;  %1090 = vmatpush.msra.mxu1 %v983_v12  ;;  %v1401_v12 = vld [vmem:[#allocation22 + $0xd0] sm:$0xff] }
 0x32e   :  { %1171 = vmatmul.f32.gmra.mxu0 %v4840_v48  ;;  %v976_v48 = vld [vmem:[#allocation14 + $0x248] sm:$0xff] }
 0x32f   :  { %1117 = vmatpush.msra.mxu2 %v1007_v13  ;;  %1091 = vmatpush.msra.mxu1 %v981_v14 }
 0x331   :  { %1118 = vmatpush.msra.mxu2 %v1005_v17  ;;  %1092 = vmatpush.msra.mxu1 %v979_v20  ;;  %v1399_v17 = vld [vmem:[#allocation22 + $0xc0] sm:$0xff] }
 0x333   :  { %1119 = vmatpush.msra.mxu2 %v1003_v1  ;;  %1093 = vmatpush.msra.mxu1 %v977_v18 }
 0x334   :  { %1148 = vmatmul.f32.gmra.mxu3 %v855_v57 }
 0x335   :  { %1120 = vmatpush.msra.mxu2 %v1001_v0  ;;  %1094 = vmatpush.msra.mxu1 %v975_v19  ;;  %v1397_v0 = vld [vmem:[#allocation22 + $0xb0] sm:$0xff] }
 0x337   :  { %1121 = vmatpush.msra.mxu2 %v999_v21  ;;  %1095 = vmatpush.msra.mxu1 %v973_v22 }
 0x339   :  { %1198 = vmatpush.msrb.mxu2 %v1030_v23  ;;  %1096 = vmatpush.msra.mxu1 %v971_v24  ;;  %v1395_v23 = vld [vmem:[#allocation22 + $0xa0] sm:$0xff] }
 0x33b   :  { %1199 = vmatpush.msrb.mxu2 %v1028_v25  ;;  %1097 = vmatpush.msra.mxu1 %v969_v26  ;;  %v1393_v26 = vld [vmem:[#allocation22 + $0x90] sm:$0xff] }
 0x33d   :  { %1200 = vmatpush.msrb.mxu2 %v1026_v27  ;;  %1098 = vmatpush.msra.mxu1 %v967_v28  ;;  %v1034_v27 = vperm.slane %v1031_v62, 1 }
 0x33f   :  { %1175 = vmatpush.msrb.mxu1 %v998_v29  ;;  %1201 = vmatpush.msrb.mxu2 %v1024_v35  ;;  %v1389_v35 = vld [vmem:[#allocation22 + $0x70] sm:$0xff] }
 0x341   :  { %1176 = vmatpush.msrb.mxu1 %v996_v30  ;;  %1202 = vmatpush.msrb.mxu2 %v1022_v37  ;;  %v1391_v30 = vld [vmem:[#allocation22 + $0x80] sm:$0xff] }
 0x343   :  { %1177 = vmatpush.msrb.mxu1 %v994_v33  ;;  %1203 = vmatpush.msrb.mxu2 %v1020_v39 }
 0x345   :  { %1178 = vmatpush.msrb.mxu1 %v992_v34  ;;  %1204 = vmatpush.msrb.mxu2 %v1018_v41  ;;  %v1435_v41 = vld [vmem:[#allocation22 + $0x1e0] sm:$0xff] }
 0x347   :  { %1179 = vmatpush.msrb.mxu1 %v990_v36  ;;  %1205 = vmatpush.msrb.mxu2 %v1016_v43  ;;  %v1437_v36 = vld [vmem:[#allocation22 + $0x1f0] sm:$0xff] }
 0x349   :  { %1180 = vmatpush.msrb.mxu1 %v988_v38  ;;  %1206 = vmatpush.msrb.mxu2 %v1014_v15 }
 0x34b   :  { %1181 = vmatpush.msrb.mxu1 %v986_v40  ;;  %1207 = vmatpush.msrb.mxu2 %v1012_v45  ;;  %v1387_v40 = vld [vmem:[#allocation22 + $0x60] sm:$0xff]  ;;  %v1433_v45 = vld [vmem:[#allocation22 + $0x1d0] sm:$0xff] }
 0x34d   :  { %1182 = vmatpush.msrb.mxu1 %v984_v42  ;;  %1208 = vmatpush.msrb.mxu2 %v1010_v47 }
 0x34f   :  { %1183 = vmatpush.msrb.mxu1 %v982_v44  ;;  %1209 = vmatpush.msrb.mxu2 %v1008_v49  ;;  %v4859_v44 = vld [vmem:[#allocation20] sm:$0x3]  ;;  %v1383_v49 = vld [vmem:[#allocation22 + $0x40] sm:$0xff] }
 0x351   :  { %1184 = vmatpush.msrb.mxu1 %v980_v16  ;;  %1210 = vmatpush.msrb.mxu2 %v1006_v51  ;;  %v1385_v16 = vld [vmem:[#allocation22 + $0x50] sm:$0xff] }
 0x353   :  { %1185 = vmatpush.msrb.mxu1 %v978_v46  ;;  %1211 = vmatpush.msrb.mxu2 %v1004_v53 }
 0x355   :  { %1186 = vmatpush.msrb.mxu1 %v976_v48  ;;  %1212 = vmatpush.msrb.mxu2 %v1002_v31 }
 0x357   :  { %1187 = vmatpush.msrb.mxu1 %v974_v50  ;;  %1213 = vmatpush.msrb.mxu2 %v1000_v55  ;;  %v1431_v50 = vld [vmem:[#allocation22 + $0x1c0] sm:$0xff]  ;;  %v1429_v55 = vld [vmem:[#allocation22 + $0x1b0] sm:$0xff] }
 0x359   :  { %1188 = vmatpush.msrb.mxu1 %v972_v52  ;;  %v1239_v52 = vperm.slane %v4859_v44, 0 }
 0x35b   :  { %1189 = vmatpush.msrb.mxu1 %v970_v54 }
 0x35d   :  { %1190 = vmatpush.msrb.mxu1 %v968_v32  ;;  %v1381_v32 = vld [vmem:[#allocation22 + $0x30] sm:$0xff] }
 0x392   :  { %v1077_v61 = vpop.f32.mrf.mxu0 }
 0x39b   :  { %v897_v56 = vpop.f32.mrf.mxu2  ;;  %v874_v57 = vpop.f32.mrf.mxu1 }
 0x39c   :  { %1122 = vmatmul.f32.vlgmr.msra.gmra.mxu2 %v897_v56  ;;  %1099 = vmatmul.f32.vlgmr.msra.gmra.mxu1 %v874_v57  ;;  %v1080_v5 = vpop.f32.mrf.mxu0 }
 0x39d   :  { %1509 = vmatpush.msra.mxu1 %v1405_v7  ;;  %1532 = vmatpush.msra.mxu2 %v1437_v36  ;;  %v1423_v7 = vld [vmem:[#allocation22 + $0x180] sm:$0xff] }
 0x39f   :  { %v1054_v60 = vpop.f32.mrf.mxu3  ;;  %1510 = vmatpush.msra.mxu1 %v1403_v9  ;;  %1533 = vmatpush.msra.mxu2 %v1435_v41  ;;  %v1392_v41 = vld [vmem:[#allocation22 + $0x88] sm:$0xff] }
 0x3a0   :  { %v1055_v2 = vadd.f32 %v1054_v60, %v1033_v4  ;;  %v1427_v60 = vld [vmem:[#allocation22 + $0x1a0] sm:$0xff] }
 0x3a1   :  { %1511 = vmatpush.msra.mxu1 %v1401_v12  ;;  %1534 = vmatpush.msra.mxu2 %v1433_v45 }
 0x3a2   :  { %v1078_v13 = vadd.f32 %v1077_v61, %v1055_v2 }
 0x3a3   :  { %v900_v58 = vpop.f32.mrf.mxu2  ;;  %v877_v59 = vpop.f32.mrf.mxu1  ;;  %1512 = vmatpush.msra.mxu1 %v1399_v17  ;;  %1535 = vmatpush.msra.mxu2 %v1431_v50 }
 0x3a4   :  { %1125 = vmatmul.f32.gmra.mxu2 %v900_v58  ;;  %1102 = vmatmul.f32.gmra.mxu1 %v877_v59  ;;  %v1169_v22 = vpop.f32.mrf.mxu0 }
 0x3a5   :  { %1513 = vmatpush.msra.mxu1 %v1397_v0  ;;  %1536 = vmatpush.msra.mxu2 %v1429_v55  ;;  %v1432_v55 = vld [vmem:[#allocation22 + $0x1c8] sm:$0xff] }
 0x3a7   :  { %v1057_v63 = vpop.f32.mrf.mxu3  ;;  %1514 = vmatpush.msra.mxu1 %v1395_v23  ;;  %1537 = vmatpush.msra.mxu2 %v1427_v60  ;;  %v1380_v60 = vld [vmem:[#allocation22 + $0x28] sm:$0xff] }
 0x3a8   :  { %v1058_v8 = vadd.f32 %v1057_v63, %v1033_v4  ;;  %v1377_v63 = vld [vmem:[#allocation22 + $0x10] sm:$0xff] }
 0x3a9   :  { %1515 = vmatpush.msra.mxu1 %v1393_v26  ;;  %v1398_v26 = vld [vmem:[#allocation22 + $0xb8] sm:$0xff] }
 0x3aa   :  { %v1081_v14 = vadd.f32 %v1080_v5, %v1058_v8 }
 0x3ab   :  { %1516 = vmatpush.msra.mxu1 %v1391_v30 }
 0x3ac   :  { %1214 = vmatmul.f32.vlgmr.msrb.gmra.mxu2 %v897_v56  ;;  %1191 = vmatmul.f32.vlgmr.msrb.gmra.mxu1 %v874_v57  ;;  %v1172_v43 = vpop.f32.mrf.mxu0 }
 0x3ad   :  { %1517 = vmatpush.msra.mxu1 %v1389_v35  ;;  %v1411_v35 = vld [vmem:[#allocation22 + $0x120] sm:$0xff] }
 0x3af   :  { %v1146_v11 = vpop.f32.mrf.mxu3  ;;  %1518 = vmatpush.msra.mxu1 %v1387_v40 }
 0x3b0   :  { %v1147_v37 = vadd.f32 %v1146_v11, %v1034_v27  ;;  %v1421_v11 = vld [vmem:[#allocation22 + $0x170] sm:$0xff] }
 0x3b1   :  { %1519 = vmatpush.msra.mxu1 %v1385_v16  ;;  %v1438_v16 = vld [vmem:[#allocation22 + $0x1f8] sm:$0xff] }
 0x3b2   :  { %v1170_v47 = vadd.f32 %v1169_v22, %v1147_v37  ;;  %v1400_v22 = vld [vmem:[#allocation22 + $0xc8] sm:$0xff]  ;;  %v1394_v37 = vld [vmem:[#allocation22 + $0x98] sm:$0xff] }
 0x3b3   :  { %1520 = vmatpush.msra.mxu1 %v1383_v49  ;;  %v1436_v49 = vld [vmem:[#allocation22 + $0x1e8] sm:$0xff] }
 0x3b4   :  { %1217 = vmatmul.f32.gmra.mxu2 %v900_v58  ;;  %1194 = vmatmul.f32.gmra.mxu1 %v877_v59  ;;  %v1379_v59 = vld [vmem:[#allocation22 + $0x20] sm:$0xff] }
 0x3b5   :  { %1521 = vmatpush.msra.mxu1 %v1381_v32  ;;  %v1384_v32 = vld [vmem:[#allocation22 + $0x48] sm:$0xff] }
 0x3b7   :  { %v1149_v29 = vpop.f32.mrf.mxu3  ;;  %1522 = vmatpush.msra.mxu1 %v1379_v59 }
 0x3b8   :  { %v1150_v38 = vadd.f32 %v1149_v29, %v1034_v27  ;;  %v1413_v29 = vld [vmem:[#allocation22 + $0x130] sm:$0xff] }
 0x3b9   :  { %1523 = vmatpush.msra.mxu1 %v1377_v63 }
 0x3ba   :  { %v1173_v48 = vadd.f32 %v1172_v43, %v1150_v38  ;;  %v1407_v43 = vld [vmem:[#allocation22 + $0x100] sm:$0xff] }
 0x419   :  { %v1100_v3 = vpop.f32.mrf.mxu1 }
 0x41a   :  { %v1101_v20 = vadd.f32 %v1100_v3, %v1078_v13  ;;  %v1425_v3 = vld [vmem:[#allocation22 + $0x190] sm:$0xff] }
 0x41b   :  { %1538 = vmatpush.msra.mxu2 %v1425_v3  ;;  %v1426_v3 = vld [vmem:[#allocation22 + $0x198] sm:$0xff] }
 0x41d   :  { %1539 = vmatpush.msra.mxu2 %v1423_v7 }
 0x41f   :  { %v1123_v6 = vpop.f32.mrf.mxu2  ;;  %1540 = vmatpush.msra.mxu2 %v1421_v11 }
 0x420   :  { %v4853_v19 = vadd.f32 %v1123_v6, %v1101_v20  ;;  %v1375_v6 = vld [vmem:[#allocation22] sm:$0xff] }
 0x421   :  { %v1103_v10 = vpop.f32.mrf.mxu1  ;;  %1524 = vmatpush.msra.mxu1 %v1375_v6  ;;  %v1419_v20 = vld [vmem:[#allocation22 + $0x160] sm:$0xff] }
 0x422   :  { %v1104_v1 = vadd.f32 %v1103_v10, %v1081_v14  ;;  %v1406_v10 = vld [vmem:[#allocation22 + $0xf8] sm:$0xff]  ;;  %v1404_v14 = vld [vmem:[#allocation22 + $0xe8] sm:$0xff]  ;;  %1541 = vmatpush.msra.mxu2 %v1419_v20 }
 0x423   :  { %1601 = vmatpush.msrb.mxu1 %v1406_v10  ;;  %v4889_v10 = vld [vmem:[#allocation17] sm:$0x3] }
 0x424   :  { %v1273_v20 = vperm.slane %v4889_v10, 0 }
 0x425   :  { %1602 = vmatpush.msrb.mxu1 %v1404_v14 }
 0x427   :  { %v1126_v18 = vpop.f32.mrf.mxu2 }
 0x428   :  { %v4855_v21 = vadd.f32 %v1126_v18, %v1104_v1  ;;  %v1402_v18 = vld [vmem:[#allocation22 + $0xd8] sm:$0xff] }
 0x429   :  { %v1192_v25 = vpop.f32.mrf.mxu1  ;;  %1603 = vmatpush.msrb.mxu1 %v1402_v18 }
 0x42a   :  { %v1221_v24 = vadd.f32 %v4855_v21, %v4853_v19  ;;  %v1193_v53 = vadd.f32 %v1192_v25, %v1170_v47 }
 0x42b   :  { %1604 = vmatpush.msrb.mxu1 %v1400_v22 }
 0x42c   :  { %v1222_v28 = vrot.slane %v1221_v24, 4 }
 0x42d   :  { %1605 = vmatpush.msrb.mxu1 %v1398_v26 }
 0x42e   :  { %v1223_v33 = vadd.f32 %v1222_v28, %v1221_v24  ;;  %v1415_v24 = vld [vmem:[#allocation22 + $0x140] sm:$0xff]  ;;  %v1240_v28 = vperm.slane %v4859_v44, 1 }
 0x42f   :  { %v1215_v34 = vpop.f32.mrf.mxu2 }
 0x430   :  { %v1224_v39 = vrot.slane %v1223_v33, 2  ;;  %v4862_v57 = vadd.f32 %v1215_v34, %v1193_v53  ;;  %v1386_v53 = vld [vmem:[#allocation22 + $0x58] sm:$0xff] }
 0x431   :  { %v1195_v15 = vpop.f32.mrf.mxu1 }
 0x432   :  { %v1225_v42 = vadd.f32 %v1224_v39, %v1223_v33  ;;  %v1196_v54 = vadd.f32 %v1195_v15, %v1173_v48  ;;  %v1396_v33 = vld [vmem:[#allocation22 + $0xa8] sm:$0xff]  ;;  %v1409_v39 = vld [vmem:[#allocation22 + $0x110] sm:$0xff]  ;;  %v1390_v15 = vld [vmem:[#allocation22 + $0x78] sm:$0xff] }
 0x433   :  { %1606 = vmatpush.msrb.mxu1 %v1396_v33  ;;  %v1388_v48 = vld [vmem:[#allocation22 + $0x68] sm:$0xff]  ;;  %v1414_v33 = vld [vmem:[#allocation22 + $0x138] sm:$0xff] }
 0x434   :  { %v1226_v46 = vrot.slane %v1225_v42, 1 }
 0x435   :  { %1607 = vmatpush.msrb.mxu1 %v1394_v37  ;;  %v1410_v37 = vld [vmem:[#allocation22 + $0x118] sm:$0xff] }
 0x436   :  { %v1227_v51 = vadd.f32 %v1226_v46, %v1225_v42 }
 0x437   :  { %v1218_v31 = vpop.f32.mrf.mxu2  ;;  %1608 = vmatpush.msrb.mxu1 %v1392_v41 }
 0x438   :  { %v1235_v56 = vmul.f32 0.0625, %v1227_v51  ;;  %v4864_v58 = vadd.f32 %v1218_v31, %v1196_v54  ;;  %v1434_v54 = vld [vmem:[#allocation22 + $0x1d8] sm:$0xff] }
 0x439   :  { %1609 = vmatpush.msrb.mxu1 %v1390_v15  ;;  %v4897_v15 = vld [vmem:[#allocation5] sm:$0xff] }
 0x43a   :  { %v1243_v61 = vmul.f32 %v1239_v52, %v1235_v56  ;;  %v1228_v62 = vadd.f32 %v4864_v58, %v4862_v57 }
 0x43b   :  { %1610 = vmatpush.msrb.mxu1 %v1388_v48 }
 0x43c   :  { %v1245_v4 = vperm.slane %v1243_v61, 0  ;;  %v1229_v5 = vrot.slane %v1228_v62, 4  ;;  %v1428_v61 = vld [vmem:[#allocation22 + $0x1a8] sm:$0xff] }
 0x43d   :  { %1611 = vmatpush.msrb.mxu1 %v1386_v53  ;;  %v1469_v53 = vld [vmem:[#allocation22 + $0x2f0] sm:$0xff] }
 0x43e   :  { %v4869_v2 = vsub.f32 %v4853_v19, %v1245_v4  ;;  %v4872_v8 = vsub.f32 %v4855_v21, %v1245_v4  ;;  %v1230_v9 = vadd.f32 %v1229_v5, %v1228_v62  ;;  %v1417_v19 = vld [vmem:[#allocation22 + $0x150] sm:$0xff]  ;;  %v1378_v62 = vld [vmem:[#allocation22 + $0x18] sm:$0xff]  ;;  %v1376_v5 = vld [vmem:[#allocation22 + $0x8] sm:$0xff] }
 0x43f   :  { %1542 = vmatpush.msra.mxu2 %v1417_v19  ;;  %1612 = vmatpush.msrb.mxu1 %v1384_v32  ;;  %v4892_v19 = vld [vmem:[#allocation19] sm:$0x3] }
 0x440   :  { %v1251_v12 = vmul.f32 %v4869_v2, %v4869_v2  ;;  %v1253_v13 = vmul.f32 %v4872_v8, %v4872_v8  ;;  %v1231_v17 = vrot.slane %v1230_v9, 2  ;;  %v1279_v26 = vmul.f32 %v1273_v20, %v4872_v8 }
 0x441   :  { %1543 = vmatpush.msra.mxu2 %v1415_v24  ;;  %v1416_v24 = vld [vmem:[#allocation22 + $0x148] sm:$0xff] }
 0x442   :  { %v1255_v1 = vadd.f32 %v1253_v13, %v1251_v12  ;;  %v1232_v0 = vadd.f32 %v1231_v17, %v1230_v9  ;;  %v1424_v9 = vld [vmem:[#allocation22 + $0x188] sm:$0xff]  ;;  %v1422_v13 = vld [vmem:[#allocation22 + $0x178] sm:$0xff] }
 0x443   :  { %1544 = vmatpush.msra.mxu2 %v1413_v29 }
 0x444   :  { %v1256_v21 = vrot.slane %v1255_v1, 4  ;;  %v1233_v23 = vrot.slane %v1232_v0, 1 }
 0x445   :  { %1545 = vmatpush.msra.mxu2 %v1411_v35 }
 0x446   :  { %v1257_v25 = vadd.f32 %v1256_v21, %v1255_v1  ;;  %v1234_v27 = vadd.f32 %v1233_v23, %v1232_v0  ;;  %v1420_v1 = vld [vmem:[#allocation22 + $0x168] sm:$0xff]  ;;  %v1418_v21 = vld [vmem:[#allocation22 + $0x158] sm:$0xff] }
 0x447   :  { %1546 = vmatpush.msra.mxu2 %v1409_v39  ;;  %v1408_v39 = vld [vmem:[#allocation22 + $0x108] sm:$0xff] }
 0x448   :  { %v1258_v30 = vrot.slane %v1257_v25, 2  ;;  %v1236_v34 = vmul.f32 0.0625, %v1234_v27  ;;  %v1309_v27 = vperm.slane %v4892_v19, 0 }
 0x449   :  { %1547 = vmatpush.msra.mxu2 %v1407_v43 }
 0x44a   :  { %v1259_v36 = vadd.f32 %v1258_v30, %v1257_v25  ;;  %v1244_v38 = vmul.f32 %v1240_v28, %v1236_v34  ;;  %v1277_v25 = vmul.f32 %v1273_v20, %v4869_v2  ;;  %v1489_v20 = vld [vmem:[#allocation22 + $0x390] sm:$0xff] }
 0x44b   :  { %1624 = vmatpush.msrb.mxu2 %v1438_v16  ;;  %v1274_v16 = vperm.slane %v4889_v10, 1  ;;  %v1495_v10 = vld [vmem:[#allocation22 + $0x3c0] sm:$0xff] }
 0x44c   :  { %v1260_v40 = vrot.slane %v1259_v36, 1  ;;  %v1246_v42 = vperm.slane %v1244_v38, 0 }
 0x44d   :  { %1625 = vmatpush.msrb.mxu2 %v1436_v49 }
 0x44e   :  { %v1261_v44 = vadd.f32 %v1260_v40, %v1259_v36  ;;  %v4880_v45 = vsub.f32 %v4862_v57, %v1246_v42  ;;  %v4883_v46 = vsub.f32 %v4864_v58, %v1246_v42  ;;  %v1382_v57 = vld [vmem:[#allocation22 + $0x38] sm:$0xff]  ;;  %v1412_v36 = vld [vmem:[#allocation22 + $0x128] sm:$0xff] }
 0x44f   :  { %1626 = vmatpush.msrb.mxu2 %v1434_v54  ;;  %v1430_v58 = vld [vmem:[#allocation22 + $0x1b8] sm:$0xff]  ;;  %1613 = vmatpush.msrb.mxu1 %v1382_v57  ;;  %v1467_v54 = vld [vmem:[#allocation22 + $0x2e0] sm:$0xff] }
 0x450   :  { %v1269_v47 = vmul.f32 0.0625, %v1261_v44  ;;  %v1252_v50 = vmul.f32 %v4880_v45, %v4880_v45  ;;  %v1254_v51 = vmul.f32 %v4883_v46, %v4883_v46  ;;  %v1278_v49 = vmul.f32 %v1274_v16, %v4880_v45 }
 0x451   :  { %1627 = vmatpush.msrb.mxu2 %v1432_v55  ;;  %1614 = vmatpush.msrb.mxu1 %v1380_v60  ;;  %v4905_v55 = vld [vmem:[#allocation5 + $0x8] sm:$0xff]  ;;  %v1461_v60 = vld [vmem:[#allocation22 + $0x2b0] sm:$0xff] }
 0x452   :  { %v1281_v52 = vadd.f32 1e-05, %v1269_v47  ;;  %v1262_v31 = vadd.f32 %v1254_v51, %v1252_v50  ;;  %v1280_v50 = vmul.f32 %v1274_v16, %v4883_v46  ;;  %v1310_v51 = vperm.slane %v4892_v19, 1  ;;  %v1463_v46 = vld [vmem:[#allocation22 + $0x2c0] sm:$0xff]  ;;  %v1485_v19 = vld [vmem:[#allocation22 + $0x370] sm:$0xff]  ;;  %v1450_v16 = vld [vmem:[#allocation22 + $0x258] sm:$0xff] }
 0x453   :  { %1628 = vmatpush.msrb.mxu2 %v1430_v58  ;;  %1615 = vmatpush.msrb.mxu1 %v1378_v62 }
 0x454   :  { %3609 = vrsqrt.f32 %v1281_v52  ;;  %v1263_v56 = vrot.slane %v1262_v31, 4  ;;  %vm1289_vm12 = vweird.f32 %v1281_v52 }
 0x455   :  { %1629 = vmatpush.msrb.mxu2 %v1428_v61  ;;  %1616 = vmatpush.msrb.mxu1 %v1376_v5  ;;  %v1499_v5 = vld [vmem:[#allocation22 + $0x3e0] sm:$0xff] }
 0x456   :  { %v1264_v59 = vadd.f32 %v1263_v56, %v1262_v31  ;;  %v1465_v56 = vld [vmem:[#allocation22 + $0x2d0] sm:$0xff] }
 0x457   :  { %1630 = vmatpush.msrb.mxu2 %v1426_v3  ;;  %v1501_v3 = vld [vmem:[#allocation22 + $0x3f0] sm:$0xff] }
 0x458   :  { %v1265_v63 = vrot.slane %v1264_v59, 2 }
 0x459   :  { %1631 = vmatpush.msrb.mxu2 %v1424_v9  ;;  %v1453_v9 = vld [vmem:[#allocation22 + $0x270] sm:$0xff] }
 0x45a   :  { %v3610_v4 = vpop.eup %3609  ;;  %v1266_v7 = vadd.f32 %v1265_v63, %v1264_v59  ;;  %v1459_v63 = vld [vmem:[#allocation22 + $0x2a0] sm:$0xff] }
 0x45b   :  { %v1284_v6 = vmul.f32 %v3610_v4, %v1281_v52  ;;  %1632 = vmatpush.msrb.mxu2 %v1422_v13  ;;  %vm1290_vm11 = vweird.f32 %v3610_v4  ;;  %v1449_v13 = vld [vmem:[#allocation22 + $0x250] sm:$0xff] }
 0x45c   :  { %v1267_v12 = vrot.slane %v1266_v7, 1  ;;  %vm1291_vm13 = vmor %vm1289_vm12, %vm1290_vm11 }
 0x45d   :  { %v1285_v11 = vmul.f32 %v3610_v4, %v1284_v6  ;;  %1633 = vmatpush.msrb.mxu2 %v1420_v1  ;;  %v1455_v6 = vld [vmem:[#allocation22 + $0x280] sm:$0xff]  ;;  %v1445_v1 = vld [vmem:[#allocation22 + $0x230] sm:$0xff] }
 0x45e   :  { %v1268_v17 = vadd.f32 %v1267_v12, %v1266_v7  ;;  %v1497_v7 = vld [vmem:[#allocation22 + $0x3d0] sm:$0xff] }
 0x45f   :  { %v1286_v14 = vmul.f32 0.5, %v1285_v11  ;;  %1634 = vmatpush.msrb.mxu2 %v1418_v21  ;;  %v1451_v11 = vld [vmem:[#allocation22 + $0x260] sm:$0xff]  ;;  %v1493_v12 = vld [vmem:[#allocation22 + $0x3b0] sm:$0xff] }
 0x460   :  { %v1270_v0 = vmul.f32 0.0625, %v1268_v17  ;;  %v1447_v17 = vld [vmem:[#allocation22 + $0x240] sm:$0xff]  ;;  %v1441_v21 = vld [vmem:[#allocation22 + $0x210] sm:$0xff] }
 0x461   :  { %v1287_v18 = vsub.f32 1.5, %v1286_v14  ;;  %1635 = vmatpush.msrb.mxu2 %v1416_v24  ;;  %v1491_v14 = vld [vmem:[#allocation22 + $0x3a0] sm:$0xff]  ;;  %v1481_v24 = vld [vmem:[#allocation22 + $0x350] sm:$0xff] }
 0x462   :  { %v1282_v23 = vadd.f32 1e-05, %v1270_v0  ;;  %v1443_v0 = vld [vmem:[#allocation22 + $0x220] sm:$0xff] }
 0x463   :  { %v1288_v22 = vmul.f32 %v3610_v4, %v1287_v18  ;;  %1636 = vmatpush.msrb.mxu2 %v1414_v33  ;;  %v1487_v18 = vld [vmem:[#allocation22 + $0x380] sm:$0xff]  ;;  %v1464_v33 = vld [vmem:[#allocation22 + $0x2c8] sm:$0xff] }
 0x464   :  { %3611 = vrsqrt.f32 %v1282_v23  ;;  %vm1299_vm2 = vweird.f32 %v1282_v23 }
 0x465   :  { %v1292_v28 = vsel %vm1291_vm13, %v3610_v4, %v1288_v22  ;;  %1637 = vmatpush.msrb.mxu2 %v1412_v36  ;;  %v1457_v4 = vld [vmem:[#allocation22 + $0x290] sm:$0xff]  ;;  %v1483_v22 = vld [vmem:[#allocation22 + $0x360] sm:$0xff] }
 0x466   :  { %v1303_v29 = vmul.f32 %v1292_v28, %v1277_v25  ;;  %v1305_v30 = vmul.f32 %v1292_v28, %v1279_v26  ;;  %v1470_v25 = vld [vmem:[#allocation22 + $0x2f8] sm:$0xff]  ;;  %v1479_v26 = vld [vmem:[#allocation22 + $0x340] sm:$0xff]  ;;  %v1477_v28 = vld [vmem:[#allocation22 + $0x330] sm:$0xff] }
 0x467   :  { %1638 = vmatpush.msrb.mxu2 %v1410_v37  ;;  %v1471_v36 = vld [vmem:[#allocation22 + $0x300] sm:$0xff]  ;;  %v1460_v37 = vld [vmem:[#allocation22 + $0x2a8] sm:$0xff] }
 0x468   :  { %v1315_v34 = vadd.f32 %v1309_v27, %v1305_v30  ;;  %v1313_v35 = vadd.f32 %v1309_v27, %v1303_v29  ;;  %v1468_v27 = vld [vmem:[#allocation22 + $0x2e8] sm:$0xff]  ;;  %v1466_v29 = vld [vmem:[#allocation22 + $0x2d8] sm:$0xff]  ;;  %v1475_v30 = vld [vmem:[#allocation22 + $0x320] sm:$0xff] }
 0x469   :  { %1639 = vmatpush.msrb.mxu2 %v1408_v39  ;;  %v1456_v39 = vld [vmem:[#allocation22 + $0x288] sm:$0xff] }
 0x46a   :  { %vm1319_vm14 = vcmp.gt.f32.partialorder %v1315_v34, 0.0  ;;  %v1323_v38 = vmul.f32 0.2, %v1315_v34  ;;  %vm1317_vm15 = vcmp.gt.f32.partialorder %v1313_v35, 0.0  ;;  %v1321_v2 = vmul.f32 0.2, %v1313_v35  ;;  %v3612_v8 = vpop.eup %3611 }
 0x46b   :  { %v1294_v40 = vmul.f32 %v3612_v8, %v1282_v23  ;;  %vm1300_vm1 = vweird.f32 %v3612_v8  ;;  %v1439_v23 = vld [vmem:[#allocation22 + $0x200] sm:$0xff] }
 0x46c   :  { %v1327_v41 = vsel %vm1319_vm14, %v1315_v34, %v1323_v38  ;;  %v1325_v42 = vsel %vm1317_vm15, %v1313_v35, %v1321_v2  ;;  %vm1301_vm3 = vmor %vm1299_vm2, %vm1300_vm1  ;;  %v1473_v34 = vld [vmem:[#allocation22 + $0x310] sm:$0xff]  ;;  %v1462_v35 = vld [vmem:[#allocation22 + $0x2b8] sm:$0xff] }
 0x46d   :  { %1343 = vmatpush.msrb.mxu3 %v1327_v41  ;;  %1525 = vmatmul.f32.vlgmr.msra.gmra.mxu1 %v1325_v42  ;;  %v1295_v43 = vmul.f32 %v3612_v8, %v1294_v40  ;;  %v1502_v38 = vld [vmem:[#allocation22 + $0x3f8] sm:$0xff] }
 0x46e   :  { %v1458_v2 = vld [vmem:[#allocation22 + $0x298] sm:$0xff] }
 0x46f   :  { %1344 = vmatpush.msrb.mxu3 %v1325_v42  ;;  %v1296_v44 = vmul.f32 0.5, %v1295_v43  ;;  %v1498_v40 = vld [vmem:[#allocation22 + $0x3d8] sm:$0xff]  ;;  %v1452_v43 = vld [vmem:[#allocation22 + $0x268] sm:$0xff] }
 0x470   :  { %3509 = vmatmul.msk.f32.vlgmr.msrb.gmra.mxu3 %vm557_vm0, %v4897_v15 }
 0x471   :  { %v1297_v47 = vsub.f32 1.5, %v1296_v44  ;;  %1555 = vmatpush.msra.mxu3 %v1469_v53  ;;  %v1494_v44 = vld [vmem:[#allocation22 + $0x3b8] sm:$0xff] }
 0x472   :  { %v1486_v53 = vld [vmem:[#allocation22 + $0x378] sm:$0xff] }
 0x473   :  { %v1298_v48 = vmul.f32 %v3612_v8, %v1297_v47  ;;  %1556 = vmatpush.msra.mxu3 %v1467_v54  ;;  %v1492_v47 = vld [vmem:[#allocation22 + $0x3a8] sm:$0xff]  ;;  %v1442_v54 = vld [vmem:[#allocation22 + $0x218] sm:$0xff] }
 0x475   :  { %1528 = vmatmul.f32.gmra.mxu1 %v1327_v41  ;;  %v1302_v52 = vsel %vm1301_vm3, %v3612_v8, %v1298_v48  ;;  %1557 = vmatpush.msra.mxu3 %v1465_v56  ;;  %v1500_v8 = vld [vmem:[#allocation22 + $0x3e8] sm:$0xff]  ;;  %v1482_v56 = vld [vmem:[#allocation22 + $0x358] sm:$0xff] }
 0x476   :  { %v1304_v31 = vmul.f32 %v1302_v52, %v1278_v49  ;;  %v1306_v32 = vmul.f32 %v1302_v52, %v1280_v50  ;;  %v1448_v48 = vld [vmem:[#allocation22 + $0x248] sm:$0xff]  ;;  %v1490_v49 = vld [vmem:[#allocation22 + $0x398] sm:$0xff] }
 0x477   :  { %1558 = vmatpush.msra.mxu3 %v1463_v46  ;;  %v1446_v50 = vld [vmem:[#allocation22 + $0x238] sm:$0xff]  ;;  %v1444_v52 = vld [vmem:[#allocation22 + $0x228] sm:$0xff] }
 0x478   :  { %3510 = vmatmul.msk.f32.gmra.mxu3 %vm557_vm0, %v4905_v55  ;;  %v1316_v57 = vadd.f32 %v1310_v51, %v1306_v32  ;;  %v1314_v45 = vadd.f32 %v1310_v51, %v1304_v31  ;;  %v1488_v51 = vld [vmem:[#allocation22 + $0x388] sm:$0xff] }
 0x479   :  { %1559 = vmatpush.msra.mxu3 %v1461_v60  ;;  %v1484_v31 = vld [vmem:[#allocation22 + $0x368] sm:$0xff] }
 0x47a   :  { %vm1320_vm4 = vcmp.gt.f32.partialorder %v1316_v57, 0.0  ;;  %v1324_v58 = vmul.f32 0.2, %v1316_v57  ;;  %vm1318_vm5 = vcmp.gt.f32.partialorder %v1314_v45, 0.0  ;;  %v1322_v59 = vmul.f32 0.2, %v1314_v45 }
 0x47b   :  { %1560 = vmatpush.msra.mxu3 %v1459_v63  ;;  %v1440_v32 = vld [vmem:[#allocation22 + $0x208] sm:$0xff] }
 0x47c   :  { %v1328_v61 = vsel %vm1320_vm4, %v1316_v57, %v1324_v58  ;;  %v1326_v62 = vsel %vm1318_vm5, %v1314_v45, %v1322_v59  ;;  %v1480_v57 = vld [vmem:[#allocation22 + $0x348] sm:$0xff]  ;;  %v1478_v45 = vld [vmem:[#allocation22 + $0x338] sm:$0xff] }
 0x47d   :  { %1617 = vmatmul.f32.vlgmr.msrb.gmra.mxu1 %v1325_v42  ;;  %1366 = vmatpush.msra.mxu0 %v1328_v61  ;;  %v1496_v42 = vld [vmem:[#allocation22 + $0x3c8] sm:$0xff]  ;;  %v1474_v58 = vld [vmem:[#allocation22 + $0x318] sm:$0xff] }
 0x47e   :  { %1548 = vmatmul.f32.vlgmr.msra.gmra.mxu2 %v1326_v62  ;;  %1561 = vmatpush.msra.mxu3 %v1457_v4  ;;  %v1476_v46 = vld [vmem:[#allocation22 + $0x328] sm:$0xff] }
 0x47f   :  { %1367 = vmatpush.msra.mxu0 %v1326_v62  ;;  %v1472_v59 = vld [vmem:[#allocation22 + $0x308] sm:$0xff] }
 0x480   :  { %3511 = vmatmul.msk.f32.vlgmr.msra.gmra.mxu0 %vm557_vm0, %v4897_v15  ;;  %1562 = vmatpush.msra.mxu3 %v1455_v6  ;;  %v1503_v6 = vld [vmem:[#allocation23] sm:$0x3] }
 0x481   :  { %1578 = vmatpush.msrb.mxu0 %v1501_v3 }
 0x482   :  { %1563 = vmatpush.msra.mxu3 %v1453_v9 }
 0x483   :  { %1579 = vmatpush.msrb.mxu0 %v1499_v5 }
 0x484   :  { %1564 = vmatpush.msra.mxu3 %v1451_v11 }
 0x485   :  { %1620 = vmatmul.f32.gmra.mxu1 %v1327_v41  ;;  %1580 = vmatpush.msrb.mxu0 %v1497_v7  ;;  %v1454_v41 = vld [vmem:[#allocation22 + $0x278] sm:$0xff] }
 0x486   :  { %1551 = vmatmul.f32.gmra.mxu2 %v1328_v61  ;;  %1565 = vmatpush.msra.mxu3 %v1449_v13 }
 0x487   :  { %1581 = vmatpush.msrb.mxu0 %v1495_v10  ;;  %v1505_v10 = vperm.slane %v1503_v6, 0 }
 0x488   :  { %3512 = vmatmul.msk.f32.gmra.mxu0 %vm557_vm0, %v4905_v55  ;;  %1566 = vmatpush.msra.mxu3 %v1447_v17 }
 0x489   :  { %1582 = vmatpush.msrb.mxu0 %v1493_v12 }
 0x48a   :  { %1567 = vmatpush.msra.mxu3 %v1445_v1 }
 0x48b   :  { %1583 = vmatpush.msrb.mxu0 %v1491_v14 }
 0x48c   :  { %1568 = vmatpush.msra.mxu3 %v1443_v0 }
 0x48d   :  { %1584 = vmatpush.msrb.mxu0 %v1489_v20 }
 0x48e   :  { %1640 = vmatmul.f32.vlgmr.msrb.gmra.mxu2 %v1326_v62  ;;  %1569 = vmatpush.msra.mxu3 %v1441_v21 }
 0x48f   :  { %1585 = vmatpush.msrb.mxu0 %v1487_v18 }
 0x490   :  { %1570 = vmatpush.msra.mxu3 %v1439_v23 }
 0x491   :  { %1586 = vmatpush.msrb.mxu0 %v1485_v19 }
 0x492   :  { %1647 = vmatpush.msrb.mxu3 %v1470_v25 }
 0x493   :  { %1587 = vmatpush.msrb.mxu0 %v1483_v22 }
 0x494   :  { %1648 = vmatpush.msrb.mxu3 %v1468_v27  ;;  %v1506_v27 = vperm.slane %v1503_v6, 1 }
 0x495   :  { %1588 = vmatpush.msrb.mxu0 %v1481_v24 }
 0x496   :  { %1643 = vmatmul.f32.gmra.mxu2 %v1328_v61  ;;  %1649 = vmatpush.msrb.mxu3 %v1466_v29 }
 0x497   :  { %1589 = vmatpush.msrb.mxu0 %v1479_v26 }
 0x498   :  { %1650 = vmatpush.msrb.mxu3 %v1464_v33 }
 0x499   :  { %1590 = vmatpush.msrb.mxu0 %v1477_v28 }
 0x49a   :  { %1651 = vmatpush.msrb.mxu3 %v1462_v35 }
 0x49b   :  { %1591 = vmatpush.msrb.mxu0 %v1475_v30 }
 0x49c   :  { %1652 = vmatpush.msrb.mxu3 %v1460_v37 }
 0x49d   :  { %1592 = vmatpush.msrb.mxu0 %v1473_v34 }
 0x49e   :  { %1653 = vmatpush.msrb.mxu3 %v1458_v2 }
 0x49f   :  { %1593 = vmatpush.msrb.mxu0 %v1471_v36 }
 0x4a0   :  { %1654 = vmatpush.msrb.mxu3 %v1456_v39 }
 0x4a1   :  { %1670 = vmatpush.msra.mxu0 %v1502_v38  ;;  %v1709_v38 = vld [vmem:[#allocation28] sm:$0x3] }
 0x4a2   :  { %1655 = vmatpush.msrb.mxu3 %v1454_v41 }
 0x4a3   :  { %1671 = vmatpush.msra.mxu0 %v1500_v8 }
 0x4a4   :  { %1656 = vmatpush.msrb.mxu3 %v1452_v43 }
 0x4a5   :  { %1672 = vmatpush.msra.mxu0 %v1498_v40 }
 0x4a6   :  { %1657 = vmatpush.msrb.mxu3 %v1450_v16 }
 0x4a7   :  { %1673 = vmatpush.msra.mxu0 %v1496_v42  ;;  %v1711_v42 = vperm.slane %v1709_v38, 0 }
 0x4a8   :  { %1658 = vmatpush.msrb.mxu3 %v1448_v48 }
 0x4a9   :  { %1674 = vmatpush.msra.mxu0 %v1494_v44 }
 0x4aa   :  { %1659 = vmatpush.msrb.mxu3 %v1446_v50 }
 0x4ab   :  { %1675 = vmatpush.msra.mxu0 %v1492_v47 }
 0x4ac   :  { %1660 = vmatpush.msrb.mxu3 %v1444_v52 }
 0x4ad   :  { %1676 = vmatpush.msra.mxu0 %v1490_v49 }
 0x4ae   :  { %1661 = vmatpush.msrb.mxu3 %v1442_v54 }
 0x4af   :  { %1677 = vmatpush.msra.mxu0 %v1488_v51 }
 0x4b0   :  { %1662 = vmatpush.msrb.mxu3 %v1440_v32 }
 0x4b1   :  { %1678 = vmatpush.msra.mxu0 %v1486_v53 }
 0x4b3   :  { %1679 = vmatpush.msra.mxu0 %v1484_v31 }
 0x4b5   :  { %1680 = vmatpush.msra.mxu0 %v1482_v56 }
 0x4b7   :  { %1681 = vmatpush.msra.mxu0 %v1480_v57 }
 0x4b9   :  { %1682 = vmatpush.msra.mxu0 %v1478_v45 }
 0x4bb   :  { %1683 = vmatpush.msra.mxu0 %v1476_v46 }
 0x4bd   :  { %1684 = vmatpush.msra.mxu0 %v1474_v58 }
 0x4bf   :  { %1685 = vmatpush.msra.mxu0 %v1472_v59 }
 0x4ea   :  { %v1526_v3 = vpop.f32.mrf.mxu1 }
 0x4eb   :  { %v1527_v12 = vadd.f32 %v1526_v3, %v1505_v10 }
 0x4f2   :  { %v1529_v7 = vpop.f32.mrf.mxu1 }
 0x4f3   :  { %v1346_v60 = vpop.f32.mrf.mxu3  ;;  %v1530_v13 = vadd.f32 %v1529_v7, %v1505_v10 }
 0x4f4   :  { %1571 = vmatmul.f32.vlgmr.msra.gmra.mxu3 %v1346_v60 }
 0x4fa   :  { %v1618_v1 = vpop.f32.mrf.mxu1 }
 0x4fb   :  { %v1349_v61 = vpop.f32.mrf.mxu3  ;;  %v1619_v35 = vadd.f32 %v1618_v1, %v1506_v27 }
 0x4fc   :  { %1574 = vmatmul.f32.gmra.mxu3 %v1349_v61 }
 0x4fd   :  { %v1369_v62 = vpop.f32.mrf.mxu0 }
 0x4fe   :  { %1594 = vmatmul.f32.vlgmr.msrb.gmra.mxu0 %v1369_v62 }
 0x501   :  { %v1549_v4 = vpop.f32.mrf.mxu2 }
 0x502   :  { %v1550_v17 = vadd.f32 %v1549_v4, %v1527_v12  ;;  %v1621_v29 = vpop.f32.mrf.mxu1 }
 0x503   :  { %v1622_v36 = vadd.f32 %v1621_v29, %v1506_v27 }
 0x504   :  { %1663 = vmatmul.f32.vlgmr.msrb.gmra.mxu3 %v1346_v60 }
 0x505   :  { %v1372_v63 = vpop.f32.mrf.mxu0 }
 0x506   :  { %1597 = vmatmul.f32.gmra.mxu0 %v1372_v63 }
 0x509   :  { %v1552_v9 = vpop.f32.mrf.mxu2 }
 0x50a   :  { %v1553_v20 = vadd.f32 %v1552_v9, %v1530_v13 }
 0x50c   :  { %1666 = vmatmul.f32.gmra.mxu3 %v1349_v61 }
 0x50e   :  { %1686 = vmatmul.f32.vlgmr.msra.gmra.mxu0 %v1369_v62 }
 0x511   :  { %v1641_v19 = vpop.f32.mrf.mxu2 }
 0x512   :  { %v1642_v8 = vadd.f32 %v1641_v19, %v1619_v35 }
 0x516   :  { %1689 = vmatmul.f32.gmra.mxu0 %v1372_v63  ;;  %v1712_v63 = vperm.slane %v1709_v38, 1 }
 0x519   :  { %v1644_v34 = vpop.f32.mrf.mxu2 }
 0x51a   :  { %v1645_v39 = vadd.f32 %v1644_v34, %v1622_v36  ;;  %v1779_v34 = vld [vmem:[#allocation26] sm:$0x3] }
 0x577   :  { %v1572_v5 = vpop.f32.mrf.mxu3 }
 0x578   :  { %v1573_v18 = vadd.f32 %v1572_v5, %v1550_v17 }
 0x57b   :  { %v1595_v11 = vpop.f32.mrf.mxu0 }
 0x57c   :  { %v1596_v22 = vadd.f32 %v1595_v11, %v1573_v18 }
 0x57f   :  { %v1575_v14 = vpop.f32.mrf.mxu3 }
 0x580   :  { %v1576_v0 = vadd.f32 %v1575_v14, %v1553_v20 }
 0x583   :  { %v1598_v21 = vpop.f32.mrf.mxu0 }
 0x584   :  { %v1599_v23 = vadd.f32 %v1598_v21, %v1576_v0 }
 0x586   :  { %v1693_v24 = vadd.f32 %v1599_v23, %v1596_v22 }
 0x587   :  { %v1664_v25 = vpop.f32.mrf.mxu3 }
 0x588   :  { %v1694_v26 = vrot.slane %v1693_v24, 4  ;;  %v1665_v43 = vadd.f32 %v1664_v25, %v1642_v8 }
 0x58a   :  { %v1695_v28 = vadd.f32 %v1694_v26, %v1693_v24  ;;  %v1743_v24 = vld [vmem:[#allocation25] sm:$0x3] }
 0x58b   :  { %v1687_v30 = vpop.f32.mrf.mxu0  ;;  %v1745_v29 = vperm.slane %v1743_v24, 0 }
 0x58c   :  { %v1696_v33 = vrot.slane %v1695_v28, 2  ;;  %v1688_v48 = vadd.f32 %v1687_v30, %v1665_v43 }
 0x58e   :  { %v1697_v37 = vadd.f32 %v1696_v33, %v1695_v28 }
 0x58f   :  { %v1667_v2 = vpop.f32.mrf.mxu3 }
 0x590   :  { %v1698_v40 = vrot.slane %v1697_v37, 1  ;;  %v1668_v44 = vadd.f32 %v1667_v2, %v1645_v39  ;;  %v1781_v2 = vperm.slane %v1779_v34, 0 }
 0x592   :  { %v1699_v41 = vadd.f32 %v1698_v40, %v1697_v37 }
 0x593   :  { %v1690_v16 = vpop.f32.mrf.mxu0 }
 0x594   :  { %v1707_v47 = vmul.f32 0.0625, %v1699_v41  ;;  %v1691_v49 = vadd.f32 %v1690_v16, %v1668_v44 }
 0x596   :  { %v1715_v50 = vmul.f32 %v1711_v42, %v1707_v47  ;;  %v1700_v51 = vadd.f32 %v1691_v49, %v1688_v48 }
 0x598   :  { %v1717_v52 = vperm.slane %v1715_v50, 0  ;;  %v1701_v53 = vrot.slane %v1700_v51, 4 }
 0x59a   :  { %v1719_v54 = vsub.f32 %v1596_v22, %v1717_v52  ;;  %v1721_v31 = vsub.f32 %v1599_v23, %v1717_v52  ;;  %v1702_v32 = vadd.f32 %v1701_v53, %v1700_v51  ;;  %v1746_v52 = vperm.slane %v1743_v24, 1  ;;  %v2027_v24 = vld [vmem:[#allocation29 + $0x90] sm:$0xff] }
 0x59c   :  { %v1723_v56 = vmul.f32 %v1719_v54, %v1719_v54  ;;  %v1725_v57 = vmul.f32 %v1721_v31, %v1721_v31  ;;  %v1703_v45 = vrot.slane %v1702_v32, 2  ;;  %v1749_v37 = vmul.f32 %v1745_v29, %v1719_v54 }
 0x59d   :  { %v1751_v38 = vmul.f32 %v1745_v29, %v1721_v31  ;;  %v2071_v29 = vld [vmem:[#allocation29 + $0x1f0] sm:$0xff] }
 0x59e   :  { %v1727_v46 = vadd.f32 %v1725_v57, %v1723_v56  ;;  %v1704_v58 = vadd.f32 %v1703_v45, %v1702_v32  ;;  %v1782_v56 = vperm.slane %v1779_v34, 1  ;;  %v2019_v34 = vld [vmem:[#allocation29 + $0x50] sm:$0xff] }
 0x5a0   :  { %v1728_v59 = vrot.slane %v1727_v46, 4  ;;  %v1705_v60 = vrot.slane %v1704_v58, 1 }
 0x5a2   :  { %v1729_v61 = vadd.f32 %v1728_v59, %v1727_v46  ;;  %v1706_v62 = vadd.f32 %v1705_v60, %v1704_v58 }
 0x5a4   :  { %v1730_v3 = vrot.slane %v1729_v61, 2  ;;  %v1708_v4 = vmul.f32 0.0625, %v1706_v62 }
 0x5a6   :  { %v1731_v5 = vadd.f32 %v1730_v3, %v1729_v61  ;;  %v1716_v6 = vmul.f32 %v1712_v63, %v1708_v4 }
 0x5a8   :  { %v1732_v7 = vrot.slane %v1731_v5, 1  ;;  %v1718_v9 = vperm.slane %v1716_v6, 0 }
 0x5aa   :  { %v1733_v10 = vadd.f32 %v1732_v7, %v1731_v5  ;;  %v1720_v11 = vsub.f32 %v1688_v48, %v1718_v9  ;;  %v1722_v12 = vsub.f32 %v1691_v49, %v1718_v9 }
 0x5ac   :  { %v1741_v13 = vmul.f32 0.0625, %v1733_v10  ;;  %v1724_v14 = vmul.f32 %v1720_v11, %v1720_v11  ;;  %v1726_v17 = vmul.f32 %v1722_v12, %v1722_v12  ;;  %v1750_v31 = vmul.f32 %v1746_v52, %v1720_v11 }
 0x5ad   :  { %v1752_v32 = vmul.f32 %v1746_v52, %v1722_v12  ;;  %v2051_v52 = vld [vmem:[#allocation29 + $0x150] sm:$0xff] }
 0x5ae   :  { %v1753_v20 = vadd.f32 1e-05, %v1741_v13  ;;  %v1734_v1 = vadd.f32 %v1726_v17, %v1724_v14  ;;  %v2039_v14 = vld [vmem:[#allocation29 + $0xf0] sm:$0xff]  ;;  %v2037_v17 = vld [vmem:[#allocation29 + $0xe0] sm:$0xff] }
 0x5b0   :  { %3613 = vrsqrt.f32 %v1753_v20  ;;  %v1735_v18 = vrot.slane %v1734_v1, 4  ;;  %vm1761_vm7 = vweird.f32 %v1753_v20 }
 0x5b2   :  { %v1736_v0 = vadd.f32 %v1735_v18, %v1734_v1  ;;  %v2035_v1 = vld [vmem:[#allocation29 + $0xd0] sm:$0xff]  ;;  %v2033_v18 = vld [vmem:[#allocation29 + $0xc0] sm:$0xff] }
 0x5b4   :  { %v1737_v19 = vrot.slane %v1736_v0, 2 }
 0x5b6   :  { %v3614_v21 = vpop.eup %3613  ;;  %v1738_v23 = vadd.f32 %v1737_v19, %v1736_v0  ;;  %v2031_v0 = vld [vmem:[#allocation29 + $0xb0] sm:$0xff]  ;;  %v2029_v19 = vld [vmem:[#allocation29 + $0xa0] sm:$0xff] }
 0x5b7   :  { %v1756_v22 = vmul.f32 %v3614_v21, %v1753_v20  ;;  %vm1762_vm6 = vweird.f32 %v3614_v21 }
 0x5b8   :  { %v1739_v26 = vrot.slane %v1738_v23, 1  ;;  %vm1763_vm8 = vmor %vm1761_vm7, %vm1762_vm6 }
 0x5b9   :  { %v1757_v25 = vmul.f32 %v3614_v21, %v1756_v22 }
 0x5ba   :  { %v1740_v28 = vadd.f32 %v1739_v26, %v1738_v23  ;;  %v2025_v26 = vld [vmem:[#allocation29 + $0x80] sm:$0xff] }
 0x5bb   :  { %v1758_v27 = vmul.f32 0.5, %v1757_v25 }
 0x5bc   :  { %v1742_v33 = vmul.f32 0.0625, %v1740_v28  ;;  %v2023_v28 = vld [vmem:[#allocation29 + $0x70] sm:$0xff] }
 0x5bd   :  { %v1759_v30 = vsub.f32 1.5, %v1758_v27 }
 0x5be   :  { %v1754_v36 = vadd.f32 1e-05, %v1742_v33  ;;  %v2069_v33 = vld [vmem:[#allocation29 + $0x1e0] sm:$0xff] }
 0x5bf   :  { %v1760_v35 = vmul.f32 %v3614_v21, %v1759_v30  ;;  %v2021_v30 = vld [vmem:[#allocation29 + $0x60] sm:$0xff] }
 0x5c0   :  { %3615 = vrsqrt.f32 %v1754_v36  ;;  %vm1771_vm12 = vweird.f32 %v1754_v36 }
 0x5c1   :  { %v1764_v8 = vsel %vm1763_vm8, %v3614_v21, %v1760_v35  ;;  %v2067_v35 = vld [vmem:[#allocation29 + $0x1d0] sm:$0xff] }
 0x5c2   :  { %v1775_v39 = vmul.f32 %v1764_v8, %v1749_v37  ;;  %v1777_v40 = vmul.f32 %v1764_v8, %v1751_v38  ;;  %v2065_v37 = vld [vmem:[#allocation29 + $0x1c0] sm:$0xff]  ;;  %v2015_v38 = vld [vmem:[#allocation29 + $0x30] sm:$0xff] }
 0x5c3   :  { %v2013_v8 = vld [vmem:[#allocation29 + $0x20] sm:$0xff] }
 0x5c4   :  { %v1787_v41 = vadd.f32 %v1781_v2, %v1777_v40  ;;  %v1785_v42 = vadd.f32 %v1781_v2, %v1775_v39  ;;  %v2063_v2 = vld [vmem:[#allocation29 + $0x1b0] sm:$0xff]  ;;  %v2061_v39 = vld [vmem:[#allocation29 + $0x1a0] sm:$0xff] }
 0x5c5   :  { %v2011_v40 = vld [vmem:[#allocation29 + $0x10] sm:$0xff] }
 0x5c6   :  { %vm1791_vm9 = vcmp.gt.f32.partialorder %v1787_v41, 0.0  ;;  %v1795_v43 = vmul.f32 0.2, %v1787_v41  ;;  %v1793_v44 = vmul.f32 0.2, %v1785_v42  ;;  %v3616_v16 = vpop.eup %3615  ;;  %vm1789_vm10 = vcmp.gt.f32.partialorder %v1785_v42, 0.0 }
 0x5c7   :  { %v1766_v47 = vmul.f32 %v3616_v16, %v1754_v36  ;;  %vm1772_vm11 = vweird.f32 %v3616_v16  ;;  %v2017_v36 = vld [vmem:[#allocation29 + $0x40] sm:$0xff] }
 0x5c8   :  { %v4913_v48 = vsel %vm1791_vm9, %v1787_v41, %v1795_v43  ;;  %v4916_v50 = vsel %vm1789_vm10, %v1785_v42, %v1793_v44  ;;  %vm1773_vm13 = vmor %vm1771_vm12, %vm1772_vm11  ;;  %v2059_v41 = vld [vmem:[#allocation29 + $0x190] sm:$0xff]  ;;  %v2009_v42 = vld [vmem:[#allocation29] sm:$0xff] }
 0x5c9   :  { %1815 = vmatpush.msra.mxu1 %v4913_v48  ;;  %v1767_v49 = vmul.f32 %v3616_v16, %v1766_v47  ;;  %v2057_v43 = vld [vmem:[#allocation29 + $0x180] sm:$0xff]  ;;  %v2167_v44 = vld [vmem:[#allocation29 + $0x4f0] sm:$0xff] }
 0x5ca   :  { %v2165_v47 = vld [vmem:[#allocation29 + $0x4e0] sm:$0xff] }
 0x5cb   :  { %1816 = vmatpush.msra.mxu1 %v4916_v50  ;;  %v1768_v51 = vmul.f32 0.5, %v1767_v49  ;;  %v2053_v49 = vld [vmem:[#allocation29 + $0x160] sm:$0xff] }
 0x5cc   :  { %3513 = vmatmul.msk.f32.vlgmr.msra.gmra.mxu1 %vm557_vm0, %v4897_v15 }
 0x5cd   :  { %v1769_v53 = vsub.f32 1.5, %v1768_v51  ;;  %v2163_v51 = vld [vmem:[#allocation29 + $0x4d0] sm:$0xff] }
 0x5cf   :  { %v1770_v54 = vmul.f32 %v3616_v16, %v1769_v53  ;;  %v2161_v53 = vld [vmem:[#allocation29 + $0x4c0] sm:$0xff] }
 0x5d1   :  { %v1774_v57 = vsel %vm1773_vm13, %v3616_v16, %v1770_v54  ;;  %v2055_v16 = vld [vmem:[#allocation29 + $0x170] sm:$0xff]  ;;  %v2049_v54 = vld [vmem:[#allocation29 + $0x140] sm:$0xff] }
 0x5d2   :  { %v1776_v45 = vmul.f32 %v1774_v57, %v1750_v31  ;;  %v1778_v46 = vmul.f32 %v1774_v57, %v1752_v32  ;;  %v2159_v31 = vld [vmem:[#allocation29 + $0x4b0] sm:$0xff]  ;;  %v2045_v57 = vld [vmem:[#allocation29 + $0x120] sm:$0xff] }
 0x5d3   :  { %v2047_v32 = vld [vmem:[#allocation29 + $0x130] sm:$0xff] }
 0x5d4   :  { %3514 = vmatmul.msk.f32.gmra.mxu1 %vm557_vm0, %v4905_v55  ;;  %v1788_v58 = vadd.f32 %v1782_v56, %v1778_v46  ;;  %v1786_v59 = vadd.f32 %v1782_v56, %v1776_v45  ;;  %v2157_v56 = vld [vmem:[#allocation29 + $0x4a0] sm:$0xff]  ;;  %v2155_v45 = vld [vmem:[#allocation29 + $0x490] sm:$0xff] }
 0x5d5   :  { %v2043_v46 = vld [vmem:[#allocation29 + $0x110] sm:$0xff] }
 0x5d6   :  { %vm1792_vm14 = vcmp.gt.f32.partialorder %v1788_v58, 0.0  ;;  %v1796_v60 = vmul.f32 0.2, %v1788_v58  ;;  %v1794_v61 = vmul.f32 0.2, %v1786_v59  ;;  %vm1790_vm15 = vcmp.gt.f32.partialorder %v1786_v59, 0.0 }
 0x5d8   :  { %v4923_v62 = vsel %vm1792_vm14, %v1788_v58, %v1796_v60  ;;  %v4926_v63 = vsel %vm1790_vm15, %v1786_v59, %v1794_v61  ;;  %v2153_v58 = vld [vmem:[#allocation29 + $0x480] sm:$0xff]  ;;  %v2151_v60 = vld [vmem:[#allocation29 + $0x470] sm:$0xff] }
 0x5d9   :  { %1838 = vmatpush.msra.mxu2 %v4923_v62  ;;  %v2041_v59 = vld [vmem:[#allocation29 + $0x100] sm:$0xff]  ;;  %v2199_v61 = vld [vmem:[#allocation29 + $0x5f0] sm:$0xff] }
 0x5db   :  { %1839 = vmatpush.msra.mxu2 %v4926_v63 }
 0x5dc   :  { %3515 = vmatmul.msk.f32.vlgmr.msra.gmra.mxu2 %vm557_vm0, %v4897_v15 }
 0x5e4   :  { %3516 = vmatmul.msk.f32.gmra.mxu2 %vm557_vm0, %v4905_v55 }
 0x649   :  { %v4933_v3 = vpop.f32.mrf.mxu1 }
 0x651   :  { %v4935_v4 = vpop.f32.mrf.mxu1 }
 0x652   :  { %1861 = vmatpush.msra.mxu3 %v4935_v4 }
 0x654   :  { %1862 = vmatpush.msra.mxu3 %v4933_v3 }
 0x655   :  { %3517 = vmatmul.msk.f32.vlgmr.msra.gmra.mxu3 %vm557_vm0, %v4897_v15 }
 0x65d   :  { %3518 = vmatmul.msk.f32.gmra.mxu3 %vm557_vm0, %v4905_v55 }
 0x65f   :  { %v4943_v5 = vpop.f32.mrf.mxu2 }
 0x667   :  { %v4945_v6 = vpop.f32.mrf.mxu2 }
 0x668   :  { %1884 = vmatpush.msrb.mxu0 %v4945_v6 }
 0x66a   :  { %1885 = vmatpush.msrb.mxu0 %v4943_v5 }
 0x66b   :  { %3519 = vmatmul.msk.f32.vlgmr.msrb.gmra.mxu0 %vm557_vm0, %v4897_v15 }
 0x673   :  { %3520 = vmatmul.msk.f32.gmra.mxu0 %vm557_vm0, %v4905_v55 }
 0x6d8   :  { %v1864_v7 = vpop.f32.mrf.mxu3 }
 0x6d9   :  { %v1893_v10 = vmul.f32 2.0, %v1864_v7  ;;  %v2149_v7 = vld [vmem:[#allocation29 + $0x460] sm:$0xff] }
 0x6db   :  { %v4957_v13 = vsub.f32 %v1893_v10, %v4916_v50  ;;  %v2147_v10 = vld [vmem:[#allocation29 + $0x450] sm:$0xff] }
 0x6e0   :  { %v1867_v9 = vpop.f32.mrf.mxu3 }
 0x6e1   :  { %v1895_v11 = vmul.f32 2.0, %v1867_v9  ;;  %v2197_v9 = vld [vmem:[#allocation29 + $0x5e0] sm:$0xff] }
 0x6e3   :  { %v4954_v12 = vsub.f32 %v1895_v11, %v4913_v48  ;;  %v2195_v11 = vld [vmem:[#allocation29 + $0x5d0] sm:$0xff] }
 0x6e5   :  { %1915 = vmatpush.msrb.mxu1 %v4954_v12 }
 0x6e7   :  { %1916 = vmatpush.msrb.mxu1 %v4957_v13 }
 0x6e8   :  { %3521 = vmatmul.msk.f32.vlgmr.msrb.gmra.mxu1 %vm557_vm0, %v4897_v15  ;;  %v1887_v20 = vpop.f32.mrf.mxu0 }
 0x6e9   :  { %2335 = vmatpush.msra.mxu1 %v2039_v14  ;;  %v1894_v22 = vmul.f32 2.0, %v1887_v20  ;;  %v2145_v14 = vld [vmem:[#allocation29 + $0x440] sm:$0xff]  ;;  %v2143_v20 = vld [vmem:[#allocation29 + $0x430] sm:$0xff] }
 0x6eb   :  { %2336 = vmatpush.msra.mxu1 %v2037_v17  ;;  %v4969_v27 = vsub.f32 %v1894_v22, %v4926_v63  ;;  %v2193_v17 = vld [vmem:[#allocation29 + $0x5c0] sm:$0xff] }
 0x6ec   :  { %v2137_v22 = vld [vmem:[#allocation29 + $0x400] sm:$0xff] }
 0x6ed   :  { %2337 = vmatpush.msra.mxu1 %v2035_v1  ;;  %v2191_v1 = vld [vmem:[#allocation29 + $0x5b0] sm:$0xff] }
 0x6ef   :  { %2338 = vmatpush.msra.mxu1 %v2033_v18  ;;  %v2141_v18 = vld [vmem:[#allocation29 + $0x420] sm:$0xff] }
 0x6f0   :  { %3522 = vmatmul.msk.f32.gmra.mxu1 %vm557_vm0, %v4905_v55  ;;  %v1890_v21 = vpop.f32.mrf.mxu0 }
 0x6f1   :  { %2339 = vmatpush.msra.mxu1 %v2031_v0  ;;  %v1896_v23 = vmul.f32 2.0, %v1890_v21  ;;  %v2189_v0 = vld [vmem:[#allocation29 + $0x5a0] sm:$0xff]  ;;  %v2187_v21 = vld [vmem:[#allocation29 + $0x590] sm:$0xff] }
 0x6f3   :  { %2340 = vmatpush.msra.mxu1 %v2029_v19  ;;  %v4966_v25 = vsub.f32 %v1896_v23, %v4923_v62  ;;  %v2139_v19 = vld [vmem:[#allocation29 + $0x410] sm:$0xff]  ;;  %v2185_v23 = vld [vmem:[#allocation29 + $0x580] sm:$0xff] }
 0x6f5   :  { %2341 = vmatpush.msra.mxu1 %v2027_v24  ;;  %1938 = vmatpush.msrb.mxu2 %v4966_v25  ;;  %v2183_v24 = vld [vmem:[#allocation29 + $0x570] sm:$0xff] }
 0x6f7   :  { %2342 = vmatpush.msra.mxu1 %v2025_v26  ;;  %1939 = vmatpush.msrb.mxu2 %v4969_v27  ;;  %v2181_v26 = vld [vmem:[#allocation29 + $0x560] sm:$0xff] }
 0x6f8   :  { %3523 = vmatmul.msk.f32.vlgmr.msrb.gmra.mxu2 %vm557_vm0, %v4897_v15 }
 0x6f9   :  { %2343 = vmatpush.msra.mxu1 %v2023_v28  ;;  %2358 = vmatpush.msra.mxu2 %v2071_v29  ;;  %v2179_v28 = vld [vmem:[#allocation29 + $0x550] sm:$0xff]  ;;  %v2177_v29 = vld [vmem:[#allocation29 + $0x540] sm:$0xff] }
 0x6fb   :  { %2344 = vmatpush.msra.mxu1 %v2021_v30  ;;  %2359 = vmatpush.msra.mxu2 %v2069_v33  ;;  %v2175_v30 = vld [vmem:[#allocation29 + $0x530] sm:$0xff]  ;;  %v2173_v33 = vld [vmem:[#allocation29 + $0x520] sm:$0xff] }
 0x6fd   :  { %2345 = vmatpush.msra.mxu1 %v2019_v34  ;;  %2360 = vmatpush.msra.mxu2 %v2067_v35  ;;  %v2171_v34 = vld [vmem:[#allocation29 + $0x510] sm:$0xff]  ;;  %v2169_v35 = vld [vmem:[#allocation29 + $0x500] sm:$0xff] }
 0x6ff   :  { %2346 = vmatpush.msra.mxu1 %v2017_v36  ;;  %2361 = vmatpush.msra.mxu2 %v2065_v37 }
 0x700   :  { %3524 = vmatmul.msk.f32.gmra.mxu2 %vm557_vm0, %v4905_v55 }
 0x701   :  { %2347 = vmatpush.msra.mxu1 %v2015_v38  ;;  %2362 = vmatpush.msra.mxu2 %v2063_v2 }
 0x703   :  { %2348 = vmatpush.msra.mxu1 %v2013_v8  ;;  %2363 = vmatpush.msra.mxu2 %v2061_v39 }
 0x705   :  { %2349 = vmatpush.msra.mxu1 %v2011_v40  ;;  %2364 = vmatpush.msra.mxu2 %v2059_v41  ;;  %v2103_v40 = vld [vmem:[#allocation29 + $0x2f0] sm:$0xff]  ;;  %v2101_v41 = vld [vmem:[#allocation29 + $0x2e0] sm:$0xff] }
 0x707   :  { %2350 = vmatpush.msra.mxu1 %v2009_v42  ;;  %2365 = vmatpush.msra.mxu2 %v2057_v43  ;;  %v2099_v42 = vld [vmem:[#allocation29 + $0x2d0] sm:$0xff]  ;;  %v2097_v43 = vld [vmem:[#allocation29 + $0x2c0] sm:$0xff] }
 0x708   :  { %2351 = vmatmul.f32.vlgmr.msra.gmra.mxu1 %v4916_v50 }
 0x709   :  { %2427 = vmatpush.msrb.mxu1 %v2167_v44  ;;  %2366 = vmatpush.msra.mxu2 %v2055_v16  ;;  %v2095_v44 = vld [vmem:[#allocation29 + $0x2b0] sm:$0xff] }
 0x70b   :  { %2428 = vmatpush.msrb.mxu1 %v2165_v47  ;;  %2367 = vmatpush.msra.mxu2 %v2053_v49  ;;  %v2093_v47 = vld [vmem:[#allocation29 + $0x2a0] sm:$0xff]  ;;  %v2091_v49 = vld [vmem:[#allocation29 + $0x290] sm:$0xff] }
 0x70d   :  { %2429 = vmatpush.msrb.mxu1 %v2163_v51  ;;  %2368 = vmatpush.msra.mxu2 %v2051_v52  ;;  %v2089_v51 = vld [vmem:[#allocation29 + $0x280] sm:$0xff]  ;;  %v2087_v52 = vld [vmem:[#allocation29 + $0x270] sm:$0xff] }
 0x70f   :  { %2430 = vmatpush.msrb.mxu1 %v2161_v53  ;;  %2369 = vmatpush.msra.mxu2 %v2049_v54 }
 0x710   :  { %2354 = vmatmul.f32.gmra.mxu1 %v4913_v48 }
 0x711   :  { %2431 = vmatpush.msrb.mxu1 %v2159_v31  ;;  %2370 = vmatpush.msra.mxu2 %v2047_v32  ;;  %v2085_v31 = vld [vmem:[#allocation29 + $0x260] sm:$0xff] }
 0x713   :  { %2432 = vmatpush.msrb.mxu1 %v2157_v56  ;;  %2371 = vmatpush.msra.mxu2 %v2045_v57  ;;  %v2083_v56 = vld [vmem:[#allocation29 + $0x250] sm:$0xff]  ;;  %v2081_v57 = vld [vmem:[#allocation29 + $0x240] sm:$0xff] }
 0x715   :  { %2433 = vmatpush.msrb.mxu1 %v2155_v45  ;;  %2372 = vmatpush.msra.mxu2 %v2043_v46  ;;  %v2135_v45 = vld [vmem:[#allocation29 + $0x3f0] sm:$0xff] }
 0x716   :  { %v2079_v46 = vld [vmem:[#allocation29 + $0x230] sm:$0xff] }
 0x717   :  { %2434 = vmatpush.msrb.mxu1 %v2153_v58  ;;  %2373 = vmatpush.msra.mxu2 %v2041_v59  ;;  %v3623_v58 = vld [vmem:[#allocation5] sm:$0xff]  ;;  %v2133_v59 = vld [vmem:[#allocation29 + $0x3e0] sm:$0xff] }
 0x718   :  { %2374 = vmatmul.f32.vlgmr.msra.gmra.mxu2 %v4926_v63 }
 0x719   :  { %2435 = vmatpush.msrb.mxu1 %v2151_v60  ;;  %2450 = vmatpush.msrb.mxu2 %v2199_v61  ;;  %v2077_v60 = vld [vmem:[#allocation29 + $0x220] sm:$0xff]  ;;  %v2131_v61 = vld [vmem:[#allocation29 + $0x3d0] sm:$0xff] }
 0x71b   :  { %2436 = vmatpush.msrb.mxu1 %v2149_v7  ;;  %2451 = vmatpush.msrb.mxu2 %v2197_v9  ;;  %v2075_v7 = vld [vmem:[#allocation29 + $0x210] sm:$0xff]  ;;  %v2129_v9 = vld [vmem:[#allocation29 + $0x3c0] sm:$0xff] }
 0x71d   :  { %2437 = vmatpush.msrb.mxu1 %v2147_v10  ;;  %2452 = vmatpush.msrb.mxu2 %v2195_v11  ;;  %v2073_v10 = vld [vmem:[#allocation29 + $0x200] sm:$0xff]  ;;  %v2127_v11 = vld [vmem:[#allocation29 + $0x3b0] sm:$0xff] }
 0x71f   :  { %2438 = vmatpush.msrb.mxu1 %v2145_v14  ;;  %2453 = vmatpush.msrb.mxu2 %v2193_v17  ;;  %v2231_v14 = vld [vmem:[#allocation29 + $0x6f0] sm:$0xff]  ;;  %v3624_v17 = vld [vmem:[#allocation5 + $0x8] sm:$0xff] }
 0x720   :  { %2377 = vmatmul.f32.gmra.mxu2 %v4923_v62 }
 0x721   :  { %2439 = vmatpush.msrb.mxu1 %v2143_v20  ;;  %2454 = vmatpush.msrb.mxu2 %v2191_v1  ;;  %v2125_v20 = vld [vmem:[#allocation29 + $0x3a0] sm:$0xff] }
 0x722   :  { %v2229_v1 = vld [vmem:[#allocation29 + $0x6e0] sm:$0xff] }
 0x723   :  { %2440 = vmatpush.msrb.mxu1 %v2141_v18  ;;  %2455 = vmatpush.msrb.mxu2 %v2189_v0  ;;  %v2123_v18 = vld [vmem:[#allocation29 + $0x390] sm:$0xff] }
 0x724   :  { %v2227_v0 = vld [vmem:[#allocation29 + $0x6d0] sm:$0xff] }
 0x725   :  { %2441 = vmatpush.msrb.mxu1 %v2139_v19  ;;  %2456 = vmatpush.msrb.mxu2 %v2187_v21  ;;  %v2121_v19 = vld [vmem:[#allocation29 + $0x380] sm:$0xff] }
 0x726   :  { %v2225_v21 = vld [vmem:[#allocation29 + $0x6c0] sm:$0xff] }
 0x727   :  { %2442 = vmatpush.msrb.mxu1 %v2137_v22  ;;  %2457 = vmatpush.msrb.mxu2 %v2185_v23  ;;  %v2119_v22 = vld [vmem:[#allocation29 + $0x370] sm:$0xff] }
 0x728   :  { %2443 = vmatmul.f32.vlgmr.msrb.gmra.mxu1 %v4957_v13  ;;  %v2223_v23 = vld [vmem:[#allocation29 + $0x6b0] sm:$0xff] }
 0x729   :  { %2458 = vmatpush.msrb.mxu2 %v2183_v24  ;;  %v2117_v24 = vld [vmem:[#allocation29 + $0x360] sm:$0xff] }
 0x72b   :  { %2459 = vmatpush.msrb.mxu2 %v2181_v26  ;;  %v2221_v26 = vld [vmem:[#allocation29 + $0x6a0] sm:$0xff] }
 0x72d   :  { %2460 = vmatpush.msrb.mxu2 %v2179_v28  ;;  %v2115_v28 = vld [vmem:[#allocation29 + $0x350] sm:$0xff] }
 0x72f   :  { %2461 = vmatpush.msrb.mxu2 %v2177_v29  ;;  %v2219_v29 = vld [vmem:[#allocation29 + $0x690] sm:$0xff] }
 0x730   :  { %2446 = vmatmul.f32.gmra.mxu1 %v4954_v12 }
 0x731   :  { %2462 = vmatpush.msrb.mxu2 %v2175_v30  ;;  %v2113_v30 = vld [vmem:[#allocation29 + $0x340] sm:$0xff] }
 0x733   :  { %2463 = vmatpush.msrb.mxu2 %v2173_v33  ;;  %v2217_v33 = vld [vmem:[#allocation29 + $0x680] sm:$0xff] }
 0x735   :  { %2464 = vmatpush.msrb.mxu2 %v2171_v34  ;;  %v2111_v34 = vld [vmem:[#allocation29 + $0x330] sm:$0xff] }
 0x737   :  { %2465 = vmatpush.msrb.mxu2 %v2169_v35  ;;  %v2295_v35 = vld [vmem:[#allocation29 + $0x8f0] sm:$0xff] }
 0x738   :  { %2466 = vmatmul.f32.vlgmr.msrb.gmra.mxu2 %v4969_v27  ;;  %2519 = vmatpush.msra.mxu1 %v2295_v35  ;;  %v2317_v35 = vld [vmem:[#allocation29 + $0x9a0] sm:$0xff] }
 0x740   :  { %2469 = vmatmul.f32.gmra.mxu2 %v4966_v25 }
 0x765   :  { %v1918_v36 = vpop.f32.mrf.mxu1 }
 0x766   :  { %v1947_v38 = vmul.f32 2.0, %v1918_v36  ;;  %v2215_v36 = vld [vmem:[#allocation29 + $0x670] sm:$0xff] }
 0x768   :  { %v4989_v39 = vsub.f32 %v1947_v38, %v4933_v3  ;;  %v2293_v38 = vld [vmem:[#allocation29 + $0x8e0] sm:$0xff] }
 0x769   :  { %2520 = vmatpush.msra.mxu1 %v2293_v38  ;;  %v2026_v38 = vld [vmem:[#allocation29 + $0x88] sm:$0xff] }
 0x76d   :  { %v1921_v37 = vpop.f32.mrf.mxu1 }
 0x76e   :  { %v1949_v2 = vmul.f32 2.0, %v1921_v37  ;;  %v2109_v37 = vld [vmem:[#allocation29 + $0x320] sm:$0xff] }
 0x770   :  { %v4986_v8 = vsub.f32 %v1949_v2, %v4935_v4  ;;  %v2213_v2 = vld [vmem:[#allocation29 + $0x660] sm:$0xff] }
 0x772   :  { %1969 = vmatpush.msrb.mxu3 %v4986_v8 }
 0x774   :  { %1970 = vmatpush.msrb.mxu3 %v4989_v39 }
 0x775   :  { %3525 = vmatmul.msk.f32.vlgmr.msrb.gmra.mxu3 %vm557_vm0, %v4897_v15 }
 0x776   :  { %2381 = vmatpush.msra.mxu3 %v2103_v40  ;;  %v2107_v40 = vld [vmem:[#allocation29 + $0x310] sm:$0xff] }
 0x778   :  { %2382 = vmatpush.msra.mxu3 %v2101_v41  ;;  %v2291_v41 = vld [vmem:[#allocation29 + $0x8d0] sm:$0xff] }
 0x779   :  { %2521 = vmatpush.msra.mxu1 %v2291_v41  ;;  %v2265_v41 = vld [vmem:[#allocation29 + $0x800] sm:$0xff] }
 0x77a   :  { %2383 = vmatpush.msra.mxu3 %v2099_v42  ;;  %v2211_v42 = vld [vmem:[#allocation29 + $0x650] sm:$0xff] }
 0x77b   :  { %v1941_v16 = vpop.f32.mrf.mxu2 }
 0x77c   :  { %2384 = vmatpush.msra.mxu3 %v2097_v43  ;;  %v1948_v53 = vmul.f32 2.0, %v1941_v16  ;;  %v2105_v43 = vld [vmem:[#allocation29 + $0x300] sm:$0xff] }
 0x77d   :  { %3526 = vmatmul.msk.f32.gmra.mxu3 %vm557_vm0, %v4905_v55  ;;  %v2209_v16 = vld [vmem:[#allocation29 + $0x640] sm:$0xff] }
 0x77e   :  { %2385 = vmatpush.msra.mxu3 %v2095_v44  ;;  %v5001_v55 = vsub.f32 %v1948_v53, %v4943_v5  ;;  %v2289_v44 = vld [vmem:[#allocation29 + $0x8c0] sm:$0xff] }
 0x77f   :  { %2522 = vmatpush.msra.mxu1 %v2289_v44  ;;  %v2285_v53 = vld [vmem:[#allocation29 + $0x8a0] sm:$0xff] }
 0x780   :  { %2386 = vmatpush.msra.mxu3 %v2093_v47  ;;  %v2263_v47 = vld [vmem:[#allocation29 + $0x7f0] sm:$0xff]  ;;  %v2237_v44 = vld [vmem:[#allocation29 + $0x720] sm:$0xff] }
 0x782   :  { %2387 = vmatpush.msra.mxu3 %v2091_v49  ;;  %v2287_v49 = vld [vmem:[#allocation29 + $0x8b0] sm:$0xff] }
 0x783   :  { %v1944_v15 = vpop.f32.mrf.mxu2  ;;  %2523 = vmatpush.msra.mxu1 %v2287_v49  ;;  %v2311_v49 = vld [vmem:[#allocation29 + $0x970] sm:$0xff] }
 0x784   :  { %2388 = vmatpush.msra.mxu3 %v2089_v51  ;;  %v1950_v54 = vmul.f32 2.0, %v1944_v15  ;;  %v2207_v51 = vld [vmem:[#allocation29 + $0x630] sm:$0xff]  ;;  %v2205_v15 = vld [vmem:[#allocation29 + $0x620] sm:$0xff] }
 0x785   :  { %2524 = vmatpush.msra.mxu1 %v2285_v53  ;;  %v2309_v53 = vld [vmem:[#allocation29 + $0x960] sm:$0xff] }
 0x786   :  { %2389 = vmatpush.msra.mxu3 %v2087_v52  ;;  %v4998_v32 = vsub.f32 %v1950_v54, %v4945_v6  ;;  %v2261_v52 = vld [vmem:[#allocation29 + $0x7e0] sm:$0xff]  ;;  %v2259_v54 = vld [vmem:[#allocation29 + $0x7d0] sm:$0xff] }
 0x788   :  { %2390 = vmatpush.msra.mxu3 %v2085_v31  ;;  %1992 = vmatpush.msra.mxu0 %v4998_v32  ;;  %v2203_v31 = vld [vmem:[#allocation29 + $0x610] sm:$0xff] }
 0x78a   :  { %2391 = vmatpush.msra.mxu3 %v2083_v56  ;;  %1993 = vmatpush.msra.mxu0 %v5001_v55  ;;  %v2283_v56 = vld [vmem:[#allocation29 + $0x890] sm:$0xff] }
 0x78b   :  { %3527 = vmatmul.msk.f32.vlgmr.msra.gmra.mxu0 %vm557_vm0, %v3623_v58  ;;  %2525 = vmatpush.msra.mxu1 %v2283_v56  ;;  %v2255_v58 = vld [vmem:[#allocation29 + $0x7b0] sm:$0xff]  ;;  %v2018_v56 = vld [vmem:[#allocation29 + $0x48] sm:$0xff] }
 0x78c   :  { %2392 = vmatpush.msra.mxu3 %v2081_v57  ;;  %2404 = vmatpush.msrb.mxu0 %v2135_v45  ;;  %v2257_v57 = vld [vmem:[#allocation29 + $0x7c0] sm:$0xff] }
 0x78d   :  { %v2201_v45 = vld [vmem:[#allocation29 + $0x600] sm:$0xff] }
 0x78e   :  { %2393 = vmatpush.msra.mxu3 %v2079_v46  ;;  %2405 = vmatpush.msrb.mxu0 %v2133_v59  ;;  %v2281_v46 = vld [vmem:[#allocation29 + $0x880] sm:$0xff]  ;;  %v2040_v59 = vld [vmem:[#allocation29 + $0xf8] sm:$0xff] }
 0x78f   :  { %2526 = vmatpush.msra.mxu1 %v2281_v46  ;;  %v2016_v46 = vld [vmem:[#allocation29 + $0x38] sm:$0xff] }
 0x790   :  { %2394 = vmatpush.msra.mxu3 %v2077_v60  ;;  %2406 = vmatpush.msrb.mxu0 %v2131_v61  ;;  %v2279_v60 = vld [vmem:[#allocation29 + $0x870] sm:$0xff]  ;;  %v2253_v61 = vld [vmem:[#allocation29 + $0x7a0] sm:$0xff] }
 0x791   :  { %2527 = vmatpush.msra.mxu1 %v2279_v60  ;;  %v2305_v60 = vld [vmem:[#allocation29 + $0x940] sm:$0xff] }
 0x792   :  { %2395 = vmatpush.msra.mxu3 %v2075_v7  ;;  %2407 = vmatpush.msrb.mxu0 %v2129_v9  ;;  %v2327_v7 = vld [vmem:[#allocation29 + $0x9f0] sm:$0xff]  ;;  %v2038_v9 = vld [vmem:[#allocation29 + $0xe8] sm:$0xff] }
 0x793   :  { %3528 = vmatmul.msk.f32.gmra.mxu0 %vm557_vm0, %v3624_v17  ;;  %v2036_v17 = vld [vmem:[#allocation29 + $0xd8] sm:$0xff]  ;;  %2542 = vmatpush.msra.mxu2 %v2327_v7 }
 0x794   :  { %2396 = vmatpush.msra.mxu3 %v2073_v10  ;;  %2408 = vmatpush.msrb.mxu0 %v2127_v11  ;;  %v2277_v10 = vld [vmem:[#allocation29 + $0x860] sm:$0xff]  ;;  %v2251_v11 = vld [vmem:[#allocation29 + $0x790] sm:$0xff]  ;;  %v2096_v7 = vld [vmem:[#allocation29 + $0x2b8] sm:$0xff] }
 0x795   :  { %2397 = vmatmul.f32.vlgmr.msra.gmra.mxu3 %v4933_v3  ;;  %2528 = vmatpush.msra.mxu1 %v2277_v10  ;;  %v2303_v10 = vld [vmem:[#allocation29 + $0x930] sm:$0xff] }
 0x796   :  { %2473 = vmatpush.msrb.mxu3 %v2231_v14  ;;  %2409 = vmatpush.msrb.mxu0 %v2125_v20  ;;  %v2325_v14 = vld [vmem:[#allocation29 + $0x9e0] sm:$0xff]  ;;  %v2275_v20 = vld [vmem:[#allocation29 + $0x850] sm:$0xff] }
 0x797   :  { %2543 = vmatpush.msra.mxu2 %v2325_v14  ;;  %2529 = vmatpush.msra.mxu1 %v2275_v20  ;;  %v2094_v14 = vld [vmem:[#allocation29 + $0x2a8] sm:$0xff]  ;;  %v2301_v20 = vld [vmem:[#allocation29 + $0x920] sm:$0xff] }
 0x798   :  { %2474 = vmatpush.msrb.mxu3 %v2229_v1  ;;  %2410 = vmatpush.msrb.mxu0 %v2123_v18  ;;  %v2249_v1 = vld [vmem:[#allocation29 + $0x780] sm:$0xff]  ;;  %v2323_v18 = vld [vmem:[#allocation29 + $0x9d0] sm:$0xff] }
 0x799   :  { %2544 = vmatpush.msra.mxu2 %v2323_v18  ;;  %v2064_v18 = vld [vmem:[#allocation29 + $0x1b8] sm:$0xff] }
 0x79a   :  { %2475 = vmatpush.msrb.mxu3 %v2227_v0  ;;  %2411 = vmatpush.msrb.mxu0 %v2121_v19  ;;  %v2034_v0 = vld [vmem:[#allocation29 + $0xc8] sm:$0xff]  ;;  %v2273_v19 = vld [vmem:[#allocation29 + $0x840] sm:$0xff] }
 0x79b   :  { %2530 = vmatpush.msra.mxu1 %v2273_v19  ;;  %v2092_v19 = vld [vmem:[#allocation29 + $0x298] sm:$0xff] }
 0x79c   :  { %2476 = vmatpush.msrb.mxu3 %v2225_v21  ;;  %2412 = vmatpush.msrb.mxu0 %v2119_v22  ;;  %v2247_v21 = vld [vmem:[#allocation29 + $0x770] sm:$0xff]  ;;  %v2032_v22 = vld [vmem:[#allocation29 + $0xb8] sm:$0xff] }
 0x79d   :  { %2400 = vmatmul.f32.gmra.mxu3 %v4935_v4 }
 0x79e   :  { %2477 = vmatpush.msrb.mxu3 %v2223_v23  ;;  %2413 = vmatpush.msrb.mxu0 %v2117_v24  ;;  %v2321_v23 = vld [vmem:[#allocation29 + $0x9c0] sm:$0xff] }
 0x79f   :  { %v2245_v24 = vld [vmem:[#allocation29 + $0x760] sm:$0xff]  ;;  %2545 = vmatpush.msra.mxu2 %v2321_v23  ;;  %v2166_v23 = vld [vmem:[#allocation29 + $0x4e8] sm:$0xff] }
 0x7a0   :  { %2478 = vmatpush.msrb.mxu3 %v2221_v26  ;;  %2414 = vmatpush.msrb.mxu0 %v2115_v28  ;;  %v2271_v26 = vld [vmem:[#allocation29 + $0x830] sm:$0xff]  ;;  %v2030_v28 = vld [vmem:[#allocation29 + $0xa8] sm:$0xff] }
 0x7a1   :  { %2531 = vmatpush.msra.mxu1 %v2271_v26  ;;  %v2060_v26 = vld [vmem:[#allocation29 + $0x198] sm:$0xff] }
 0x7a2   :  { %2479 = vmatpush.msrb.mxu3 %v2219_v29  ;;  %2415 = vmatpush.msrb.mxu0 %v2113_v30  ;;  %v2319_v29 = vld [vmem:[#allocation29 + $0x9b0] sm:$0xff] }
 0x7a3   :  { %v2243_v30 = vld [vmem:[#allocation29 + $0x750] sm:$0xff]  ;;  %2546 = vmatpush.msra.mxu2 %v2319_v29  ;;  %v2164_v29 = vld [vmem:[#allocation29 + $0x4d8] sm:$0xff] }
 0x7a4   :  { %2480 = vmatpush.msrb.mxu3 %v2217_v33  ;;  %2416 = vmatpush.msrb.mxu0 %v2111_v34  ;;  %v2269_v33 = vld [vmem:[#allocation29 + $0x820] sm:$0xff]  ;;  %v2028_v34 = vld [vmem:[#allocation29 + $0x98] sm:$0xff] }
 0x7a5   :  { %2532 = vmatpush.msra.mxu1 %v2269_v33  ;;  %2547 = vmatpush.msra.mxu2 %v2317_v35  ;;  %v2058_v33 = vld [vmem:[#allocation29 + $0x188] sm:$0xff] }
 0x7a6   :  { %2481 = vmatpush.msrb.mxu3 %v2215_v36  ;;  %2417 = vmatpush.msrb.mxu0 %v2109_v37  ;;  %v2241_v36 = vld [vmem:[#allocation29 + $0x740] sm:$0xff]  ;;  %v2267_v37 = vld [vmem:[#allocation29 + $0x810] sm:$0xff]  ;;  %v2162_v35 = vld [vmem:[#allocation29 + $0x4c8] sm:$0xff] }
 0x7a7   :  { %2533 = vmatpush.msra.mxu1 %v2267_v37  ;;  %v2160_v37 = vld [vmem:[#allocation29 + $0x4b8] sm:$0xff] }
 0x7a8   :  { %2482 = vmatpush.msrb.mxu3 %v2213_v2  ;;  %2418 = vmatpush.msrb.mxu0 %v2107_v40  ;;  %v2315_v2 = vld [vmem:[#allocation29 + $0x990] sm:$0xff] }
 0x7a9   :  { %v2239_v40 = vld [vmem:[#allocation29 + $0x730] sm:$0xff]  ;;  %2548 = vmatpush.msra.mxu2 %v2315_v2  ;;  %2534 = vmatpush.msra.mxu1 %v2265_v41  ;;  %v2054_v2 = vld [vmem:[#allocation29 + $0x168] sm:$0xff] }
 0x7aa   :  { %2483 = vmatpush.msrb.mxu3 %v2211_v42  ;;  %2419 = vmatpush.msrb.mxu0 %v2105_v43  ;;  %v2024_v42 = vld [vmem:[#allocation29 + $0x78] sm:$0xff]  ;;  %v2313_v43 = vld [vmem:[#allocation29 + $0x980] sm:$0xff]  ;;  %v2158_v41 = vld [vmem:[#allocation29 + $0x4a8] sm:$0xff] }
 0x7ab   :  { %2420 = vmatmul.f32.vlgmr.msrb.gmra.mxu0 %v4943_v5  ;;  %2549 = vmatpush.msra.mxu2 %v2313_v43  ;;  %v2052_v43 = vld [vmem:[#allocation29 + $0x158] sm:$0xff] }
 0x7ac   :  { %2484 = vmatpush.msrb.mxu3 %v2209_v16  ;;  %2496 = vmatpush.msra.mxu0 %v2263_v47  ;;  %v2104_v16 = vld [vmem:[#allocation29 + $0x2f8] sm:$0xff]  ;;  %v2022_v47 = vld [vmem:[#allocation29 + $0x68] sm:$0xff] }
 0x7ad   :  { %2611 = vmatpush.msrb.mxu1 %v2104_v16  ;;  %2550 = vmatpush.msra.mxu2 %v2311_v49  ;;  %v2156_v16 = vld [vmem:[#allocation29 + $0x498] sm:$0xff]  ;;  %v2050_v49 = vld [vmem:[#allocation29 + $0x148] sm:$0xff] }
 0x7ae   :  { %2485 = vmatpush.msrb.mxu3 %v2207_v51  ;;  %2497 = vmatpush.msra.mxu0 %v2261_v52  ;;  %v2235_v51 = vld [vmem:[#allocation29 + $0x710] sm:$0xff]  ;;  %v2102_v52 = vld [vmem:[#allocation29 + $0x2e8] sm:$0xff] }
 0x7af   :  { %2612 = vmatpush.msrb.mxu1 %v2102_v52  ;;  %2551 = vmatpush.msra.mxu2 %v2309_v53  ;;  %v2154_v52 = vld [vmem:[#allocation29 + $0x488] sm:$0xff] }
 0x7b0   :  { %2486 = vmatpush.msrb.mxu3 %v2205_v15  ;;  %2498 = vmatpush.msra.mxu0 %v2259_v54  ;;  %v2020_v15 = vld [vmem:[#allocation29 + $0x58] sm:$0xff]  ;;  %v2233_v54 = vld [vmem:[#allocation29 + $0x700] sm:$0xff]  ;;  %v2078_v53 = vld [vmem:[#allocation29 + $0x228] sm:$0xff] }
 0x7b2   :  { %2487 = vmatpush.msrb.mxu3 %v2203_v31  ;;  %2499 = vmatpush.msra.mxu0 %v2257_v57  ;;  %v2100_v31 = vld [vmem:[#allocation29 + $0x2d8] sm:$0xff] }
 0x7b3   :  { %2423 = vmatmul.f32.gmra.mxu0 %v4945_v6  ;;  %v2072_v57 = vld [vmem:[#allocation29 + $0x1f8] sm:$0xff]  ;;  %2613 = vmatpush.msrb.mxu1 %v2100_v31  ;;  %v2126_v31 = vld [vmem:[#allocation29 + $0x3a8] sm:$0xff] }
 0x7b4   :  { %2488 = vmatpush.msrb.mxu3 %v2201_v45  ;;  %2500 = vmatpush.msra.mxu0 %v2255_v58  ;;  %v2307_v45 = vld [vmem:[#allocation29 + $0x950] sm:$0xff]  ;;  %v2098_v58 = vld [vmem:[#allocation29 + $0x2c8] sm:$0xff] }
 0x7b5   :  { %2489 = vmatmul.f32.vlgmr.msrb.gmra.mxu3 %v4989_v39  ;;  %2552 = vmatpush.msra.mxu2 %v2307_v45  ;;  %v2150_v45 = vld [vmem:[#allocation29 + $0x468] sm:$0xff] }
 0x7b6   :  { %2565 = vmatpush.msra.mxu3 %v2040_v59  ;;  %2501 = vmatpush.msra.mxu0 %v2253_v61  ;;  %v2070_v59 = vld [vmem:[#allocation29 + $0x1e8] sm:$0xff] }
 0x7b7   :  { %v2014_v61 = vld [vmem:[#allocation29 + $0x28] sm:$0xff]  ;;  %2614 = vmatpush.msrb.mxu1 %v2098_v58  ;;  %2553 = vmatpush.msra.mxu2 %v2305_v60  ;;  %v2044_v58 = vld [vmem:[#allocation29 + $0x118] sm:$0xff] }
 0x7b8   :  { %2566 = vmatpush.msra.mxu3 %v2038_v9  ;;  %2502 = vmatpush.msra.mxu0 %v2251_v11  ;;  %v2068_v9 = vld [vmem:[#allocation29 + $0x1d8] sm:$0xff] }
 0x7b9   :  { %v2012_v11 = vld [vmem:[#allocation29 + $0x18] sm:$0xff]  ;;  %2615 = vmatpush.msrb.mxu1 %v2096_v7  ;;  %2554 = vmatpush.msra.mxu2 %v2303_v10  ;;  %v2042_v7 = vld [vmem:[#allocation29 + $0x108] sm:$0xff] }
 0x7ba   :  { %2567 = vmatpush.msra.mxu3 %v2036_v17  ;;  %2503 = vmatpush.msra.mxu0 %v2249_v1  ;;  %v2066_v17 = vld [vmem:[#allocation29 + $0x1c8] sm:$0xff]  ;;  %v2148_v60 = vld [vmem:[#allocation29 + $0x458] sm:$0xff] }
 0x7bb   :  { %v2010_v1 = vld [vmem:[#allocation29 + $0x8] sm:$0xff]  ;;  %2616 = vmatpush.msrb.mxu1 %v2094_v14  ;;  %2555 = vmatpush.msra.mxu2 %v2301_v20  ;;  %v2200_v10 = vld [vmem:[#allocation29 + $0x5f8] sm:$0xff] }
 0x7bc   :  { %2568 = vmatpush.msra.mxu3 %v2034_v0  ;;  %2504 = vmatpush.msra.mxu0 %v2247_v21  ;;  %v2168_v0 = vld [vmem:[#allocation29 + $0x4f8] sm:$0xff]  ;;  %v2062_v21 = vld [vmem:[#allocation29 + $0x1a8] sm:$0xff] }
 0x7bd   :  { %2492 = vmatmul.f32.gmra.mxu3 %v4986_v8  ;;  %2617 = vmatpush.msrb.mxu1 %v2092_v19  ;;  %v2144_v14 = vld [vmem:[#allocation29 + $0x438] sm:$0xff]  ;;  %v2118_v20 = vld [vmem:[#allocation29 + $0x368] sm:$0xff] }
 0x7be   :  { %2569 = vmatpush.msra.mxu3 %v2032_v22  ;;  %2505 = vmatpush.msra.mxu0 %v2245_v24  ;;  %v2299_v22 = vld [vmem:[#allocation29 + $0x910] sm:$0xff]  ;;  %v2090_v24 = vld [vmem:[#allocation29 + $0x288] sm:$0xff]  ;;  %v2140_v19 = vld [vmem:[#allocation29 + $0x418] sm:$0xff] }
 0x7bf   :  { %2556 = vmatpush.msra.mxu2 %v2299_v22  ;;  %2618 = vmatpush.msrb.mxu1 %v2090_v24  ;;  %v2114_v22 = vld [vmem:[#allocation29 + $0x348] sm:$0xff]  ;;  %v2296_v24 = vld [vmem:[#allocation29 + $0x8f8] sm:$0xff] }
 0x7c0   :  { %2570 = vmatpush.msra.mxu3 %v2030_v28  ;;  %2506 = vmatpush.msra.mxu0 %v2243_v30  ;;  %v2297_v28 = vld [vmem:[#allocation29 + $0x900] sm:$0xff]  ;;  %v2088_v30 = vld [vmem:[#allocation29 + $0x278] sm:$0xff] }
 0x7c1   :  { %2557 = vmatpush.msra.mxu2 %v2297_v28  ;;  %2619 = vmatpush.msrb.mxu1 %v2088_v30  ;;  %v2190_v28 = vld [vmem:[#allocation29 + $0x5a8] sm:$0xff] }
 0x7c2   :  { %2571 = vmatpush.msra.mxu3 %v2028_v34  ;;  %2507 = vmatpush.msra.mxu0 %v2241_v36  ;;  %v2136_v34 = vld [vmem:[#allocation29 + $0x3f8] sm:$0xff]  ;;  %v2086_v36 = vld [vmem:[#allocation29 + $0x268] sm:$0xff] }
 0x7c3   :  { %2634 = vmatpush.msrb.mxu2 %v2136_v34  ;;  %2620 = vmatpush.msrb.mxu1 %v2086_v36  ;;  %v2110_v30 = vld [vmem:[#allocation29 + $0x328] sm:$0xff]  ;;  %v2292_v34 = vld [vmem:[#allocation29 + $0x8d8] sm:$0xff] }
 0x7c4   :  { %2572 = vmatpush.msra.mxu3 %v2026_v38  ;;  %2508 = vmatpush.msra.mxu0 %v2239_v40  ;;  %v2134_v38 = vld [vmem:[#allocation29 + $0x3e8] sm:$0xff]  ;;  %v2084_v40 = vld [vmem:[#allocation29 + $0x258] sm:$0xff] }
 0x7c5   :  { %2635 = vmatpush.msrb.mxu2 %v2134_v38  ;;  %2621 = vmatpush.msrb.mxu1 %v2084_v40  ;;  %v2186_v36 = vld [vmem:[#allocation29 + $0x588] sm:$0xff] }
 0x7c6   :  { %2573 = vmatpush.msra.mxu3 %v2024_v42  ;;  %2509 = vmatpush.msra.mxu0 %v2237_v44  ;;  %v2132_v42 = vld [vmem:[#allocation29 + $0x3d8] sm:$0xff]  ;;  %v2082_v44 = vld [vmem:[#allocation29 + $0x248] sm:$0xff] }
 0x7c7   :  { %2636 = vmatpush.msrb.mxu2 %v2132_v42  ;;  %2622 = vmatpush.msrb.mxu1 %v2082_v44  ;;  %v2106_v38 = vld [vmem:[#allocation29 + $0x308] sm:$0xff] }
 0x7c8   :  { %2574 = vmatpush.msra.mxu3 %v2022_v47  ;;  %2510 = vmatpush.msra.mxu0 %v2235_v51  ;;  %v2130_v47 = vld [vmem:[#allocation29 + $0x3c8] sm:$0xff]  ;;  %v2080_v51 = vld [vmem:[#allocation29 + $0x238] sm:$0xff] }
 0x7c9   :  { %2637 = vmatpush.msrb.mxu2 %v2130_v47  ;;  %2623 = vmatpush.msrb.mxu1 %v2080_v51  ;;  %v2182_v42 = vld [vmem:[#allocation29 + $0x568] sm:$0xff] }
 0x7ca   :  { %2575 = vmatpush.msra.mxu3 %v2020_v15  ;;  %2511 = vmatpush.msra.mxu0 %v2233_v54  ;;  %v2128_v15 = vld [vmem:[#allocation29 + $0x3b8] sm:$0xff]  ;;  %v2286_v44 = vld [vmem:[#allocation29 + $0x8a8] sm:$0xff] }
 0x7cb   :  { %2512 = vmatmul.f32.vlgmr.msra.gmra.mxu0 %v5001_v55  ;;  %v2152_v54 = vld [vmem:[#allocation29 + $0x478] sm:$0xff]  ;;  %2638 = vmatpush.msrb.mxu2 %v2128_v15  ;;  %v2230_v47 = vld [vmem:[#allocation29 + $0x6e8] sm:$0xff] }
 0x7cc   :  { %2576 = vmatpush.msra.mxu3 %v2018_v56  ;;  %2588 = vmatpush.msrb.mxu0 %v2072_v57  ;;  %v2046_v56 = vld [vmem:[#allocation29 + $0x128] sm:$0xff]  ;;  %v2076_v57 = vld [vmem:[#allocation29 + $0x218] sm:$0xff] }
 0x7cd   :  { %2624 = vmatpush.msrb.mxu1 %v2078_v53  ;;  %2639 = vmatpush.msrb.mxu2 %v2126_v31  ;;  %v2282_v15 = vld [vmem:[#allocation29 + $0x888] sm:$0xff]  ;;  %v2176_v53 = vld [vmem:[#allocation29 + $0x538] sm:$0xff] }
 0x7ce   :  { %2577 = vmatpush.msra.mxu3 %v2016_v46  ;;  %2589 = vmatpush.msrb.mxu0 %v2070_v59  ;;  %v2124_v46 = vld [vmem:[#allocation29 + $0x398] sm:$0xff]  ;;  %v2074_v59 = vld [vmem:[#allocation29 + $0x208] sm:$0xff] }
 0x7cf   :  { %2625 = vmatpush.msrb.mxu1 %v2076_v57  ;;  %2640 = vmatpush.msrb.mxu2 %v2124_v46  ;;  %v2280_v31 = vld [vmem:[#allocation29 + $0x878] sm:$0xff]  ;;  %v2174_v57 = vld [vmem:[#allocation29 + $0x528] sm:$0xff] }
 0x7d0   :  { %2578 = vmatpush.msra.mxu3 %v2014_v61  ;;  %2590 = vmatpush.msrb.mxu0 %v2068_v9  ;;  %v2122_v61 = vld [vmem:[#allocation29 + $0x388] sm:$0xff] }
 0x7d1   :  { %v2146_v9 = vld [vmem:[#allocation29 + $0x448] sm:$0xff]  ;;  %2626 = vmatpush.msrb.mxu1 %v2074_v59  ;;  %2641 = vmatpush.msrb.mxu2 %v2122_v61 }
 0x7d2   :  { %2579 = vmatpush.msra.mxu3 %v2012_v11  ;;  %2591 = vmatpush.msrb.mxu0 %v2066_v17  ;;  %v2120_v11 = vld [vmem:[#allocation29 + $0x378] sm:$0xff]  ;;  %v2198_v17 = vld [vmem:[#allocation29 + $0x5e8] sm:$0xff] }
 0x7d3   :  { %2515 = vmatmul.f32.gmra.mxu0 %v4998_v32  ;;  %2642 = vmatpush.msrb.mxu2 %v2120_v11  ;;  %v2278_v46 = vld [vmem:[#allocation29 + $0x868] sm:$0xff] }
 0x7d4   :  { %2580 = vmatpush.msra.mxu3 %v2010_v1  ;;  %2592 = vmatpush.msrb.mxu0 %v2064_v18  ;;  %v2142_v1 = vld [vmem:[#allocation29 + $0x428] sm:$0xff]  ;;  %v2196_v18 = vld [vmem:[#allocation29 + $0x5d8] sm:$0xff] }
 0x7d5   :  { %2581 = vmatmul.f32.vlgmr.msra.gmra.mxu3 %v4916_v50  ;;  %v2056_v50 = vld [vmem:[#allocation29 + $0x178] sm:$0xff]  ;;  %2643 = vmatpush.msrb.mxu2 %v2118_v20  ;;  %v2222_v59 = vld [vmem:[#allocation29 + $0x6a8] sm:$0xff] }
 0x7d6   :  { %2657 = vmatpush.msrb.mxu3 %v2168_v0  ;;  %2593 = vmatpush.msrb.mxu0 %v2062_v21  ;;  %v2116_v0 = vld [vmem:[#allocation29 + $0x358] sm:$0xff]  ;;  %v2194_v21 = vld [vmem:[#allocation29 + $0x5c8] sm:$0xff] }
 0x7d7   :  { %2644 = vmatpush.msrb.mxu2 %v2116_v0  ;;  %v2170_v61 = vld [vmem:[#allocation29 + $0x508] sm:$0xff]  ;;  %v2216_v0 = vld [vmem:[#allocation29 + $0x678] sm:$0xff] }
 0x7d8   :  { %2658 = vmatpush.msrb.mxu3 %v2166_v23  ;;  %2594 = vmatpush.msrb.mxu0 %v2060_v26  ;;  %v2138_v23 = vld [vmem:[#allocation29 + $0x408] sm:$0xff]  ;;  %v2112_v26 = vld [vmem:[#allocation29 + $0x338] sm:$0xff] }
 0x7d9   :  { %2645 = vmatpush.msrb.mxu2 %v2114_v22  ;;  %v2268_v22 = vld [vmem:[#allocation29 + $0x818] sm:$0xff] }
 0x7da   :  { %2659 = vmatpush.msrb.mxu3 %v2164_v29  ;;  %2595 = vmatpush.msrb.mxu0 %v2058_v33  ;;  %v2294_v29 = vld [vmem:[#allocation29 + $0x8e8] sm:$0xff]  ;;  %v2188_v33 = vld [vmem:[#allocation29 + $0x598] sm:$0xff] }
 0x7db   :  { %2646 = vmatpush.msrb.mxu2 %v2112_v26 }
 0x7dc   :  { %2660 = vmatpush.msrb.mxu3 %v2162_v35  ;;  %2596 = vmatpush.msrb.mxu0 %v2056_v50  ;;  %v2108_v35 = vld [vmem:[#allocation29 + $0x318] sm:$0xff] }
 0x7dd   :  { %2584 = vmatmul.f32.gmra.mxu3 %v4913_v48  ;;  %v2048_v48 = vld [vmem:[#allocation29 + $0x138] sm:$0xff]  ;;  %2647 = vmatpush.msrb.mxu2 %v2110_v30 }
 0x7de   :  { %2661 = vmatpush.msrb.mxu3 %v2160_v37  ;;  %2597 = vmatpush.msrb.mxu0 %v2054_v2  ;;  %v2290_v37 = vld [vmem:[#allocation29 + $0x8c8] sm:$0xff]  ;;  %v2184_v2 = vld [vmem:[#allocation29 + $0x578] sm:$0xff] }
 0x7df   :  { %2648 = vmatpush.msrb.mxu2 %v2108_v35  ;;  %v2212_v30 = vld [vmem:[#allocation29 + $0x658] sm:$0xff]  ;;  %v2210_v35 = vld [vmem:[#allocation29 + $0x648] sm:$0xff] }
 0x7e0   :  { %2662 = vmatpush.msrb.mxu3 %v2158_v41  ;;  %2598 = vmatpush.msrb.mxu0 %v2052_v43  ;;  %v2288_v41 = vld [vmem:[#allocation29 + $0x8b8] sm:$0xff] }
 0x7e1   :  { %v2232_v43 = vld [vmem:[#allocation29 + $0x6f8] sm:$0xff]  ;;  %2649 = vmatpush.msrb.mxu2 %v2106_v38  ;;  %v2314_v38 = vld [vmem:[#allocation29 + $0x988] sm:$0xff] }
 0x7e2   :  { %2663 = vmatpush.msrb.mxu3 %v2156_v16  ;;  %2599 = vmatpush.msrb.mxu0 %v2050_v49  ;;  %v2180_v16 = vld [vmem:[#allocation29 + $0x558] sm:$0xff] }
 0x7e3   :  { %v2284_v49 = vld [vmem:[#allocation29 + $0x898] sm:$0xff] }
 0x7e4   :  { %2664 = vmatpush.msrb.mxu3 %v2154_v52  ;;  %2600 = vmatpush.msrb.mxu0 %v2048_v48  ;;  %v2228_v52 = vld [vmem:[#allocation29 + $0x6d8] sm:$0xff] }
 0x7e6   :  { %2665 = vmatpush.msrb.mxu3 %v2152_v54  ;;  %2601 = vmatpush.msrb.mxu0 %v2046_v56  ;;  %v2226_v54 = vld [vmem:[#allocation29 + $0x6c8] sm:$0xff] }
 0x7e8   :  { %2666 = vmatpush.msrb.mxu3 %v2150_v45  ;;  %2602 = vmatpush.msrb.mxu0 %v2044_v58  ;;  %v2224_v45 = vld [vmem:[#allocation29 + $0x6b8] sm:$0xff] }
 0x7e9   :  { %v2172_v58 = vld [vmem:[#allocation29 + $0x518] sm:$0xff] }
 0x7ea   :  { %2667 = vmatpush.msrb.mxu3 %v2148_v60  ;;  %2603 = vmatpush.msrb.mxu0 %v2042_v7  ;;  %v2276_v60 = vld [vmem:[#allocation29 + $0x858] sm:$0xff] }
 0x7eb   :  { %2604 = vmatmul.f32.vlgmr.msrb.gmra.mxu0 %v4926_v63  ;;  %v2192_v63 = vld [vmem:[#allocation29 + $0x5b8] sm:$0xff] }
 0x7ec   :  { %2668 = vmatpush.msrb.mxu3 %v2146_v9  ;;  %2680 = vmatpush.msra.mxu0 %v2200_v10  ;;  %v2220_v7 = vld [vmem:[#allocation29 + $0x698] sm:$0xff] }
 0x7ed   :  { %v2328_v10 = vld [vmem:[#allocation29 + $0x9f8] sm:$0xff] }
 0x7ee   :  { %2669 = vmatpush.msrb.mxu3 %v2144_v14  ;;  %2681 = vmatpush.msra.mxu0 %v2198_v17  ;;  %v2218_v14 = vld [vmem:[#allocation29 + $0x688] sm:$0xff]  ;;  %v2272_v17 = vld [vmem:[#allocation29 + $0x838] sm:$0xff] }
 0x7f0   :  { %2670 = vmatpush.msrb.mxu3 %v2142_v1  ;;  %2682 = vmatpush.msra.mxu0 %v2196_v18  ;;  %v2326_v1 = vld [vmem:[#allocation29 + $0x9e8] sm:$0xff] }
 0x7f1   :  { %v2270_v18 = vld [vmem:[#allocation29 + $0x828] sm:$0xff] }
 0x7f2   :  { %2671 = vmatpush.msrb.mxu3 %v2140_v19  ;;  %2683 = vmatpush.msra.mxu0 %v2194_v21  ;;  %v2324_v19 = vld [vmem:[#allocation29 + $0x9d8] sm:$0xff] }
 0x7f3   :  { %2607 = vmatmul.f32.gmra.mxu0 %v4923_v62  ;;  %v2264_v21 = vld [vmem:[#allocation29 + $0x7f8] sm:$0xff] }
 0x7f4   :  { %2672 = vmatpush.msrb.mxu3 %v2138_v23  ;;  %2684 = vmatpush.msra.mxu0 %v2192_v63  ;;  %v2214_v23 = vld [vmem:[#allocation29 + $0x668] sm:$0xff] }
 0x7f5   :  { %2673 = vmatmul.f32.vlgmr.msrb.gmra.mxu3 %v4957_v13  ;;  %v2322_v63 = vld [vmem:[#allocation29 + $0x9c8] sm:$0xff] }
 0x7f6   :  { %2749 = vmatpush.msra.mxu3 %v2296_v24  ;;  %2685 = vmatpush.msra.mxu0 %v2190_v28  ;;  %v2266_v24 = vld [vmem:[#allocation29 + $0x808] sm:$0xff]  ;;  %v2320_v28 = vld [vmem:[#allocation29 + $0x9b8] sm:$0xff] }
 0x7f8   :  { %2750 = vmatpush.msra.mxu3 %v2294_v29  ;;  %v1972_v50 = vpop.f32.mrf.mxu3  ;;  %2686 = vmatpush.msra.mxu0 %v2188_v33  ;;  %v2260_v33 = vld [vmem:[#allocation29 + $0x7d8] sm:$0xff] }
 0x7f9   :  { %v2001_v62 = vmul.f32 2.0, %v1972_v50  ;;  %v2316_v50 = vld [vmem:[#allocation29 + $0x998] sm:$0xff] }
 0x7fa   :  { %2751 = vmatpush.msra.mxu3 %v2292_v34  ;;  %2687 = vmatpush.msra.mxu0 %v2186_v36  ;;  %v2258_v36 = vld [vmem:[#allocation29 + $0x7c8] sm:$0xff] }
 0x7fb   :  { %v5021_v40 = vsub.f32 %v2001_v62, %v4957_v13  ;;  %v2178_v13 = vld [vmem:[#allocation29 + $0x548] sm:$0xff]  ;;  %v2256_v62 = vld [vmem:[#allocation29 + $0x7b8] sm:$0xff] }
 0x7fc   :  { %2752 = vmatpush.msra.mxu3 %v2290_v37  ;;  %2688 = vmatpush.msra.mxu0 %v2184_v2  ;;  %v2208_v37 = vld [vmem:[#allocation29 + $0x638] sm:$0xff]  ;;  %v2254_v2 = vld [vmem:[#allocation29 + $0x7a8] sm:$0xff] }
 0x7fd   :  { %2676 = vmatmul.f32.gmra.mxu3 %v4954_v12  ;;  %2535 = vmatmul.f32.vlgmr.msra.gmra.mxu1 %v5021_v40 }
 0x7fe   :  { %2753 = vmatpush.msra.mxu3 %v2288_v41  ;;  %2689 = vmatpush.msra.mxu0 %v2182_v42  ;;  %v2204_v41 = vld [vmem:[#allocation29 + $0x618] sm:$0xff] }
 0x7ff   :  { %2703 = vmatpush.msra.mxu1 %v2232_v43  ;;  %v2252_v42 = vld [vmem:[#allocation29 + $0x798] sm:$0xff]  ;;  %v2310_v43 = vld [vmem:[#allocation29 + $0x968] sm:$0xff] }
 0x800   :  { %2754 = vmatpush.msra.mxu3 %v2286_v44  ;;  %v1975_v51 = vpop.f32.mrf.mxu3  ;;  %2690 = vmatpush.msra.mxu0 %v2180_v16  ;;  %v2202_v44 = vld [vmem:[#allocation29 + $0x608] sm:$0xff] }
 0x801   :  { %v2003_v48 = vmul.f32 2.0, %v1975_v51  ;;  %2704 = vmatpush.msra.mxu1 %v2230_v47  ;;  %v2250_v16 = vld [vmem:[#allocation29 + $0x788] sm:$0xff]  ;;  %v2308_v47 = vld [vmem:[#allocation29 + $0x958] sm:$0xff] }
 0x802   :  { %2755 = vmatpush.msra.mxu3 %v2284_v49  ;;  %2691 = vmatpush.msra.mxu0 %v2178_v13  ;;  %v2306_v49 = vld [vmem:[#allocation29 + $0x948] sm:$0xff]  ;;  %v2304_v51 = vld [vmem:[#allocation29 + $0x938] sm:$0xff] }
 0x803   :  { %2705 = vmatpush.msra.mxu1 %v2228_v52  ;;  %v5026_v56 = vsub.f32 %v2003_v48, %v4954_v12  ;;  %v2274_v12 = vld [vmem:[#allocation29 + $0x848] sm:$0xff]  ;;  %v2244_v52 = vld [vmem:[#allocation29 + $0x758] sm:$0xff] }
 0x804   :  { %2756 = vmatpush.msra.mxu3 %v2282_v15  ;;  %2692 = vmatpush.msra.mxu0 %v2176_v53  ;;  %v2246_v13 = vld [vmem:[#allocation29 + $0x768] sm:$0xff]  ;;  %v2300_v53 = vld [vmem:[#allocation29 + $0x918] sm:$0xff] }
 0x805   :  { %2706 = vmatpush.msra.mxu1 %v2226_v54  ;;  %v2302_v15 = vld [vmem:[#allocation29 + $0x928] sm:$0xff] }
 0x806   :  { %2757 = vmatpush.msra.mxu3 %v2280_v31  ;;  %2538 = vmatmul.f32.gmra.mxu1 %v5026_v56  ;;  %v2242_v48 = vld [vmem:[#allocation29 + $0x748] sm:$0xff]  ;;  %v2236_v31 = vld [vmem:[#allocation29 + $0x718] sm:$0xff] }
 0x807   :  { %2693 = vmatpush.msra.mxu0 %v2174_v57  ;;  %2707 = vmatpush.msra.mxu1 %v2224_v45  ;;  %v2298_v54 = vld [vmem:[#allocation29 + $0x908] sm:$0xff]  ;;  %v2830_v57 = vld [vmem:[#allocation32 + $0xf8] sm:$0xff] }
 0x808   :  { %2758 = vmatpush.msra.mxu3 %v2278_v46  ;;  %v1995_v9 = vpop.f32.mrf.mxu0  ;;  %v2827_v45 = vld [vmem:[#allocation32 + $0xe0] sm:$0xff]  ;;  %v2825_v46 = vld [vmem:[#allocation32 + $0xd0] sm:$0xff] }
 0x809   :  { %2694 = vmatpush.msra.mxu0 %v2172_v58  ;;  %2708 = vmatpush.msra.mxu1 %v2222_v59  ;;  %v2002_v11 = vmul.f32 2.0, %v1995_v9  ;;  %v2826_v58 = vld [vmem:[#allocation32 + $0xd8] sm:$0xff]  ;;  %v2823_v59 = vld [vmem:[#allocation32 + $0xc0] sm:$0xff]  ;;  %v2817_v9 = vld [vmem:[#allocation32 + $0x90] sm:$0xff] }
 0x80a   :  { %2759 = vmatpush.msra.mxu3 %v2276_v60  ;;  %v2824_v60 = vld [vmem:[#allocation32 + $0xc8] sm:$0xff] }
 0x80b   :  { %2695 = vmatpush.msra.mxu0 %v2170_v61  ;;  %2709 = vmatpush.msra.mxu1 %v2220_v7  ;;  %v5031_v20 = vsub.f32 %v2002_v11, %v4969_v27  ;;  %v2821_v61 = vld [vmem:[#allocation32 + $0xb0] sm:$0xff]  ;;  %v2819_v7 = vld [vmem:[#allocation32 + $0xa0] sm:$0xff] }
 0x80c   :  { %2696 = vmatmul.f32.vlgmr.msra.gmra.mxu0 %v4969_v27  ;;  %2760 = vmatpush.msra.mxu3 %v2274_v12  ;;  %v2262_v27 = vld [vmem:[#allocation29 + $0x7e8] sm:$0xff]  ;;  %v2352_v12 = vpop.f32.mrf.mxu1 }
 0x80d   :  { %2772 = vmatpush.msrb.mxu0 %v2328_v10  ;;  %2710 = vmatpush.msra.mxu1 %v2218_v14  ;;  %v2818_v10 = vld [vmem:[#allocation32 + $0x98] sm:$0xff]  ;;  %v2815_v11 = vld [vmem:[#allocation32 + $0x80] sm:$0xff]  ;;  %v2816_v14 = vld [vmem:[#allocation32 + $0x88] sm:$0xff] }
 0x80e   :  { %2761 = vmatpush.msra.mxu3 %v2272_v17  ;;  %2558 = vmatmul.f32.vlgmr.msra.gmra.mxu2 %v5031_v20  ;;  %v2813_v17 = vld [vmem:[#allocation32 + $0x70] sm:$0xff] }
 0x80f   :  { %2773 = vmatpush.msrb.mxu0 %v2326_v1  ;;  %2627 = vmatmul.f32.vlgmr.msrb.gmra.mxu1 %v4933_v3  ;;  %v2318_v3 = vld [vmem:[#allocation29 + $0x9a8] sm:$0xff] }
 0x810   :  { %2762 = vmatpush.msra.mxu3 %v2270_v18  ;;  %2711 = vmatpush.msra.mxu1 %v2216_v0  ;;  %v1998_v26 = vpop.f32.mrf.mxu0  ;;  %v2811_v1 = vld [vmem:[#allocation32 + $0x60] sm:$0xff]  ;;  %v2812_v18 = vld [vmem:[#allocation32 + $0x68] sm:$0xff] }
 0x811   :  { %2774 = vmatpush.msrb.mxu0 %v2324_v19  ;;  %2726 = vmatpush.msra.mxu2 %v2264_v21  ;;  %v2004_v29 = vmul.f32 2.0, %v1998_v26  ;;  %v2375_v19 = vpop.f32.mrf.mxu2  ;;  %v2809_v21 = vld [vmem:[#allocation32 + $0x50] sm:$0xff] }
 0x812   :  { %2763 = vmatpush.msra.mxu3 %v2268_v22  ;;  %2712 = vmatpush.msra.mxu1 %v2214_v23  ;;  %v2810_v22 = vld [vmem:[#allocation32 + $0x58] sm:$0xff]  ;;  %v2805_v26 = vld [vmem:[#allocation32 + $0x30] sm:$0xff] }
 0x813   :  { %2775 = vmatpush.msrb.mxu0 %v2322_v63  ;;  %2727 = vmatpush.msra.mxu2 %v2262_v27  ;;  %v5037_v34 = vsub.f32 %v2004_v29, %v4966_v25  ;;  %v2807_v27 = vld [vmem:[#allocation32 + $0x40] sm:$0xff] }
 0x814   :  { %2699 = vmatmul.f32.gmra.mxu0 %v4966_v25  ;;  %2764 = vmatpush.msra.mxu3 %v2266_v24  ;;  %v2206_v25 = vld [vmem:[#allocation29 + $0x628] sm:$0xff]  ;;  %v2355_v23 = vpop.f32.mrf.mxu1 }
 0x815   :  { %2776 = vmatpush.msrb.mxu0 %v2320_v28  ;;  %2765 = vmatmul.f32.vlgmr.msra.gmra.mxu3 %v5021_v40  ;;  %v2312_v40 = vld [vmem:[#allocation29 + $0x978] sm:$0xff]  ;;  %v2808_v24 = vld [vmem:[#allocation32 + $0x48] sm:$0xff]  ;;  %v2803_v29 = vld [vmem:[#allocation32 + $0x20] sm:$0xff] }
 0x816   :  { %2713 = vmatpush.msra.mxu1 %v2212_v30  ;;  %2728 = vmatpush.msra.mxu2 %v2260_v33  ;;  %v2806_v28 = vld [vmem:[#allocation32 + $0x38] sm:$0xff]  ;;  %v2804_v30 = vld [vmem:[#allocation32 + $0x28] sm:$0xff] }
 0x817   :  { %2777 = vmatpush.msrb.mxu0 %v2318_v3  ;;  %2561 = vmatmul.f32.gmra.mxu2 %v5037_v34  ;;  %v5051_v33 = vld [vmem:[#allocation31] sm:$0x3] }
 0x818   :  { %2714 = vmatpush.msra.mxu1 %v2210_v35  ;;  %2729 = vmatpush.msra.mxu2 %v2258_v36  ;;  %v2398_v0 = vpop.f32.mrf.mxu3  ;;  %v2801_v36 = vld [vmem:[#allocation32 + $0x10] sm:$0xff] }
 0x819   :  { %2778 = vmatpush.msrb.mxu0 %v2316_v50  ;;  %2630 = vmatmul.f32.gmra.mxu1 %v4935_v4  ;;  %v2248_v4 = vld [vmem:[#allocation29 + $0x778] sm:$0xff]  ;;  %v2378_v35 = vpop.f32.mrf.mxu2 }
 0x81a   :  { %2715 = vmatpush.msra.mxu1 %v2208_v37  ;;  %2730 = vmatpush.msra.mxu2 %v2256_v62  ;;  %v2802_v50 = vld [vmem:[#allocation32 + $0x18] sm:$0xff]  ;;  %v2331_v37 = vperm.slane %v5051_v33, 0 }
 0x81b   :  { %2779 = vmatpush.msrb.mxu0 %v2314_v38  ;;  %2915 = vmatpush.msrb.mxu3 %v2830_v57  ;;  %v2799_v38 = vld [vmem:[#allocation32] sm:$0xff] }
 0x81c   :  { %2716 = vmatpush.msra.mxu1 %v2206_v25  ;;  %2731 = vmatpush.msra.mxu2 %v2254_v2  ;;  %v2444_v3 = vpop.f32.mrf.mxu1  ;;  %v2800_v25 = vld [vmem:[#allocation32 + $0x8] sm:$0xff]  ;;  %v2353_v2 = vadd.f32 %v2352_v12, %v2331_v37  ;;  %v2847_v12 = vld [vmem:[#allocation32 + $0x180] sm:$0xff] }
 0x81d   :  { %2780 = vmatpush.msrb.mxu0 %v2312_v40  ;;  %2768 = vmatmul.f32.gmra.mxu3 %v5026_v56  ;;  %v2234_v56 = vld [vmem:[#allocation29 + $0x708] sm:$0xff] }
 0x81e   :  { %2717 = vmatpush.msra.mxu1 %v2204_v41  ;;  %2732 = vmatpush.msra.mxu2 %v2252_v42  ;;  %v2376_v40 = vadd.f32 %v2375_v19, %v2353_v2  ;;  %v2861_v42 = vld [vmem:[#allocation32 + $0x1f0] sm:$0xff]  ;;  %v2844_v19 = vld [vmem:[#allocation32 + $0x168] sm:$0xff] }
 0x81f   :  { %2781 = vmatpush.msrb.mxu0 %v2310_v43  ;;  %2650 = vmatmul.f32.vlgmr.msrb.gmra.mxu2 %v4943_v5  ;;  %v2240_v5 = vld [vmem:[#allocation29 + $0x738] sm:$0xff] }
 0x820   :  { %2718 = vmatpush.msra.mxu1 %v2202_v44  ;;  %2733 = vmatpush.msra.mxu2 %v2250_v16  ;;  %v2862_v43 = vld [vmem:[#allocation32 + $0x1f8] sm:$0xff]  ;;  %v2833_v2 = vld [vmem:[#allocation32 + $0x110] sm:$0xff] }
 0x821   :  { %2782 = vmatpush.msrb.mxu0 %v2308_v47  ;;  %2719 = vmatmul.f32.vlgmr.msra.gmra.mxu1 %v4989_v39  ;;  %v2238_v39 = vld [vmem:[#allocation29 + $0x728] sm:$0xff]  ;;  %v2467_v44 = vpop.f32.mrf.mxu2  ;;  %v2399_v47 = vadd.f32 %v2398_v0, %v2376_v40  ;;  %v2834_v40 = vld [vmem:[#allocation32 + $0x118] sm:$0xff] }
 0x822   :  { %2734 = vmatpush.msra.mxu2 %v2248_v4  ;;  %v2843_v0 = vld [vmem:[#allocation32 + $0x160] sm:$0xff] }
 0x823   :  { %2783 = vmatpush.msrb.mxu0 %v2306_v49  ;;  %v2859_v49 = vld [vmem:[#allocation32 + $0x1e0] sm:$0xff] }
 0x824   :  { %2735 = vmatpush.msra.mxu2 %v2246_v13  ;;  %v2447_v16 = vpop.f32.mrf.mxu1  ;;  %v2860_v13 = vld [vmem:[#allocation32 + $0x1e8] sm:$0xff] }
 0x825   :  { %2784 = vmatpush.msrb.mxu0 %v2304_v51  ;;  %v2857_v51 = vld [vmem:[#allocation32 + $0x1d0] sm:$0xff] }
 0x826   :  { %2736 = vmatpush.msra.mxu2 %v2244_v52  ;;  %v2858_v52 = vld [vmem:[#allocation32 + $0x1d8] sm:$0xff] }
 0x827   :  { %2785 = vmatpush.msrb.mxu0 %v2302_v15  ;;  %2653 = vmatmul.f32.gmra.mxu2 %v4945_v6  ;;  %v2829_v6 = vld [vmem:[#allocation32 + $0xf0] sm:$0xff] }
 0x828   :  { %2737 = vmatpush.msra.mxu2 %v2242_v48  ;;  %2869 = vmatpush.msrb.mxu1 %v2829_v6  ;;  %v2421_v63 = vpop.f32.mrf.mxu0  ;;  %v2356_v48 = vadd.f32 %v2355_v23, %v2331_v37  ;;  %v2836_v37 = vld [vmem:[#allocation32 + $0x128] sm:$0xff] }
 0x829   :  { %2786 = vmatpush.msrb.mxu0 %v2300_v53  ;;  %2722 = vmatmul.f32.gmra.mxu1 %v4986_v8  ;;  %v2828_v8 = vld [vmem:[#allocation32 + $0xe8] sm:$0xff]  ;;  %v2422_v15 = vadd.f32 %v2421_v63, %v2399_v47  ;;  %v2855_v53 = vld [vmem:[#allocation32 + $0x1c0] sm:$0xff] }
 0x82a   :  { %2738 = vmatpush.msra.mxu2 %v2240_v5  ;;  %2870 = vmatpush.msrb.mxu1 %v2827_v45  ;;  %v2856_v5 = vld [vmem:[#allocation32 + $0x1c8] sm:$0xff]  ;;  %v2470_v45 = vpop.f32.mrf.mxu2 }
 0x82b   :  { %2787 = vmatpush.msrb.mxu0 %v2298_v54  ;;  %2916 = vmatpush.msrb.mxu3 %v2828_v8  ;;  %v2445_v54 = vadd.f32 %v2444_v3, %v2422_v15  ;;  %v2832_v47 = vld [vmem:[#allocation32 + $0x108] sm:$0xff] }
 0x82c   :  { %2788 = vmatmul.f32.vlgmr.msrb.gmra.mxu0 %v5031_v20  ;;  %2739 = vmatpush.msra.mxu2 %v2238_v39  ;;  %v2814_v20 = vld [vmem:[#allocation32 + $0x78] sm:$0xff]  ;;  %v2853_v39 = vld [vmem:[#allocation32 + $0x1b0] sm:$0xff] }
 0x82d   :  { %2871 = vmatpush.msrb.mxu1 %v2825_v46  ;;  %2917 = vmatpush.msrb.mxu3 %v2826_v58  ;;  %v2851_v46 = vld [vmem:[#allocation32 + $0x1a0] sm:$0xff]  ;;  %v2852_v58 = vld [vmem:[#allocation32 + $0x1a8] sm:$0xff] }
 0x82e   :  { %2740 = vmatpush.msra.mxu2 %v2236_v31  ;;  %2938 = vmatpush.msra.mxu0 %v2862_v43  ;;  %v2854_v31 = vld [vmem:[#allocation32 + $0x1b8] sm:$0xff]  ;;  %v2332_v43 = vperm.slane %v5051_v33, 1 }
 0x82f   :  { %2872 = vmatpush.msrb.mxu1 %v2823_v59  ;;  %2918 = vmatpush.msrb.mxu3 %v2824_v60  ;;  %v2849_v59 = vld [vmem:[#allocation32 + $0x190] sm:$0xff]  ;;  %v2468_v60 = vadd.f32 %v2467_v44, %v2445_v54 }
 0x830   :  { %2741 = vmatpush.msra.mxu2 %v2234_v56  ;;  %v2424_v62 = vpop.f32.mrf.mxu0  ;;  %2939 = vmatpush.msra.mxu0 %v2860_v13  ;;  %v2379_v56 = vadd.f32 %v2378_v35, %v2356_v48  ;;  %v2838_v35 = vld [vmem:[#allocation32 + $0x138] sm:$0xff] }
 0x831   :  { %2742 = vmatmul.f32.vlgmr.msra.gmra.mxu2 %v5001_v55  ;;  %v2822_v55 = vld [vmem:[#allocation32 + $0xb8] sm:$0xff]  ;;  %2873 = vmatpush.msrb.mxu1 %v2821_v61 }
 0x832   :  { %2919 = vmatpush.msrb.mxu3 %v2822_v55  ;;  %2892 = vmatpush.msrb.mxu2 %v2861_v42  ;;  %v2850_v55 = vld [vmem:[#allocation32 + $0x198] sm:$0xff] }
 0x833   :  { %2874 = vmatpush.msrb.mxu1 %v2819_v7  ;;  %2940 = vmatpush.msra.mxu0 %v2858_v52 }
 0x834   :  { %2791 = vmatmul.f32.gmra.mxu0 %v5037_v34  ;;  %v2401_v34 = vpop.f32.mrf.mxu3  ;;  %2893 = vmatpush.msrb.mxu2 %v2859_v49 }
 0x835   :  { %2875 = vmatpush.msrb.mxu1 %v2817_v9  ;;  %2941 = vmatpush.msra.mxu0 %v2856_v5  ;;  %v2402_v8 = vadd.f32 %v2401_v34, %v2379_v56  ;;  %v2848_v9 = vld [vmem:[#allocation32 + $0x188] sm:$0xff]  ;;  %v2837_v34 = vld [vmem:[#allocation32 + $0x130] sm:$0xff] }
 0x836   :  { %2894 = vmatpush.msrb.mxu2 %v2857_v51 }
 0x837   :  { %2876 = vmatpush.msrb.mxu1 %v2815_v11  ;;  %2942 = vmatpush.msra.mxu0 %v2854_v31  ;;  %v2425_v7 = vadd.f32 %v2424_v62, %v2402_v8 }
 0x838   :  { %2895 = vmatpush.msrb.mxu2 %v2855_v53 }
 0x839   :  { %2745 = vmatmul.f32.gmra.mxu2 %v4998_v32  ;;  %v2820_v32 = vld [vmem:[#allocation32 + $0xa8] sm:$0xff]  ;;  %2877 = vmatpush.msrb.mxu1 %v2813_v17  ;;  %v2448_v17 = vadd.f32 %v2447_v16, %v2425_v7  ;;  %v2831_v16 = vld [vmem:[#allocation32 + $0x100] sm:$0xff] }
 0x83a   :  { %2920 = vmatpush.msrb.mxu3 %v2820_v32  ;;  %2896 = vmatpush.msrb.mxu2 %v2853_v39 }
 0x83b   :  { %2878 = vmatpush.msrb.mxu1 %v2811_v1  ;;  %2943 = vmatpush.msra.mxu0 %v2852_v58 }
 0x83c   :  { %2921 = vmatpush.msrb.mxu3 %v2818_v10  ;;  %v2490_v41 = vpop.f32.mrf.mxu3  ;;  %2897 = vmatpush.msrb.mxu2 %v2851_v46  ;;  %v2845_v10 = vld [vmem:[#allocation32 + $0x170] sm:$0xff] }
 0x83d   :  { %2879 = vmatpush.msrb.mxu1 %v2809_v21  ;;  %v2491_v32 = vadd.f32 %v2490_v41, %v2468_v60  ;;  %2944 = vmatpush.msra.mxu0 %v2850_v55  ;;  %v2841_v21 = vld [vmem:[#allocation32 + $0x150] sm:$0xff] }
 0x83e   :  { %2922 = vmatpush.msrb.mxu3 %v2816_v14  ;;  %2898 = vmatpush.msrb.mxu2 %v2849_v59  ;;  %v2846_v14 = vld [vmem:[#allocation32 + $0x178] sm:$0xff] }
 0x83f   :  { %2880 = vmatpush.msrb.mxu1 %v2807_v27  ;;  %2945 = vmatpush.msra.mxu0 %v2848_v9  ;;  %v2842_v27 = vld [vmem:[#allocation32 + $0x158] sm:$0xff] }
 0x840   :  { %2923 = vmatpush.msrb.mxu3 %v2814_v20  ;;  %2899 = vmatpush.msrb.mxu2 %v2847_v12 }
 0x841   :  { %2881 = vmatpush.msrb.mxu1 %v2805_v26  ;;  %2946 = vmatpush.msra.mxu0 %v2846_v14 }
 0x842   :  { %2924 = vmatpush.msrb.mxu3 %v2812_v18  ;;  %2900 = vmatpush.msrb.mxu2 %v2845_v10 }
 0x843   :  { %2882 = vmatpush.msrb.mxu1 %v2803_v29  ;;  %2947 = vmatpush.msra.mxu0 %v2844_v19  ;;  %v2839_v29 = vld [vmem:[#allocation32 + $0x140] sm:$0xff] }
 0x844   :  { %2925 = vmatpush.msrb.mxu3 %v2810_v22  ;;  %v2493_v6 = vpop.f32.mrf.mxu3  ;;  %2901 = vmatpush.msrb.mxu2 %v2843_v0 }
 0x845   :  { %2883 = vmatpush.msrb.mxu1 %v2801_v36  ;;  %2948 = vmatpush.msra.mxu0 %v2842_v27 }
 0x846   :  { %2926 = vmatpush.msrb.mxu3 %v2808_v24  ;;  %v2471_v24 = vadd.f32 %v2470_v45, %v2448_v17  ;;  %2902 = vmatpush.msrb.mxu2 %v2841_v21 }
 0x847   :  { %2884 = vmatpush.msrb.mxu1 %v2799_v38 }
 0x848   :  { %2927 = vmatpush.msrb.mxu3 %v2806_v28  ;;  %v2513_v4 = vpop.f32.mrf.mxu0  ;;  %v2494_v28 = vadd.f32 %v2493_v6, %v2471_v24  ;;  %2903 = vmatpush.msrb.mxu2 %v2839_v29 }
 0x849   :  { %v2514_v11 = vadd.f32 %v2513_v4, %v2491_v32 }
 0x84a   :  { %2928 = vmatpush.msrb.mxu3 %v2804_v30  ;;  %v2840_v30 = vld [vmem:[#allocation32 + $0x148] sm:$0xff]  ;;  %2904 = vmatpush.msrb.mxu2 %v2837_v34 }
 0x84b   :  { %2949 = vmatpush.msra.mxu0 %v2840_v30 }
 0x84c   :  { %2929 = vmatpush.msrb.mxu3 %v2802_v50  ;;  %v2835_v50 = vld [vmem:[#allocation32 + $0x120] sm:$0xff] }
 0x84d   :  { %2950 = vmatpush.msra.mxu0 %v2838_v35  ;;  %2905 = vmatpush.msrb.mxu2 %v2835_v50 }
 0x84e   :  { %2930 = vmatpush.msrb.mxu3 %v2800_v25 }
 0x84f   :  { %2951 = vmatpush.msra.mxu0 %v2836_v37  ;;  %2906 = vmatpush.msrb.mxu2 %v2833_v2  ;;  %v3096_v2 = vld [vmem:[#allocation35 + $0xf8] sm:$0xff] }
 0x850   :  { %v2516_v61 = vpop.f32.mrf.mxu0 }
 0x851   :  { %v2517_v3 = vadd.f32 %v2516_v61, %v2494_v28  ;;  %2952 = vmatpush.msra.mxu0 %v2834_v40  ;;  %2907 = vmatpush.msrb.mxu2 %v2831_v16  ;;  %v3094_v16 = vld [vmem:[#allocation35 + $0xe8] sm:$0xff] }
 0x853   :  { %2953 = vmatpush.msra.mxu0 %v2832_v47 }
 0x858   :  { %v2582_v20 = vpop.f32.mrf.mxu3 }
 0x859   :  { %v2583_v4 = vadd.f32 %v2582_v20, %v2332_v43 }
 0x860   :  { %v2585_v62 = vpop.f32.mrf.mxu3 }
 0x861   :  { %v2586_v5 = vadd.f32 %v2585_v62, %v2332_v43  ;;  %v3095_v43 = vld [vmem:[#allocation35 + $0xf0] sm:$0xff] }
 0x868   :  { %v2605_v22 = vpop.f32.mrf.mxu0 }
 0x869   :  { %v2606_v51 = vadd.f32 %v2605_v22, %v2583_v4  ;;  %v3080_v4 = vld [vmem:[#allocation35 + $0x78] sm:$0xff] }
 0x870   :  { %v2608_v41 = vpop.f32.mrf.mxu0 }
 0x871   :  { %v2609_v33 = vadd.f32 %v2608_v41, %v2586_v5  ;;  %v3090_v5 = vld [vmem:[#allocation35 + $0xc8] sm:$0xff] }
 0x878   :  { %v2674_v49 = vpop.f32.mrf.mxu3 }
 0x87a   :  { %v2536_v57 = vpop.f32.mrf.mxu1 }
 0x87b   :  { %v2537_v1 = vadd.f32 %v2536_v57, %v2514_v11 }
 0x880   :  { %v2677_v31 = vpop.f32.mrf.mxu3 }
 0x883   :  { %v2539_v23 = vpop.f32.mrf.mxu1 }
 0x884   :  { %v2540_v36 = vadd.f32 %v2539_v23, %v2517_v3 }
 0x889   :  { %v2697_v52 = vpop.f32.mrf.mxu0 }
 0x88c   :  { %v2628_v42 = vpop.f32.mrf.mxu1 }
 0x88d   :  { %v2629_v15 = vadd.f32 %v2628_v42, %v2606_v51  ;;  %v5061_v42 = vld [vmem:[#allocation5] sm:$0xff] }
 0x88e   :  { %v3092_v51 = vld [vmem:[#allocation35 + $0xd8] sm:$0xff] }
 0x891   :  { %v2559_v18 = vpop.f32.mrf.mxu2  ;;  %v2700_v6 = vpop.f32.mrf.mxu0 }
 0x892   :  { %v2560_v63 = vadd.f32 %v2559_v18, %v2537_v1 }
 0x894   :  { %v2795_v26 = vmax.f32 %v2560_v63, 0.0  ;;  %v2863_v63 = vld [vmem:[#allocation34] sm:$0x3] }
 0x895   :  { %v2866_v27 = vperm.slane %v2863_v63, 1  ;;  %v2865_v3 = vperm.slane %v2863_v63, 0  ;;  %v3109_v63 = vld [vmem:[#allocation35 + $0x160] sm:$0xff] }
 0x896   :  { %2885 = vmatmul.f32.vlgmr.msrb.gmra.mxu1 %v2795_v26  ;;  %2931 = vmatmul.f32.vlgmr.msrb.gmra.mxu3 %v2795_v26  ;;  %v2631_v48 = vpop.f32.mrf.mxu1 }
 0x897   :  { %v2632_v56 = vadd.f32 %v2631_v48, %v2609_v33  ;;  %v3091_v48 = vld [vmem:[#allocation35 + $0xd0] sm:$0xff]  ;;  %v3089_v33 = vld [vmem:[#allocation35 + $0xc0] sm:$0xff] }
 0x898   :  { %v2766_v59 = vpop.f32.mrf.mxu3 }
 0x89a   :  { %v2562_v38 = vpop.f32.mrf.mxu2 }
 0x89b   :  { %v2563_v25 = vadd.f32 %v2562_v38, %v2540_v36 }
 0x89d   :  { %v2797_v44 = vmax.f32 %v2563_v25, 0.0 }
 0x89e   :  { %v2720_v8 = vpop.f32.mrf.mxu1 }
 0x89f   :  { %2888 = vmatmul.f32.gmra.mxu1 %v2797_v44  ;;  %2934 = vmatmul.f32.gmra.mxu3 %v2797_v44 }
 0x8a0   :  { %v2769_v20 = vpop.f32.mrf.mxu3 }
 0x8a2   :  { %v2651_v13 = vpop.f32.mrf.mxu2 }
 0x8a3   :  { %v2652_v53 = vadd.f32 %v2651_v13, %v2629_v15  ;;  %v3079_v13 = vld [vmem:[#allocation35 + $0x70] sm:$0xff]  ;;  %v3078_v15 = vld [vmem:[#allocation35 + $0x68] sm:$0xff] }
 0x8a5   :  { %v2675_v39 = vadd.f32 %v2674_v49, %v2652_v53  ;;  %v3093_v49 = vld [vmem:[#allocation35 + $0xe0] sm:$0xff] }
 0x8a6   :  { %v2723_v9 = vpop.f32.mrf.mxu1  ;;  %v3077_v53 = vld [vmem:[#allocation35 + $0x60] sm:$0xff] }
 0x8a7   :  { %v2698_v45 = vadd.f32 %v2697_v52, %v2675_v39  ;;  %v5073_v52 = vld [vmem:[#allocation5 + $0x8] sm:$0xff]  ;;  %v3075_v39 = vld [vmem:[#allocation35 + $0x50] sm:$0xff] }
 0x8a9   :  { %v2721_v58 = vadd.f32 %v2720_v8, %v2698_v45  ;;  %v2789_v55 = vpop.f32.mrf.mxu0  ;;  %v3086_v45 = vld [vmem:[#allocation35 + $0xa8] sm:$0xff]  ;;  %v3072_v8 = vld [vmem:[#allocation35 + $0x38] sm:$0xff] }
 0x8aa   :  { %v2654_v54 = vpop.f32.mrf.mxu2 }
 0x8ab   :  { %v2655_v57 = vadd.f32 %v2654_v54, %v2632_v56  ;;  %v3076_v54 = vld [vmem:[#allocation35 + $0x58] sm:$0xff]  ;;  %v3074_v56 = vld [vmem:[#allocation35 + $0x48] sm:$0xff] }
 0x8ad   :  { %v2678_v46 = vadd.f32 %v2677_v31, %v2655_v57  ;;  %v3088_v31 = vld [vmem:[#allocation35 + $0xb8] sm:$0xff]  ;;  %v3073_v57 = vld [vmem:[#allocation35 + $0x40] sm:$0xff] }
 0x8af   :  { %v2701_v32 = vadd.f32 %v2700_v6, %v2678_v46  ;;  %v3087_v6 = vld [vmem:[#allocation35 + $0xb0] sm:$0xff]  ;;  %v3085_v46 = vld [vmem:[#allocation35 + $0xa0] sm:$0xff] }
 0x8b1   :  { %v2724_v11 = vadd.f32 %v2723_v9, %v2701_v32  ;;  %v2792_v18 = vpop.f32.mrf.mxu0  ;;  %v3068_v32 = vld [vmem:[#allocation35 + $0x18] sm:$0xff]  ;;  %v3067_v9 = vld [vmem:[#allocation35 + $0x10] sm:$0xff] }
 0x8b4   :  { %v2743_v60 = vpop.f32.mrf.mxu2 }
 0x8b5   :  { %v2744_v61 = vadd.f32 %v2743_v60, %v2721_v58  ;;  %v3071_v58 = vld [vmem:[#allocation35 + $0x30] sm:$0xff]  ;;  %v3070_v60 = vld [vmem:[#allocation35 + $0x28] sm:$0xff] }
 0x8b7   :  { %v2767_v7 = vadd.f32 %v2766_v59, %v2744_v61  ;;  %v3084_v59 = vld [vmem:[#allocation35 + $0x98] sm:$0xff]  ;;  %v3083_v61 = vld [vmem:[#allocation35 + $0x90] sm:$0xff] }
 0x8b9   :  { %v2790_v12 = vadd.f32 %v2789_v55, %v2767_v7  ;;  %v3069_v55 = vld [vmem:[#allocation35 + $0x20] sm:$0xff]  ;;  %v3082_v7 = vld [vmem:[#allocation35 + $0x88] sm:$0xff] }
 0x8bb   :  { %v2796_v10 = vmax.f32 %v2790_v12, 0.0  ;;  %v3081_v12 = vld [vmem:[#allocation35 + $0x80] sm:$0xff] }
 0x8bc   :  { %v2746_v14 = vpop.f32.mrf.mxu2 }
 0x8bd   :  { %v2747_v17 = vadd.f32 %v2746_v14, %v2724_v11  ;;  %2908 = vmatmul.f32.vlgmr.msrb.gmra.mxu2 %v2796_v10  ;;  %2954 = vmatmul.f32.vlgmr.msra.gmra.mxu0 %v2796_v10  ;;  %v3066_v10 = vld [vmem:[#allocation35 + $0x8] sm:$0xff]  ;;  %v3065_v11 = vld [vmem:[#allocation35] sm:$0xff] }
 0x8bf   :  { %v2770_v1 = vadd.f32 %v2769_v20, %v2747_v17 }
 0x8c1   :  { %v2793_v0 = vadd.f32 %v2792_v18, %v2770_v1  ;;  %v3112_v18 = vld [vmem:[#allocation35 + $0x178] sm:$0xff] }
 0x8c3   :  { %v2798_v19 = vmax.f32 %v2793_v0, 0.0  ;;  %v3128_v0 = vld [vmem:[#allocation35 + $0x1f8] sm:$0xff] }
 0x8c5   :  { %2911 = vmatmul.f32.gmra.mxu2 %v2798_v19  ;;  %2957 = vmatmul.f32.gmra.mxu0 %v2798_v19  ;;  %v3111_v19 = vld [vmem:[#allocation35 + $0x170] sm:$0xff] }
 0x913   :  { %v2886_v22 = vpop.f32.mrf.mxu1 }
 0x914   :  { %v2887_v37 = vadd.f32 %v2886_v22, %v2865_v3  ;;  %v3110_v22 = vld [vmem:[#allocation35 + $0x168] sm:$0xff] }
 0x919   :  { %v2932_v21 = vpop.f32.mrf.mxu3 }
 0x91a   :  { %v2933_v28 = vadd.f32 %v2932_v21, %v2866_v27  ;;  %v3127_v21 = vld [vmem:[#allocation35 + $0x1f0] sm:$0xff] }
 0x91c   :  { %v2889_v36 = vpop.f32.mrf.mxu1 }
 0x91d   :  { %v2890_v62 = vadd.f32 %v2889_v36, %v2865_v3  ;;  %v3159_v3 = vld [vmem:[#allocation35 + $0x2f0] sm:$0xff]  ;;  %v3106_v36 = vld [vmem:[#allocation35 + $0x148] sm:$0xff] }
 0x922   :  { %v2935_v24 = vpop.f32.mrf.mxu3 }
 0x923   :  { %v2936_v29 = vadd.f32 %v2935_v24, %v2866_v27  ;;  %v3125_v27 = vld [vmem:[#allocation35 + $0x1e0] sm:$0xff]  ;;  %v3108_v24 = vld [vmem:[#allocation35 + $0x158] sm:$0xff] }
 0x93a   :  { %v2955_v23 = vpop.f32.mrf.mxu0 }
 0x93b   :  { %v2956_v34 = vadd.f32 %v2955_v23, %v2933_v28  ;;  %v3126_v23 = vld [vmem:[#allocation35 + $0x1e8] sm:$0xff]  ;;  %v3107_v28 = vld [vmem:[#allocation35 + $0x150] sm:$0xff] }
 0x93d   :  { %v5057_v38 = vmax.f32 %v2956_v34, 0.0  ;;  %v3144_v34 = vld [vmem:[#allocation35 + $0x278] sm:$0xff] }
 0x940   :  { %v2909_v26 = vpop.f32.mrf.mxu2 }
 0x941   :  { %v2910_v40 = vadd.f32 %v2909_v26, %v2887_v37  ;;  %v3124_v26 = vld [vmem:[#allocation35 + $0x1d8] sm:$0xff]  ;;  %v3122_v37 = vld [vmem:[#allocation35 + $0x1c8] sm:$0xff] }
 0x942   :  { %v2958_v30 = vpop.f32.mrf.mxu0 }
 0x943   :  { %v2959_v35 = vadd.f32 %v2958_v30, %v2936_v29  ;;  %v5067_v47 = vmax.f32 %v2910_v40, 0.0  ;;  %v3123_v29 = vld [vmem:[#allocation35 + $0x1d0] sm:$0xff]  ;;  %v3160_v30 = vld [vmem:[#allocation35 + $0x2f8] sm:$0xff]  ;;  %v3121_v40 = vld [vmem:[#allocation35 + $0x1c0] sm:$0xff] }
 0x945   :  { %v5055_v50 = vmax.f32 %v2959_v35, 0.0  ;;  %v3143_v35 = vld [vmem:[#allocation35 + $0x270] sm:$0xff] }
 0x947   :  { %3002 = vmatpush.msra.mxu2 %v5055_v50 }
 0x948   :  { %v2912_v25 = vpop.f32.mrf.mxu2 }
 0x949   :  { %v2913_v41 = vadd.f32 %v2912_v25, %v2890_v62  ;;  %3003 = vmatpush.msra.mxu2 %v5057_v38  ;;  %v3158_v62 = vld [vmem:[#allocation35 + $0x2e8] sm:$0xff] }
 0x94a   :  { %3531 = vmatmul.msk.f32.vlgmr.msra.gmra.mxu2 %vm557_vm0, %v5061_v42  ;;  %v3142_v25 = vld [vmem:[#allocation35 + $0x268] sm:$0xff] }
 0x94b   :  { %v5065_v44 = vmax.f32 %v2913_v41, 0.0  ;;  %3188 = vmatpush.msrb.mxu2 %v3096_v2  ;;  %v3105_v2 = vld [vmem:[#allocation35 + $0x140] sm:$0xff] }
 0x94c   :  { %v3157_v41 = vld [vmem:[#allocation35 + $0x2e0] sm:$0xff] }
 0x94d   :  { %3189 = vmatpush.msrb.mxu2 %v3095_v43  ;;  %2979 = vmatpush.msra.mxu1 %v5065_v44  ;;  %v3104_v43 = vld [vmem:[#allocation35 + $0x138] sm:$0xff] }
 0x94f   :  { %3190 = vmatpush.msrb.mxu2 %v3094_v16  ;;  %2980 = vmatpush.msra.mxu1 %v5067_v47  ;;  %v3120_v16 = vld [vmem:[#allocation35 + $0x1b8] sm:$0xff] }
 0x950   :  { %3529 = vmatmul.msk.f32.vlgmr.msra.gmra.mxu1 %vm557_vm0, %v5061_v42 }
 0x951   :  { %3165 = vmatpush.msrb.mxu1 %v3080_v4  ;;  %3191 = vmatpush.msrb.mxu2 %v3093_v49  ;;  %v3156_v4 = vld [vmem:[#allocation35 + $0x2d8] sm:$0xff] }
 0x952   :  { %3532 = vmatmul.msk.f32.gmra.mxu2 %vm557_vm0, %v5073_v52  ;;  %v3140_v49 = vld [vmem:[#allocation35 + $0x258] sm:$0xff] }
 0x953   :  { %3166 = vmatpush.msrb.mxu1 %v3079_v13  ;;  %3192 = vmatpush.msrb.mxu2 %v3092_v51  ;;  %v3103_v13 = vld [vmem:[#allocation35 + $0x130] sm:$0xff] }
 0x954   :  { %v3119_v51 = vld [vmem:[#allocation35 + $0x1b0] sm:$0xff] }
 0x955   :  { %3167 = vmatpush.msrb.mxu1 %v3078_v15  ;;  %3193 = vmatpush.msrb.mxu2 %v3091_v48  ;;  %v3139_v15 = vld [vmem:[#allocation35 + $0x250] sm:$0xff]  ;;  %v3102_v48 = vld [vmem:[#allocation35 + $0x128] sm:$0xff] }
 0x957   :  { %3168 = vmatpush.msrb.mxu1 %v3077_v53  ;;  %3194 = vmatpush.msrb.mxu2 %v3090_v5  ;;  %v3118_v53 = vld [vmem:[#allocation35 + $0x1a8] sm:$0xff] }
 0x958   :  { %3530 = vmatmul.msk.f32.gmra.mxu1 %vm557_vm0, %v5073_v52  ;;  %v3154_v5 = vld [vmem:[#allocation35 + $0x2c8] sm:$0xff] }
 0x959   :  { %3169 = vmatpush.msrb.mxu1 %v3076_v54  ;;  %3195 = vmatpush.msrb.mxu2 %v3089_v33  ;;  %v3138_v54 = vld [vmem:[#allocation35 + $0x248] sm:$0xff]  ;;  %v3101_v33 = vld [vmem:[#allocation35 + $0x120] sm:$0xff] }
 0x95b   :  { %3170 = vmatpush.msrb.mxu1 %v3075_v39  ;;  %3196 = vmatpush.msrb.mxu2 %v3088_v31  ;;  %v3117_v39 = vld [vmem:[#allocation35 + $0x1a0] sm:$0xff] }
 0x95c   :  { %v3153_v31 = vld [vmem:[#allocation35 + $0x2c0] sm:$0xff] }
 0x95d   :  { %3171 = vmatpush.msrb.mxu1 %v3074_v56  ;;  %3197 = vmatpush.msrb.mxu2 %v3087_v6  ;;  %v3137_v56 = vld [vmem:[#allocation35 + $0x240] sm:$0xff]  ;;  %v3100_v6 = vld [vmem:[#allocation35 + $0x118] sm:$0xff] }
 0x95f   :  { %3172 = vmatpush.msrb.mxu1 %v3073_v57  ;;  %3198 = vmatpush.msrb.mxu2 %v3086_v45  ;;  %v3116_v57 = vld [vmem:[#allocation35 + $0x198] sm:$0xff] }
 0x960   :  { %v3152_v45 = vld [vmem:[#allocation35 + $0x2b8] sm:$0xff] }
 0x961   :  { %3173 = vmatpush.msrb.mxu1 %v3072_v8  ;;  %3199 = vmatpush.msrb.mxu2 %v3085_v46  ;;  %v3136_v8 = vld [vmem:[#allocation35 + $0x238] sm:$0xff]  ;;  %v3099_v46 = vld [vmem:[#allocation35 + $0x110] sm:$0xff] }
 0x963   :  { %3174 = vmatpush.msrb.mxu1 %v3071_v58  ;;  %3200 = vmatpush.msrb.mxu2 %v3084_v59  ;;  %v3115_v58 = vld [vmem:[#allocation35 + $0x190] sm:$0xff] }
 0x964   :  { %v3151_v59 = vld [vmem:[#allocation35 + $0x2b0] sm:$0xff] }
 0x965   :  { %3175 = vmatpush.msrb.mxu1 %v3070_v60  ;;  %3201 = vmatpush.msrb.mxu2 %v3083_v61  ;;  %v3135_v60 = vld [vmem:[#allocation35 + $0x230] sm:$0xff]  ;;  %v3098_v61 = vld [vmem:[#allocation35 + $0x108] sm:$0xff] }
 0x967   :  { %3176 = vmatpush.msrb.mxu1 %v3069_v55  ;;  %3202 = vmatpush.msrb.mxu2 %v3082_v7  ;;  %v3114_v55 = vld [vmem:[#allocation35 + $0x188] sm:$0xff] }
 0x968   :  { %v3150_v7 = vld [vmem:[#allocation35 + $0x2a8] sm:$0xff] }
 0x969   :  { %3177 = vmatpush.msrb.mxu1 %v3068_v32  ;;  %3203 = vmatpush.msrb.mxu2 %v3081_v12  ;;  %v3097_v32 = vld [vmem:[#allocation35 + $0x100] sm:$0xff] }
 0x96a   :  { %3204 = vmatmul.f32.vlgmr.msrb.gmra.mxu2 %v5057_v38  ;;  %v3113_v12 = vld [vmem:[#allocation35 + $0x180] sm:$0xff] }
 0x96b   :  { %3178 = vmatpush.msrb.mxu1 %v3067_v9  ;;  %3280 = vmatpush.msra.mxu2 %v3160_v30  ;;  %v3149_v9 = vld [vmem:[#allocation35 + $0x2a0] sm:$0xff] }
 0x96d   :  { %3179 = vmatpush.msrb.mxu1 %v3066_v10  ;;  %3281 = vmatpush.msra.mxu2 %v3159_v3  ;;  %v3148_v10 = vld [vmem:[#allocation35 + $0x298] sm:$0xff] }
 0x96f   :  { %3180 = vmatpush.msrb.mxu1 %v3065_v11  ;;  %3282 = vmatpush.msra.mxu2 %v3158_v62  ;;  %v3134_v11 = vld [vmem:[#allocation35 + $0x228] sm:$0xff] }
 0x970   :  { %3181 = vmatmul.f32.vlgmr.msrb.gmra.mxu1 %v5067_v47 }
 0x971   :  { %3257 = vmatpush.msra.mxu1 %v3144_v34  ;;  %3283 = vmatpush.msra.mxu2 %v3157_v41 }
 0x972   :  { %3207 = vmatmul.f32.gmra.mxu2 %v5055_v50 }
 0x973   :  { %3258 = vmatpush.msra.mxu1 %v3143_v35  ;;  %3284 = vmatpush.msra.mxu2 %v3156_v4 }
 0x975   :  { %3259 = vmatpush.msra.mxu1 %v3142_v25 }
 0x978   :  { %3184 = vmatmul.f32.gmra.mxu1 %v5065_v44 }
 0x9cd   :  { %v5083_v14 = vpop.f32.mrf.mxu1  ;;  %v5085_v17 = vpop.f32.mrf.mxu2 }
 0x9d5   :  { %v5087_v20 = vpop.f32.mrf.mxu1  ;;  %v5089_v1 = vpop.f32.mrf.mxu2 }
 0x9d6   :  { %3025 = vmatpush.msra.mxu3 %v5087_v20  ;;  %3048 = vmatpush.msrb.mxu0 %v5089_v1 }
 0x9d8   :  { %3026 = vmatpush.msra.mxu3 %v5083_v14  ;;  %3049 = vmatpush.msrb.mxu0 %v5085_v17 }
 0x9d9   :  { %3533 = vmatmul.msk.f32.vlgmr.msra.gmra.mxu3 %vm557_vm0, %v5061_v42  ;;  %3535 = vmatmul.msk.f32.vlgmr.msrb.gmra.mxu0 %vm557_vm0, %v5061_v42  ;;  %v3141_v42 = vld [vmem:[#allocation35 + $0x260] sm:$0xff] }
 0x9da   :  { %3211 = vmatpush.msrb.mxu3 %v3112_v18  ;;  %3234 = vmatpush.msra.mxu0 %v3128_v0  ;;  %v3147_v18 = vld [vmem:[#allocation35 + $0x290] sm:$0xff]  ;;  %v3133_v0 = vld [vmem:[#allocation35 + $0x220] sm:$0xff] }
 0x9db   :  { %3260 = vmatpush.msra.mxu1 %v3141_v42 }
 0x9dc   :  { %3212 = vmatpush.msrb.mxu3 %v3111_v19  ;;  %3235 = vmatpush.msra.mxu0 %v3127_v21  ;;  %v3146_v19 = vld [vmem:[#allocation35 + $0x288] sm:$0xff]  ;;  %v3132_v21 = vld [vmem:[#allocation35 + $0x218] sm:$0xff] }
 0x9dd   :  { %3261 = vmatpush.msra.mxu1 %v3140_v49 }
 0x9de   :  { %3213 = vmatpush.msrb.mxu3 %v3110_v22  ;;  %3236 = vmatpush.msra.mxu0 %v3126_v23  ;;  %v3145_v22 = vld [vmem:[#allocation35 + $0x280] sm:$0xff] }
 0x9df   :  { %3262 = vmatpush.msra.mxu1 %v3139_v15  ;;  %v3129_v23 = vld [vmem:[#allocation35 + $0x200] sm:$0xff] }
 0x9e0   :  { %3214 = vmatpush.msrb.mxu3 %v3109_v63  ;;  %3237 = vmatpush.msra.mxu0 %v3125_v27 }
 0x9e1   :  { %3534 = vmatmul.msk.f32.gmra.mxu3 %vm557_vm0, %v5073_v52  ;;  %3536 = vmatmul.msk.f32.gmra.mxu0 %vm557_vm0, %v5073_v52  ;;  %v3155_v52 = vld [vmem:[#allocation35 + $0x2d0] sm:$0xff] }
 0x9e2   :  { %3215 = vmatpush.msrb.mxu3 %v3108_v24  ;;  %3238 = vmatpush.msra.mxu0 %v3124_v26 }
 0x9e3   :  { %3285 = vmatpush.msra.mxu2 %v3155_v52  ;;  %3263 = vmatpush.msra.mxu1 %v3138_v54 }
 0x9e4   :  { %3216 = vmatpush.msrb.mxu3 %v3107_v28  ;;  %3239 = vmatpush.msra.mxu0 %v3123_v29 }
 0x9e5   :  { %3286 = vmatpush.msra.mxu2 %v3154_v5  ;;  %3264 = vmatpush.msra.mxu1 %v3137_v56 }
 0x9e6   :  { %3217 = vmatpush.msrb.mxu3 %v3106_v36  ;;  %3240 = vmatpush.msra.mxu0 %v3122_v37 }
 0x9e7   :  { %3287 = vmatpush.msra.mxu2 %v3153_v31  ;;  %3265 = vmatpush.msra.mxu1 %v3136_v8 }
 0x9e8   :  { %3218 = vmatpush.msrb.mxu3 %v3105_v2  ;;  %3241 = vmatpush.msra.mxu0 %v3121_v40 }
 0x9e9   :  { %3288 = vmatpush.msra.mxu2 %v3152_v45  ;;  %3266 = vmatpush.msra.mxu1 %v3135_v60 }
 0x9ea   :  { %3219 = vmatpush.msrb.mxu3 %v3104_v43  ;;  %3242 = vmatpush.msra.mxu0 %v3120_v16 }
 0x9eb   :  { %3289 = vmatpush.msra.mxu2 %v3151_v59  ;;  %3267 = vmatpush.msra.mxu1 %v3134_v11  ;;  %v3378_v11 = vld [vmem:[#allocation43 + $0x68] sm:$0xff] }
 0x9ec   :  { %3220 = vmatpush.msrb.mxu3 %v3103_v13  ;;  %3243 = vmatpush.msra.mxu0 %v3119_v51 }
 0x9ed   :  { %3290 = vmatpush.msra.mxu2 %v3150_v7  ;;  %3268 = vmatpush.msra.mxu1 %v3133_v0  ;;  %v3182_v36 = vpop.f32.mrf.mxu1  ;;  %v3205_v37 = vpop.f32.mrf.mxu2  ;;  %v3380_v7 = vld [vmem:[#allocation43 + $0x78] sm:$0xff]  ;;  %v3377_v0 = vld [vmem:[#allocation43 + $0x60] sm:$0xff] }
 0x9ee   :  { %3221 = vmatpush.msrb.mxu3 %v3102_v48  ;;  %3244 = vmatpush.msra.mxu0 %v3118_v53 }
 0x9ef   :  { %3291 = vmatpush.msra.mxu2 %v3149_v9  ;;  %3269 = vmatpush.msra.mxu1 %v3132_v21  ;;  %v3379_v9 = vld [vmem:[#allocation43 + $0x70] sm:$0xff]  ;;  %v3376_v21 = vld [vmem:[#allocation43 + $0x58] sm:$0xff] }
 0x9f0   :  { %3222 = vmatpush.msrb.mxu3 %v3101_v33  ;;  %3245 = vmatpush.msra.mxu0 %v3117_v39 }
 0x9f1   :  { %3292 = vmatpush.msra.mxu2 %v3148_v10 }
 0x9f2   :  { %3223 = vmatpush.msrb.mxu3 %v3100_v6  ;;  %3246 = vmatpush.msra.mxu0 %v3116_v57 }
 0x9f3   :  { %3293 = vmatpush.msra.mxu2 %v3147_v18 }
 0x9f4   :  { %3224 = vmatpush.msrb.mxu3 %v3099_v46  ;;  %3247 = vmatpush.msra.mxu0 %v3115_v58  ;;  %v3311_v46 = vld [vmem:[#allocation41] sm:$0x1] }
 0x9f5   :  { %3294 = vmatpush.msra.mxu2 %v3146_v19  ;;  %v3185_v25 = vpop.f32.mrf.mxu1  ;;  %v3208_v2 = vpop.f32.mrf.mxu2 }
 0x9f6   :  { %3225 = vmatpush.msrb.mxu3 %v3098_v61  ;;  %3248 = vmatpush.msra.mxu0 %v3114_v55 }
 0x9f7   :  { %3295 = vmatpush.msra.mxu2 %v3145_v22 }
 0x9f8   :  { %3226 = vmatpush.msrb.mxu3 %v3097_v32  ;;  %3249 = vmatpush.msra.mxu0 %v3113_v12 }
 0x9f9   :  { %3227 = vmatmul.f32.vlgmr.msrb.gmra.mxu3 %v5083_v14  ;;  %3250 = vmatmul.f32.vlgmr.msra.gmra.mxu0 %v5085_v17  ;;  %v3131_v14 = vld [vmem:[#allocation35 + $0x210] sm:$0xff]  ;;  %v3130_v17 = vld [vmem:[#allocation35 + $0x208] sm:$0xff] }
 0x9fa   :  { %3270 = vmatpush.msra.mxu1 %v3131_v14  ;;  %3382 = vmatpush.msra.mxu3 %v3380_v7  ;;  %v3375_v14 = vld [vmem:[#allocation43 + $0x50] sm:$0xff] }
 0x9fc   :  { %3271 = vmatpush.msra.mxu1 %v3130_v17  ;;  %3383 = vmatpush.msra.mxu3 %v3379_v9  ;;  %v3405_v9 = vld [vmem:[#allocation46 + $0x10] sm:$0xff] }
 0x9fe   :  { %3272 = vmatpush.msra.mxu1 %v3129_v23  ;;  %3384 = vmatpush.msra.mxu3 %v3378_v11  ;;  %v3374_v23 = vld [vmem:[#allocation43 + $0x48] sm:$0xff] }
 0x9ff   :  { %v3403_v11 = vld [vmem:[#allocation46] sm:$0xff] }
 0xa00   :  { %3385 = vmatpush.msra.mxu3 %v3377_v0 }
 0xa01   :  { %3230 = vmatmul.f32.gmra.mxu3 %v5087_v20  ;;  %3253 = vmatmul.f32.gmra.mxu0 %v5089_v1 }
 0xa02   :  { %3386 = vmatpush.msra.mxu3 %v3376_v21 }
 0xa04   :  { %3387 = vmatpush.msra.mxu3 %v3375_v14 }
 0xa06   :  { %3388 = vmatpush.msra.mxu3 %v3374_v23 }
 0xa56   :  { %v3051_v20 = vpop.f32.mrf.mxu0 }
 0xa57   :  { %v3058_v1 = vmul.f32 2.0, %v3051_v20 }
 0xa59   :  { %v3062_v63 = vsub.f32 %v3058_v1, %v5057_v38  ;;  %v3602_v38 = vld [vmem:[#allocation37] ss:$0 sm:$0xff]  ;;  %v3373_v1 = vld [vmem:[#allocation43 + $0x40] sm:$0xff] }
 0xa5a   :  { %v3183_v40 = vadd.f32 %v3602_v38, %v3182_v36  ;;  %v3186_v42 = vadd.f32 %v3602_v38, %v3185_v25  ;;  %3389 = vmatpush.msra.mxu3 %v3373_v1  ;;  %v3418_v25 = vld [vmem:[#allocation46 + $0x78] sm:$0xff] }
 0xa5b   :  { %3296 = vmatmul.f32.vlgmr.msra.gmra.mxu2 %v3062_v63  ;;  %3420 = vmatpush.msrb.mxu0 %v3418_v25 }
 0xa5c   :  { %v3028_v27 = vpop.f32.mrf.mxu3  ;;  %v3209_v4 = vadd.f32 %v3208_v2, %v3186_v42  ;;  %v3417_v2 = vld [vmem:[#allocation46 + $0x70] sm:$0xff]  ;;  %v3603_v42 = vld [vmem:[#allocation38] ss:$0 sm:$0xff] }
 0xa5d   :  { %v3057_v24 = vmul.f32 2.0, %v3028_v27  ;;  %v3372_v27 = vld [vmem:[#allocation43 + $0x38] sm:$0xff]  ;;  %3421 = vmatpush.msrb.mxu0 %v3417_v2 }
 0xa5e   :  { %v3054_v26 = vpop.f32.mrf.mxu0  ;;  %3390 = vmatpush.msra.mxu3 %v3372_v27 }
 0xa5f   :  { %v3061_v28 = vsub.f32 %v3057_v24, %v5067_v47  ;;  %v3060_v29 = vmul.f32 2.0, %v3054_v26  ;;  %v3206_v47 = vadd.f32 %v3205_v37, %v3183_v40  ;;  %v3371_v26 = vld [vmem:[#allocation43 + $0x30] sm:$0xff] }
 0xa60   :  { %3391 = vmatpush.msra.mxu3 %v3371_v26 }
 0xa61   :  { %v3064_v30 = vsub.f32 %v3060_v29, %v5055_v50  ;;  %3273 = vmatmul.f32.vlgmr.msra.gmra.mxu1 %v3061_v28  ;;  %v3370_v28 = vld [vmem:[#allocation43 + $0x28] sm:$0xff] }
 0xa62   :  { %3392 = vmatpush.msra.mxu3 %v3370_v28 }
 0xa63   :  { %3299 = vmatmul.f32.gmra.mxu2 %v3064_v30  ;;  %v3369_v30 = vld [vmem:[#allocation43 + $0x20] sm:$0xff] }
 0xa64   :  { %v3031_v3 = vpop.f32.mrf.mxu3  ;;  %3393 = vmatpush.msra.mxu3 %v3369_v30 }
 0xa65   :  { %v3059_v34 = vmul.f32 2.0, %v3031_v3  ;;  %v3368_v3 = vld [vmem:[#allocation43 + $0x18] sm:$0xff] }
 0xa66   :  { %3394 = vmatpush.msra.mxu3 %v3368_v3 }
 0xa67   :  { %v3063_v35 = vsub.f32 %v3059_v34, %v5065_v44  ;;  %v3367_v34 = vld [vmem:[#allocation43 + $0x10] sm:$0xff] }
 0xa68   :  { %3395 = vmatpush.msra.mxu3 %v3367_v34 }
 0xa69   :  { %3276 = vmatmul.f32.gmra.mxu1 %v3063_v35  ;;  %v3366_v35 = vld [vmem:[#allocation43 + $0x8] sm:$0xff] }
 0xa6a   :  { %3396 = vmatpush.msra.mxu3 %v3366_v35 }
 0xa76   :  { %v3251_v41 = vpop.f32.mrf.mxu0 }
 0xa7c   :  { %v3228_v62 = vpop.f32.mrf.mxu3 }
 0xa7d   :  { %v3229_v49 = vadd.f32 %v3228_v62, %v3206_v47  ;;  %v3365_v62 = vld [vmem:[#allocation43] sm:$0xff] }
 0xa7e   :  { %v3254_v52 = vpop.f32.mrf.mxu0  ;;  %3397 = vmatpush.msra.mxu3 %v3365_v62 }
 0xa7f   :  { %v3252_v51 = vadd.f32 %v3251_v41, %v3229_v49  ;;  %v3416_v41 = vld [vmem:[#allocation46 + $0x68] sm:$0xff] }
 0xa80   :  { %3422 = vmatpush.msrb.mxu0 %v3416_v41 }
 0xa84   :  { %v3231_v43 = vpop.f32.mrf.mxu3 }
 0xa85   :  { %v3232_v13 = vadd.f32 %v3231_v43, %v3209_v4  ;;  %v3415_v43 = vld [vmem:[#allocation46 + $0x60] sm:$0xff] }
 0xa86   :  { %3423 = vmatpush.msrb.mxu0 %v3415_v43 }
 0xa87   :  { %v3255_v15 = vadd.f32 %v3254_v52, %v3232_v13  ;;  %v3604_v13 = vld [vmem:[#allocation40] ss:$0 sm:$0xff]  ;;  %v3413_v52 = vld [vmem:[#allocation46 + $0x50] sm:$0xff] }
 0xade   :  { %v3274_v16 = vpop.f32.mrf.mxu1  ;;  %v3297_v50 = vpop.f32.mrf.mxu2 }
 0xadf   :  { %v3275_v44 = vadd.f32 %v3274_v16, %v3252_v51 }
 0xae1   :  { %v3298_v54 = vadd.f32 %v3297_v50, %v3275_v44  ;;  %v3414_v50 = vld [vmem:[#allocation46 + $0x58] sm:$0xff] }
 0xae2   :  { %3424 = vmatpush.msrb.mxu0 %v3414_v50 }
 0xae4   :  { %3425 = vmatpush.msrb.mxu0 %v3413_v52 }
 0xae6   :  { %v3277_v48 = vpop.f32.mrf.mxu1  ;;  %v3300_v5 = vpop.f32.mrf.mxu2 }
 0xae7   :  { %v3278_v53 = vadd.f32 %v3277_v48, %v3255_v15  ;;  %v3412_v48 = vld [vmem:[#allocation46 + $0x48] sm:$0xff] }
 0xae8   :  { %3426 = vmatpush.msrb.mxu0 %v3412_v48 }
 0xae9   :  { %v3301_v33 = vadd.f32 %v3300_v5, %v3278_v53 }
 0xaeb   :  { %v3303_v39 = vadd.f32 %v3301_v33, %v3298_v54 }
 0xaed   :  { %v3304_v31 = vrot.slane %v3303_v39, 4 }
 0xaef   :  { %v3305_v56 = vadd.f32 %v3304_v31, %v3303_v39  ;;  %v3410_v31 = vld [vmem:[#allocation46 + $0x38] sm:$0xff] }
 0xaf1   :  { %v3306_v6 = vrot.slane %v3305_v56, 2 }
 0xaf3   :  { %v3307_v57 = vadd.f32 %v3306_v6, %v3305_v56 }
 0xaf5   :  { %v3308_v45 = vrot.slane %v3307_v57, 1 }
 0xaf7   :  { %v3309_v8 = vadd.f32 %v3308_v45, %v3307_v57  ;;  %v3409_v45 = vld [vmem:[#allocation46 + $0x30] sm:$0xff] }
 0xaf9   :  { %v3310_v58 = vmul.f32 0.0625, %v3309_v8 }
 0xafb   :  { %v3312_v59 = vmul.f32 %v3311_v46, %v3310_v58  ;;  %v3408_v46 = vld [vmem:[#allocation46 + $0x28] sm:$0xff] }
 0xafd   :  { %v3313_v60 = vperm.slane %v3312_v59, 0 }
 0xaff   :  { %v5111_v61 = vsub.f32 %v3298_v54, %v3313_v60  ;;  %v5113_v55 = vsub.f32 %v3301_v33, %v3313_v60  ;;  %v3411_v54 = vld [vmem:[#allocation46 + $0x40] sm:$0xff] }
 0xb00   :  { %3427 = vmatpush.msrb.mxu0 %v3411_v54 }
 0xb01   :  { %v3316_v32 = vmul.f32 %v5111_v61, %v5111_v61  ;;  %v3317_v12 = vmul.f32 %v5113_v55, %v5113_v55  ;;  %v3330_v4 = vmul.f32 %v3603_v42, %v5111_v61  ;;  %v3331_v49 = vmul.f32 %v3603_v42, %v5113_v55 }
 0xb02   :  { %3428 = vmatpush.msrb.mxu0 %v3410_v31 }
 0xb03   :  { %v3318_v10 = vadd.f32 %v3317_v12, %v3316_v32  ;;  %v3407_v32 = vld [vmem:[#allocation46 + $0x20] sm:$0xff]  ;;  %v3406_v12 = vld [vmem:[#allocation46 + $0x18] sm:$0xff] }
 0xb04   :  { %3429 = vmatpush.msrb.mxu0 %v3409_v45 }
 0xb05   :  { %v3319_v18 = vrot.slane %v3318_v10, 4 }
 0xb06   :  { %3430 = vmatpush.msrb.mxu0 %v3408_v46 }
 0xb07   :  { %v3320_v19 = vadd.f32 %v3319_v18, %v3318_v10  ;;  %v3404_v10 = vld [vmem:[#allocation46 + $0x8] sm:$0xff]  ;;  %v3381_v18 = vld [vmem:[#allocation44] sm:$0x1] }
 0xb08   :  { %3431 = vmatpush.msrb.mxu0 %v3407_v32 }
 0xb09   :  { %v3321_v22 = vrot.slane %v3320_v19, 2 }
 0xb0a   :  { %3432 = vmatpush.msrb.mxu0 %v3406_v12 }
 0xb0b   :  { %v3322_v17 = vadd.f32 %v3321_v22, %v3320_v19  ;;  %v3419_v22 = vld [vmem:[#allocation47] sm:$0x1] }
 0xb0c   :  { %3433 = vmatpush.msrb.mxu0 %v3405_v9 }
 0xb0d   :  { %v3323_v20 = vrot.slane %v3322_v17, 1 }
 0xb0e   :  { %3434 = vmatpush.msrb.mxu0 %v3404_v10 }
 0xb0f   :  { %v3324_v63 = vadd.f32 %v3323_v20, %v3322_v17 }
 0xb10   :  { %3435 = vmatpush.msrb.mxu0 %v3403_v11 }
 0xb11   :  { %v3325_v24 = vmul.f32 0.0625, %v3324_v63 }
 0xb13   :  { %v3332_v29 = vadd.f32 1e-05, %v3325_v24 }
 0xb15   :  { %3617 = vrsqrt.f32 %v3332_v29  ;;  %vm3339_vm1 = vweird.f32 %v3332_v29 }
 0xb1b   :  { %v3618_v36 = vpop.eup %3617 }
 0xb1c   :  { %v3334_v37 = vmul.f32 %v3618_v36, %v3332_v29  ;;  %vm3340_vm0 = vweird.f32 %v3618_v36 }
 0xb1d   :  { %vm3341_vm2 = vmor %vm3339_vm1, %vm3340_vm0 }
 0xb1e   :  { %v3335_v38 = vmul.f32 %v3618_v36, %v3334_v37 }
 0xb20   :  { %v3336_v40 = vmul.f32 0.5, %v3335_v38 }
 0xb22   :  { %v3337_v47 = vsub.f32 1.5, %v3336_v40 }
 0xb24   :  { %v3338_v16 = vmul.f32 %v3618_v36, %v3337_v47 }
 0xb26   :  { %v3342_v51 = vsel %vm3341_vm2, %v3618_v36, %v3338_v16 }
 0xb27   :  { %v3343_v44 = vmul.f32 %v3342_v51, %v3330_v4  ;;  %v3344_v15 = vmul.f32 %v3342_v51, %v3331_v49 }
 0xb29   :  { %v3349_v53 = vadd.f32 %v3604_v13, %v3343_v44  ;;  %v3350_v5 = vadd.f32 %v3604_v13, %v3344_v15 }
 0xb2b   :  { %vm3351_vm3 = vcmp.gt.f32.partialorder %v3349_v53, 0.0  ;;  %vm3352_vm4 = vcmp.gt.f32.partialorder %v3350_v5, 0.0  ;;  %v3353_v33 = vmul.f32 0.2, %v3349_v53  ;;  %v3354_v39 = vmul.f32 0.2, %v3350_v5 }
 0xb2d   :  { %v3355_v56 = vsel %vm3351_vm3, %v3349_v53, %v3353_v33  ;;  %v3356_v6 = vsel %vm3352_vm4, %v3350_v5, %v3354_v39 }
 0xb2e   :  { %v3357_v57 = vadd.f32 %v3356_v6, %v3355_v56 }
 0xb30   :  { %v3358_v8 = vrot.slane %v3357_v57, 4 }
 0xb32   :  { %v3359_v58 = vadd.f32 %v3358_v8, %v3357_v57 }
 0xb34   :  { %v3360_v59 = vrot.slane %v3359_v58, 2 }
 0xb36   :  { %v3361_v60 = vadd.f32 %v3360_v59, %v3359_v58 }
 0xb38   :  { %v3362_v61 = vrot.slane %v3361_v60, 1 }
 0xb3a   :  { %v3363_v55 = vadd.f32 %v3362_v61, %v3361_v60 }
 0xb3c   :  { %v3364_v7 = vmul.f32 0.0625, %v3363_v55 }
 0xb3e   :  { %3398 = vmatmul.f32.vlgmr.msra.gmra.mxu3 %v3364_v7 }
 0xbc1   :  { %v3399_v0 = vpop.f32.mrf.mxu3 }
 0xbc2   :  { %v3400_v19 = vadd.f32 %v3399_v0, %v3381_v18 }
 0xbc4   :  { %3619 = vtanh.f32 %v3400_v19 }
 0xbca   :  { %v3620_v21 = vpop.eup %3619 }
 0xbcb   :  { %3436 = vmatmul.f32.vlgmr.msrb.gmra.mxu0 %v3620_v21 }
 0xc48   :  { %v3437_v14 = vpop.f32.mrf.mxu0 }
 0xc49   :  { %v3438_v17 = vadd.f32 %v3437_v14, %v3419_v22 }
 0xc4b   :  { %3440 = vst [vmem:[#allocation49] sm:$0x1] %v3438_v17 }
 0xc4c   :  { %4370 = shalt.err (!%p4367_p0)
}
 0xc4d   :  { %3451 = dma.vmem_to_hbm [thread:$0]  %s3447_s27, 16, %s3449_s28, [#allocation4]  }
 0xc4e   :  { %4403 = dma.done.wait [#allocation4], 16  }
 0xc4f   :  { %4404 = vsyncadd [#allocation4], 4294967280 }
 0xc50   :  { %3456 = vsyncpa [#allocation3], 1 }
 0xc51   :  { %3457 = vsyncpa [#allocation6], 1 }
 0xc52   :  { %3458 = vsyncpa [#allocation9], 1 }
 0xc53   :  { %3459 = vsyncpa [#allocation12], 1 }
 0xc54   :  { %3460 = vsyncpa [#allocation15], 1 }
 0xc55   :  { %3461 = vsyncpa [#allocation18], 1 }
 0xc56   :  { %3462 = vsyncpa [#allocation21], 1 }
 0xc57   :  { %3463 = vsyncpa [#allocation24], 1 }
 0xc58   :  { %3464 = vsyncpa [#allocation27], 1 }
 0xc59   :  { %3465 = vsyncpa [#allocation30], 1 }
 0xc5a   :  { %3466 = vsyncpa [#allocation33], 1 }
 0xc5b   :  { %3467 = vsyncpa [#allocation36], 1 }
 0xc5c   :  { %3468 = vsyncpa [#allocation39], 1 }
 0xc5d   :  { %3469 = vsyncpa [#allocation42], 1 }
 0xc5e   :  { %3470 = vsyncpa [#allocation45], 1 }
 0xc5f   :  { %3471 = vsyncpa [#allocation48], 1 }
 0xc60   :  { %3472 = vsyncpa [#allocation4], 1 }

</bundles_post_ra>
